<compile_context>
chip_gen: v6e
topology: v6e:2x2x1
jax: 0.10.0
libtpu: 0.0.40
codegen_flags: <defaults>
</compile_context>

<pallas_src>
import jax
import jax.numpy as jnp
from jax.experimental import pallas as pl
from jax.experimental.pallas import tpu as pltpu

H = W = 16
P = H * W                    # 256 spatial positions per image (lane axis)
C_IN = 3
C_IN_PAD = 8                 # pad input channels 3 -> 8 (sublane aligned)
C_MID = 32
DATA_DEPTH = 1
NEG_SLOPE = 0.01             # nn.LeakyReLU default
BN_EPS = 1e-5

# 3x3 taps in (kh, kw) row-major order -> spatial offset d = dh*W + dw
_TAPS = tuple((kh - 1, kw - 1) for kh in range(3) for kw in range(3))


def _conv3x3(a, w, masks):
    """3x3 'same' conv as 9 tap-wise matmuls accumulated in f32.

    a:     (cin, bp) activation, spatial on lanes.
    w:     (9, cout, cin) weights, tap-major (_TAPS order).
    masks: (8, bp) border masks for the 8 non-center taps (in _TAPS order,
           center skipped); zero the out-of-image / cross-image-wrap lanes.
    """
    bp = a.shape[-1]
    acc = None
    m_idx = 0
    for t, (dh, dw) in enumerate(_TAPS):
        d = dh * W + dw
        if d == 0:
            piece = a                                   # center tap: no roll, no mask
        else:
            piece = pltpu.roll(a, (-d) % bp, axis=1)    # XLU lane rotation
            piece = piece * masks[m_idx:m_idx + 1, :]   # border / wrap mask
            m_idx += 1
        contrib = jnp.dot(w[t], piece, preferred_element_type=jnp.float32)
        acc = contrib if acc is None else acc + contrib
    return acc


def decoder_kernel(x_ref, m_ref, w1_ref, w2_ref, w3_ref, vec_ref, o_ref):
    x = x_ref[0]               # (C_IN_PAD, bp)
    masks = m_ref[...]         # (8, bp)
    vec = vec_ref[...]         # (32, 8) packed per-channel constants

    b1, t1 = vec[:, 0:1], vec[:, 1:2]     # conv1 bias, BN1 shift (t1/s1)
    b2, t2 = vec[:, 2:3], vec[:, 3:4]     # conv2 bias, BN2 shift (t2/s2)
    b3 = vec[0:1, 4:5]                    # conv3 bias

    # conv1 + bias -> LeakyReLU -> BN shift (BN scale folded into w2)
    z = _conv3x3(x, w1_ref[...], masks) + b1
    a1 = jnp.maximum(z, NEG_SLOPE * z) + t1               # (32, bp)

    # conv2 + bias -> LeakyReLU -> BN shift (BN scale folded into w3)
    z = _conv3x3(a1, w2_ref[...], masks) + b2
    a2 = jnp.maximum(z, NEG_SLOPE * z) + t2                # (32, bp)

    # conv3 (cout = 1): result already lane-dense (1, bp)
    o_ref[0] = _conv3x3(a2, w3_ref[...], masks) + b3


def _const_spec(shape):
    nd = len(shape)
    return pl.BlockSpec(shape, lambda i, _nd=nd: (0,) * _nd)


def decoder_forward(x_nchw, params, block_n=None):
    """x_nchw: (N, 3, H, W) float32 -> (N, 1, H, W) float32."""
    w1, b1, s1, t1, w2, b2, s2, t2, w3, b3 = params
    n = x_nchw.shape[0]

    if block_n is None:
        bn = min(n, 32)                      # amortize ~0.35us/step pipeline overhead
        # v7x has 2 TensorCores; keep >= 2 grid steps when possible so the
        # "parallel" batch axis shards across them.
        if n > 16 and pl.cdiv(n, bn) < 2:
            bn = pl.cdiv(n, 2)
    else:
        bn = block_n
    g = pl.cdiv(n, bn)
    n_pad = g * bn
    bp = bn * P                              # lane width, always multiple of 128

    # ---- input: NCHW -> (G, C_IN_PAD, B*P); channels on sublanes, per-image
    #      256-lane blocks concatenated along lanes.  Tiny XLA-side rearrange.
    x = x_nchw.reshape(n, C_IN, P).astype(jnp.float32)
    x = jnp.pad(x, ((0, n_pad - n), (0, C_IN_PAD - C_IN), (0, 0)))
    x = x.reshape(g, bn, C_IN_PAD, P).transpose(0, 2, 1, 3).reshape(g, C_IN_PAD, bp)

    # ---- border masks for the 8 non-center taps, precomputed once here.
    pos = jnp.arange(bp, dtype=jnp.int32) % P
    row, colp = pos // W, pos % W
    mask_rows = []
    for dh, dw in _TAPS:
        if dh == 0 and dw == 0:
            continue
        valid = ((row + dh >= 0) & (row + dh < H) &
                 (colp + dw >= 0) & (colp + dw < W))
        mask_rows.append(valid.astype(jnp.float32))
    masks = jnp.stack(mask_rows, axis=0)                              # (8, bp)

    # ---- weights -> (9, cout, cin); BN scale folded into the following conv.
    #      (Exact: bn scale sits between LeakyReLU and a linear conv; requires
    #       s != 0, which holds for any real BatchNorm since eps > 0.)
    w1p = jnp.pad(w1, ((0, 0), (0, 0), (0, C_IN_PAD - C_IN), (0, 0)))
    w1t = w1p.reshape(9, C_IN_PAD, C_MID).transpose(0, 2, 1)          # (9, 32, 8)
    w2t = (w2 * s1[None, None, :, None]).reshape(9, C_MID, C_MID).transpose(0, 2, 1)
    w3t = (w3 * s2[None, None, :, None]).reshape(9, C_MID, DATA_DEPTH).transpose(0, 2, 1)

    # ---- per-channel constants packed into one small operand.
    vec = jnp.zeros((C_MID, 8), jnp.float32)
    vec = vec.at[:, 0].set(b1).at[:, 1].set(t1 / s1)
    vec = vec.at[:, 2].set(b2).at[:, 3].set(t2 / s2)
    vec = vec.at[0, 4].set(b3[0])

    # VMEM budget sized to the per-step working set (with headroom), clamped
    # to stay under v7x's 64 MiB physical VMEM.
    vmem_limit = int(min(max(8 * bp * (2 * C_IN_PAD + 8 + 6 * C_MID), 32 << 20),
                         56 << 20))

    out = pl.pallas_call(
        decoder_kernel,
        out_shape=jax.ShapeDtypeStruct((g, DATA_DEPTH, bp), jnp.float32),
        grid=(g,),
        in_specs=[
            pl.BlockSpec((1, C_IN_PAD, bp), lambda i: (i, 0, 0)),
            _const_spec(masks.shape),
            _const_spec(w1t.shape),
            _const_spec(w2t.shape),
            _const_spec(w3t.shape),
            _const_spec(vec.shape),
        ],
        out_specs=pl.BlockSpec((1, DATA_DEPTH, bp), lambda i: (i, 0, 0)),
        compiler_params=pltpu.CompilerParams(
            dimension_semantics=("parallel",),
            vmem_limit_bytes=vmem_limit),
    )(x, masks, w1t, w2t, w3t, vec)

    # (G, 1, B*P) flattens in (image, position) order -> NCHW with C=1.
    return out.reshape(n_pad, DATA_DEPTH, H, W)[:n]


def reference_forward(x_nchw, params):
    """Pure-JAX reference (lax.conv) for correctness checking."""
    w1, b1, s1, t1, w2, b2, s2, t2, w3, b3 = params
    dn = ('NHWC', 'HWIO', 'NHWC')

    def conv(a, w):
        return jax.lax.conv_general_dilated(
            a, w, (1, 1), ((1, 1), (1, 1)), dimension_numbers=dn)

    def bcast(v):
        return v.reshape(1, 1, 1, -1)

    a = jnp.transpose(x_nchw, (0, 2, 3, 1)).astype(jnp.float32)
    a = conv(a, w1) + bcast(b1)
    a = jnp.where(a > 0, a, NEG_SLOPE * a)
    a = a * bcast(s1) + bcast(t1)
    a = conv(a, w2) + bcast(b2)
    a = jnp.where(a > 0, a, NEG_SLOPE * a)
    a = a * bcast(s2) + bcast(t2)
    a = conv(a, w3) + bcast(b3)
    return jnp.transpose(a, (0, 3, 1, 2))


def init_params(key):
    ks = jax.random.split(key, 14)
    f32 = jnp.float32

    # conv1
    w1 = 0.1 * jax.random.normal(ks[0], (3, 3, C_IN, C_MID), f32)
    b1 = 0.1 * jax.random.normal(ks[1], (C_MID,), f32)
    g1 = 1.0 + 0.1 * jax.random.normal(ks[2], (C_MID,), f32)
    be1 = 0.1 * jax.random.normal(ks[3], (C_MID,), f32)
    m1 = 0.1 * jax.random.normal(ks[4], (C_MID,), f32)
    v1 = 0.5 + jnp.abs(jax.random.normal(ks[5], (C_MID,), f32))
    s1 = g1 / jnp.sqrt(v1 + BN_EPS)
    t1 = be1 - m1 * s1

    # conv2
    w2 = 0.1 * jax.random.normal(ks[6], (3, 3, C_MID, C_MID), f32)
    b2 = 0.1 * jax.random.normal(ks[7], (C_MID,), f32)
    g2 = 1.0 + 0.1 * jax.random.normal(ks[8], (C_MID,), f32)
    be2 = 0.1 * jax.random.normal(ks[9], (C_MID,), f32)
    m2 = 0.1 * jax.random.normal(ks[10], (C_MID,), f32)
    v2 = 0.5 + jnp.abs(jax.random.normal(ks[11], (C_MID,), f32))
    s2 = g2 / jnp.sqrt(v2 + BN_EPS)
    t2 = be2 - m2 * s2

    # conv3
    w3 = 0.1 * jax.random.normal(ks[12], (3, 3, C_MID, DATA_DEPTH), f32)
    b3 = 0.1 * jax.random.normal(ks[13], (DATA_DEPTH,), f32)

    return (w1, b1, s1, t1, w2, b2, s2, t2, w3, b3)


if __name__ == "__main__":
    key = jax.random.PRNGKey(0)
    k_x, k_p = jax.random.split(key)

    x = jax.random.normal(k_x, (2, C_IN, H, W), jnp.float32)   # NCHW like PyTorch
    params = init_params(k_p)

    y = jax.jit(decoder_forward)(x, params)
    jax.block_until_ready(y)

    y_ref = reference_forward(x, params)
    assert y.shape == (2, DATA_DEPTH, H, W), y.shape
    assert jnp.allclose(y, y_ref, atol=2e-3, rtol=2e-3), (
        float(jnp.max(jnp.abs(y - y_ref))))

    print("KERNEL_OK")
</pallas_src>

<mosaic_0001>
module attributes {stable_mosaic.version = 11 : i64} {
  func.func @decoder_kernel(%arg0: i32, %arg1: memref<1x8x512xf32, #tpu.memory_space<vmem>>, %arg2: memref<8x512xf32, #tpu.memory_space<vmem>>, %arg3: memref<9x32x8xf32, #tpu.memory_space<vmem>>, %arg4: memref<9x32x32xf32, #tpu.memory_space<vmem>>, %arg5: memref<9x1x32xf32, #tpu.memory_space<vmem>>, %arg6: memref<32x8xf32, #tpu.memory_space<vmem>>, %arg7: memref<1x1x512xf32, #tpu.memory_space<vmem>>) attributes {dimension_semantics = [#tpu.dimension_semantics<parallel>], iteration_bounds = array<i64: 1>, scalar_prefetch = 0 : i64, scratch_operands = 0 : i64, tpu.core_type = #tpu.core_type<tc>, window_params = [{transform_indices = @transform_0, window_bounds = array<i64: 1, 8, 512>}, {pipeline_mode = #tpu.pipeline_mode<synchronous>, transform_indices = @transform_1, window_bounds = array<i64: 8, 512>}, {pipeline_mode = #tpu.pipeline_mode<synchronous>, transform_indices = @transform_2, window_bounds = array<i64: 9, 32, 8>}, {pipeline_mode = #tpu.pipeline_mode<synchronous>, transform_indices = @transform_3, window_bounds = array<i64: 9, 32, 32>}, {pipeline_mode = #tpu.pipeline_mode<synchronous>, transform_indices = @transform_4, window_bounds = array<i64: 9, 1, 32>}, {pipeline_mode = #tpu.pipeline_mode<synchronous>, transform_indices = @transform_5, window_bounds = array<i64: 32, 8>}, {transform_indices = @transform_6, window_bounds = array<i64: 1, 1, 512>}]} {
    %c0 = arith.constant 0 : index
    %c0_0 = arith.constant 0 : index
    %c0_1 = arith.constant 0 : index
    %0 = vector.load %arg1[%c0, %c0_0, %c0_1] : memref<1x8x512xf32, #tpu.memory_space<vmem>>, vector<1x8x512xf32>
    %1 = vector.shape_cast %0 : vector<1x8x512xf32> to vector<8x512xf32>
    %c0_2 = arith.constant 0 : index
    %c0_3 = arith.constant 0 : index
    %2 = vector.load %arg2[%c0_2, %c0_3] : memref<8x512xf32, #tpu.memory_space<vmem>>, vector<8x512xf32>
    %c0_4 = arith.constant 0 : index
    %c0_5 = arith.constant 0 : index
    %3 = vector.load %arg6[%c0_4, %c0_5] : memref<32x8xf32, #tpu.memory_space<vmem>>, vector<32x8xf32>
    %4 = vector.extract_strided_slice %3 {offsets = [0, 0], sizes = [32, 1], strides = [1, 1]} : vector<32x8xf32> to vector<32x1xf32>
    %5 = vector.extract_strided_slice %3 {offsets = [0, 1], sizes = [32, 1], strides = [1, 1]} : vector<32x8xf32> to vector<32x1xf32>
    %6 = vector.extract_strided_slice %3 {offsets = [0, 2], sizes = [32, 1], strides = [1, 1]} : vector<32x8xf32> to vector<32x1xf32>
    %7 = vector.extract_strided_slice %3 {offsets = [0, 3], sizes = [32, 1], strides = [1, 1]} : vector<32x8xf32> to vector<32x1xf32>
    %8 = vector.extract_strided_slice %3 {offsets = [0, 4], sizes = [1, 1], strides = [1, 1]} : vector<32x8xf32> to vector<1x1xf32>
    %c0_6 = arith.constant 0 : index
    %c0_7 = arith.constant 0 : index
    %c0_8 = arith.constant 0 : index
    %9 = vector.load %arg3[%c0_6, %c0_7, %c0_8] : memref<9x32x8xf32, #tpu.memory_space<vmem>>, vector<9x32x8xf32>
    %c17_i32 = arith.constant 17 : i32
    %10 = tpu.dynamic_rotate %1 by %c17_i32 dim 1 : vector<8x512xf32>, i32 -> vector<8x512xf32>
    %11 = vector.extract_strided_slice %2 {offsets = [0, 0], sizes = [1, 512], strides = [1, 1]} : vector<8x512xf32> to vector<1x512xf32>
    %12 = vector.broadcast %11 : vector<1x512xf32> to vector<8x512xf32>
    %13 = arith.mulf %10, %12 : vector<8x512xf32>
    %14 = vector.extract_strided_slice %9 {offsets = [0, 0, 0], sizes = [1, 32, 8], strides = [1, 1, 1]} : vector<9x32x8xf32> to vector<1x32x8xf32>
    %15 = vector.shape_cast %14 : vector<1x32x8xf32> to vector<32x8xf32>
    %cst = arith.constant dense<0.000000e+00> : vector<32x512xf32>
    %16 = tpu.matmul %15, %13, %cst {dimension_numbers = #tpu.dot_dimension_numbers<[1], [0], [0], [1], [0, 0, 1, 1], [], []>} : vector<32x8xf32>, vector<8x512xf32>, vector<32x512xf32> -> vector<32x512xf32>
    %c16_i32 = arith.constant 16 : i32
    %17 = tpu.dynamic_rotate %1 by %c16_i32 dim 1 : vector<8x512xf32>, i32 -> vector<8x512xf32>
    %18 = vector.extract_strided_slice %2 {offsets = [1, 0], sizes = [1, 512], strides = [1, 1]} : vector<8x512xf32> to vector<1x512xf32>
    %19 = vector.broadcast %18 : vector<1x512xf32> to vector<8x512xf32>
    %20 = arith.mulf %17, %19 : vector<8x512xf32>
    %21 = vector.extract_strided_slice %9 {offsets = [1, 0, 0], sizes = [1, 32, 8], strides = [1, 1, 1]} : vector<9x32x8xf32> to vector<1x32x8xf32>
    %22 = vector.shape_cast %21 : vector<1x32x8xf32> to vector<32x8xf32>
    %cst_9 = arith.constant dense<0.000000e+00> : vector<32x512xf32>
    %23 = tpu.matmul %22, %20, %cst_9 {dimension_numbers = #tpu.dot_dimension_numbers<[1], [0], [0], [1], [0, 0, 1, 1], [], []>} : vector<32x8xf32>, vector<8x512xf32>, vector<32x512xf32> -> vector<32x512xf32>
    %24 = arith.addf %16, %23 : vector<32x512xf32>
    %c15_i32 = arith.constant 15 : i32
    %25 = tpu.dynamic_rotate %1 by %c15_i32 dim 1 : vector<8x512xf32>, i32 -> vector<8x512xf32>
    %26 = vector.extract_strided_slice %2 {offsets = [2, 0], sizes = [1, 512], strides = [1, 1]} : vector<8x512xf32> to vector<1x512xf32>
    %27 = vector.broadcast %26 : vector<1x512xf32> to vector<8x512xf32>
    %28 = arith.mulf %25, %27 : vector<8x512xf32>
    %29 = vector.extract_strided_slice %9 {offsets = [2, 0, 0], sizes = [1, 32, 8], strides = [1, 1, 1]} : vector<9x32x8xf32> to vector<1x32x8xf32>
    %30 = vector.shape_cast %29 : vector<1x32x8xf32> to vector<32x8xf32>
    %cst_10 = arith.constant dense<0.000000e+00> : vector<32x512xf32>
    %31 = tpu.matmul %30, %28, %cst_10 {dimension_numbers = #tpu.dot_dimension_numbers<[1], [0], [0], [1], [0, 0, 1, 1], [], []>} : vector<32x8xf32>, vector<8x512xf32>, vector<32x512xf32> -> vector<32x512xf32>
    %32 = arith.addf %24, %31 : vector<32x512xf32>
    %c1_i32 = arith.constant 1 : i32
    %33 = tpu.dynamic_rotate %1 by %c1_i32 dim 1 : vector<8x512xf32>, i32 -> vector<8x512xf32>
    %34 = vector.extract_strided_slice %2 {offsets = [3, 0], sizes = [1, 512], strides = [1, 1]} : vector<8x512xf32> to vector<1x512xf32>
    %35 = vector.broadcast %34 : vector<1x512xf32> to vector<8x512xf32>
    %36 = arith.mulf %33, %35 : vector<8x512xf32>
    %37 = vector.extract_strided_slice %9 {offsets = [3, 0, 0], sizes = [1, 32, 8], strides = [1, 1, 1]} : vector<9x32x8xf32> to vector<1x32x8xf32>
    %38 = vector.shape_cast %37 : vector<1x32x8xf32> to vector<32x8xf32>
    %cst_11 = arith.constant dense<0.000000e+00> : vector<32x512xf32>
    %39 = tpu.matmul %38, %36, %cst_11 {dimension_numbers = #tpu.dot_dimension_numbers<[1], [0], [0], [1], [0, 0, 1, 1], [], []>} : vector<32x8xf32>, vector<8x512xf32>, vector<32x512xf32> -> vector<32x512xf32>
    %40 = arith.addf %32, %39 : vector<32x512xf32>
    %41 = vector.extract_strided_slice %9 {offsets = [4, 0, 0], sizes = [1, 32, 8], strides = [1, 1, 1]} : vector<9x32x8xf32> to vector<1x32x8xf32>
    %42 = vector.shape_cast %41 : vector<1x32x8xf32> to vector<32x8xf32>
    %cst_12 = arith.constant dense<0.000000e+00> : vector<32x512xf32>
    %43 = tpu.matmul %42, %1, %cst_12 {dimension_numbers = #tpu.dot_dimension_numbers<[1], [0], [0], [1], [0, 0, 1, 1], [], []>} : vector<32x8xf32>, vector<8x512xf32>, vector<32x512xf32> -> vector<32x512xf32>
    %44 = arith.addf %40, %43 : vector<32x512xf32>
    %c511_i32 = arith.constant 511 : i32
    %45 = tpu.dynamic_rotate %1 by %c511_i32 dim 1 : vector<8x512xf32>, i32 -> vector<8x512xf32>
    %46 = vector.extract_strided_slice %2 {offsets = [4, 0], sizes = [1, 512], strides = [1, 1]} : vector<8x512xf32> to vector<1x512xf32>
    %47 = vector.broadcast %46 : vector<1x512xf32> to vector<8x512xf32>
    %48 = arith.mulf %45, %47 : vector<8x512xf32>
    %49 = vector.extract_strided_slice %9 {offsets = [5, 0, 0], sizes = [1, 32, 8], strides = [1, 1, 1]} : vector<9x32x8xf32> to vector<1x32x8xf32>
    %50 = vector.shape_cast %49 : vector<1x32x8xf32> to vector<32x8xf32>
    %cst_13 = arith.constant dense<0.000000e+00> : vector<32x512xf32>
    %51 = tpu.matmul %50, %48, %cst_13 {dimension_numbers = #tpu.dot_dimension_numbers<[1], [0], [0], [1], [0, 0, 1, 1], [], []>} : vector<32x8xf32>, vector<8x512xf32>, vector<32x512xf32> -> vector<32x512xf32>
    %52 = arith.addf %44, %51 : vector<32x512xf32>
    %c497_i32 = arith.constant 497 : i32
    %53 = tpu.dynamic_rotate %1 by %c497_i32 dim 1 : vector<8x512xf32>, i32 -> vector<8x512xf32>
    %54 = vector.extract_strided_slice %2 {offsets = [5, 0], sizes = [1, 512], strides = [1, 1]} : vector<8x512xf32> to vector<1x512xf32>
    %55 = vector.broadcast %54 : vector<1x512xf32> to vector<8x512xf32>
    %56 = arith.mulf %53, %55 : vector<8x512xf32>
    %57 = vector.extract_strided_slice %9 {offsets = [6, 0, 0], sizes = [1, 32, 8], strides = [1, 1, 1]} : vector<9x32x8xf32> to vector<1x32x8xf32>
    %58 = vector.shape_cast %57 : vector<1x32x8xf32> to vector<32x8xf32>
    %cst_14 = arith.constant dense<0.000000e+00> : vector<32x512xf32>
    %59 = tpu.matmul %58, %56, %cst_14 {dimension_numbers = #tpu.dot_dimension_numbers<[1], [0], [0], [1], [0, 0, 1, 1], [], []>} : vector<32x8xf32>, vector<8x512xf32>, vector<32x512xf32> -> vector<32x512xf32>
    %60 = arith.addf %52, %59 : vector<32x512xf32>
    %c496_i32 = arith.constant 496 : i32
    %61 = tpu.dynamic_rotate %1 by %c496_i32 dim 1 : vector<8x512xf32>, i32 -> vector<8x512xf32>
    %62 = vector.extract_strided_slice %2 {offsets = [6, 0], sizes = [1, 512], strides = [1, 1]} : vector<8x512xf32> to vector<1x512xf32>
    %63 = vector.broadcast %62 : vector<1x512xf32> to vector<8x512xf32>
    %64 = arith.mulf %61, %63 : vector<8x512xf32>
    %65 = vector.extract_strided_slice %9 {offsets = [7, 0, 0], sizes = [1, 32, 8], strides = [1, 1, 1]} : vector<9x32x8xf32> to vector<1x32x8xf32>
    %66 = vector.shape_cast %65 : vector<1x32x8xf32> to vector<32x8xf32>
    %cst_15 = arith.constant dense<0.000000e+00> : vector<32x512xf32>
    %67 = tpu.matmul %66, %64, %cst_15 {dimension_numbers = #tpu.dot_dimension_numbers<[1], [0], [0], [1], [0, 0, 1, 1], [], []>} : vector<32x8xf32>, vector<8x512xf32>, vector<32x512xf32> -> vector<32x512xf32>
    %68 = arith.addf %60, %67 : vector<32x512xf32>
    %c495_i32 = arith.constant 495 : i32
    %69 = tpu.dynamic_rotate %1 by %c495_i32 dim 1 : vector<8x512xf32>, i32 -> vector<8x512xf32>
    %70 = vector.extract_strided_slice %2 {offsets = [7, 0], sizes = [1, 512], strides = [1, 1]} : vector<8x512xf32> to vector<1x512xf32>
    %71 = vector.broadcast %70 : vector<1x512xf32> to vector<8x512xf32>
    %72 = arith.mulf %69, %71 : vector<8x512xf32>
    %73 = vector.extract_strided_slice %9 {offsets = [8, 0, 0], sizes = [1, 32, 8], strides = [1, 1, 1]} : vector<9x32x8xf32> to vector<1x32x8xf32>
    %74 = vector.shape_cast %73 : vector<1x32x8xf32> to vector<32x8xf32>
    %cst_16 = arith.constant dense<0.000000e+00> : vector<32x512xf32>
    %75 = tpu.matmul %74, %72, %cst_16 {dimension_numbers = #tpu.dot_dimension_numbers<[1], [0], [0], [1], [0, 0, 1, 1], [], []>} : vector<32x8xf32>, vector<8x512xf32>, vector<32x512xf32> -> vector<32x512xf32>
    %76 = arith.addf %68, %75 : vector<32x512xf32>
    %77 = vector.broadcast %4 : vector<32x1xf32> to vector<32x512xf32>
    %78 = arith.addf %76, %77 : vector<32x512xf32>
    %cst_17 = arith.constant 0.00999999977 : f32
    %79 = vector.broadcast %cst_17 : f32 to vector<32x512xf32>
    %80 = arith.mulf %79, %78 : vector<32x512xf32>
    %81 = arith.maximumf %78, %80 : vector<32x512xf32>
    %82 = vector.broadcast %5 : vector<32x1xf32> to vector<32x512xf32>
    %83 = arith.addf %81, %82 : vector<32x512xf32>
    %c0_18 = arith.constant 0 : index
    %c0_19 = arith.constant 0 : index
    %c0_20 = arith.constant 0 : index
    %84 = vector.load %arg4[%c0_18, %c0_19, %c0_20] : memref<9x32x32xf32, #tpu.memory_space<vmem>>, vector<9x32x32xf32>
    %c17_i32_21 = arith.constant 17 : i32
    %85 = tpu.dynamic_rotate %83 by %c17_i32_21 dim 1 : vector<32x512xf32>, i32 -> vector<32x512xf32>
    %86 = vector.extract_strided_slice %2 {offsets = [0, 0], sizes = [1, 512], strides = [1, 1]} : vector<8x512xf32> to vector<1x512xf32>
    %87 = vector.broadcast %86 : vector<1x512xf32> to vector<32x512xf32>
    %88 = arith.mulf %85, %87 : vector<32x512xf32>
    %89 = vector.extract_strided_slice %84 {offsets = [0, 0, 0], sizes = [1, 32, 32], strides = [1, 1, 1]} : vector<9x32x32xf32> to vector<1x32x32xf32>
    %90 = vector.shape_cast %89 : vector<1x32x32xf32> to vector<32x32xf32>
    %cst_22 = arith.constant dense<0.000000e+00> : vector<32x512xf32>
    %91 = tpu.matmul %90, %88, %cst_22 {dimension_numbers = #tpu.dot_dimension_numbers<[1], [0], [0], [1], [0, 0, 1, 1], [], []>} : vector<32x32xf32>, vector<32x512xf32>, vector<32x512xf32> -> vector<32x512xf32>
    %c16_i32_23 = arith.constant 16 : i32
    %92 = tpu.dynamic_rotate %83 by %c16_i32_23 dim 1 : vector<32x512xf32>, i32 -> vector<32x512xf32>
    %93 = vector.extract_strided_slice %2 {offsets = [1, 0], sizes = [1, 512], strides = [1, 1]} : vector<8x512xf32> to vector<1x512xf32>
    %94 = vector.broadcast %93 : vector<1x512xf32> to vector<32x512xf32>
    %95 = arith.mulf %92, %94 : vector<32x512xf32>
    %96 = vector.extract_strided_slice %84 {offsets = [1, 0, 0], sizes = [1, 32, 32], strides = [1, 1, 1]} : vector<9x32x32xf32> to vector<1x32x32xf32>
    %97 = vector.shape_cast %96 : vector<1x32x32xf32> to vector<32x32xf32>
    %cst_24 = arith.constant dense<0.000000e+00> : vector<32x512xf32>
    %98 = tpu.matmul %97, %95, %cst_24 {dimension_numbers = #tpu.dot_dimension_numbers<[1], [0], [0], [1], [0, 0, 1, 1], [], []>} : vector<32x32xf32>, vector<32x512xf32>, vector<32x512xf32> -> vector<32x512xf32>
    %99 = arith.addf %91, %98 : vector<32x512xf32>
    %c15_i32_25 = arith.constant 15 : i32
    %100 = tpu.dynamic_rotate %83 by %c15_i32_25 dim 1 : vector<32x512xf32>, i32 -> vector<32x512xf32>
    %101 = vector.extract_strided_slice %2 {offsets = [2, 0], sizes = [1, 512], strides = [1, 1]} : vector<8x512xf32> to vector<1x512xf32>
    %102 = vector.broadcast %101 : vector<1x512xf32> to vector<32x512xf32>
    %103 = arith.mulf %100, %102 : vector<32x512xf32>
    %104 = vector.extract_strided_slice %84 {offsets = [2, 0, 0], sizes = [1, 32, 32], strides = [1, 1, 1]} : vector<9x32x32xf32> to vector<1x32x32xf32>
    %105 = vector.shape_cast %104 : vector<1x32x32xf32> to vector<32x32xf32>
    %cst_26 = arith.constant dense<0.000000e+00> : vector<32x512xf32>
    %106 = tpu.matmul %105, %103, %cst_26 {dimension_numbers = #tpu.dot_dimension_numbers<[1], [0], [0], [1], [0, 0, 1, 1], [], []>} : vector<32x32xf32>, vector<32x512xf32>, vector<32x512xf32> -> vector<32x512xf32>
    %107 = arith.addf %99, %106 : vector<32x512xf32>
    %c1_i32_27 = arith.constant 1 : i32
    %108 = tpu.dynamic_rotate %83 by %c1_i32_27 dim 1 : vector<32x512xf32>, i32 -> vector<32x512xf32>
    %109 = vector.extract_strided_slice %2 {offsets = [3, 0], sizes = [1, 512], strides = [1, 1]} : vector<8x512xf32> to vector<1x512xf32>
    %110 = vector.broadcast %109 : vector<1x512xf32> to vector<32x512xf32>
    %111 = arith.mulf %108, %110 : vector<32x512xf32>
    %112 = vector.extract_strided_slice %84 {offsets = [3, 0, 0], sizes = [1, 32, 32], strides = [1, 1, 1]} : vector<9x32x32xf32> to vector<1x32x32xf32>
    %113 = vector.shape_cast %112 : vector<1x32x32xf32> to vector<32x32xf32>
    %cst_28 = arith.constant dense<0.000000e+00> : vector<32x512xf32>
    %114 = tpu.matmul %113, %111, %cst_28 {dimension_numbers = #tpu.dot_dimension_numbers<[1], [0], [0], [1], [0, 0, 1, 1], [], []>} : vector<32x32xf32>, vector<32x512xf32>, vector<32x512xf32> -> vector<32x512xf32>
    %115 = arith.addf %107, %114 : vector<32x512xf32>
    %116 = vector.extract_strided_slice %84 {offsets = [4, 0, 0], sizes = [1, 32, 32], strides = [1, 1, 1]} : vector<9x32x32xf32> to vector<1x32x32xf32>
    %117 = vector.shape_cast %116 : vector<1x32x32xf32> to vector<32x32xf32>
    %cst_29 = arith.constant dense<0.000000e+00> : vector<32x512xf32>
    %118 = tpu.matmul %117, %83, %cst_29 {dimension_numbers = #tpu.dot_dimension_numbers<[1], [0], [0], [1], [0, 0, 1, 1], [], []>} : vector<32x32xf32>, vector<32x512xf32>, vector<32x512xf32> -> vector<32x512xf32>
    %119 = arith.addf %115, %118 : vector<32x512xf32>
    %c511_i32_30 = arith.constant 511 : i32
    %120 = tpu.dynamic_rotate %83 by %c511_i32_30 dim 1 : vector<32x512xf32>, i32 -> vector<32x512xf32>
    %121 = vector.extract_strided_slice %2 {offsets = [4, 0], sizes = [1, 512], strides = [1, 1]} : vector<8x512xf32> to vector<1x512xf32>
    %122 = vector.broadcast %121 : vector<1x512xf32> to vector<32x512xf32>
    %123 = arith.mulf %120, %122 : vector<32x512xf32>
    %124 = vector.extract_strided_slice %84 {offsets = [5, 0, 0], sizes = [1, 32, 32], strides = [1, 1, 1]} : vector<9x32x32xf32> to vector<1x32x32xf32>
    %125 = vector.shape_cast %124 : vector<1x32x32xf32> to vector<32x32xf32>
    %cst_31 = arith.constant dense<0.000000e+00> : vector<32x512xf32>
    %126 = tpu.matmul %125, %123, %cst_31 {dimension_numbers = #tpu.dot_dimension_numbers<[1], [0], [0], [1], [0, 0, 1, 1], [], []>} : vector<32x32xf32>, vector<32x512xf32>, vector<32x512xf32> -> vector<32x512xf32>
    %127 = arith.addf %119, %126 : vector<32x512xf32>
    %c497_i32_32 = arith.constant 497 : i32
    %128 = tpu.dynamic_rotate %83 by %c497_i32_32 dim 1 : vector<32x512xf32>, i32 -> vector<32x512xf32>
    %129 = vector.extract_strided_slice %2 {offsets = [5, 0], sizes = [1, 512], strides = [1, 1]} : vector<8x512xf32> to vector<1x512xf32>
    %130 = vector.broadcast %129 : vector<1x512xf32> to vector<32x512xf32>
    %131 = arith.mulf %128, %130 : vector<32x512xf32>
    %132 = vector.extract_strided_slice %84 {offsets = [6, 0, 0], sizes = [1, 32, 32], strides = [1, 1, 1]} : vector<9x32x32xf32> to vector<1x32x32xf32>
    %133 = vector.shape_cast %132 : vector<1x32x32xf32> to vector<32x32xf32>
    %cst_33 = arith.constant dense<0.000000e+00> : vector<32x512xf32>
    %134 = tpu.matmul %133, %131, %cst_33 {dimension_numbers = #tpu.dot_dimension_numbers<[1], [0], [0], [1], [0, 0, 1, 1], [], []>} : vector<32x32xf32>, vector<32x512xf32>, vector<32x512xf32> -> vector<32x512xf32>
    %135 = arith.addf %127, %134 : vector<32x512xf32>
    %c496_i32_34 = arith.constant 496 : i32
    %136 = tpu.dynamic_rotate %83 by %c496_i32_34 dim 1 : vector<32x512xf32>, i32 -> vector<32x512xf32>
    %137 = vector.extract_strided_slice %2 {offsets = [6, 0], sizes = [1, 512], strides = [1, 1]} : vector<8x512xf32> to vector<1x512xf32>
    %138 = vector.broadcast %137 : vector<1x512xf32> to vector<32x512xf32>
    %139 = arith.mulf %136, %138 : vector<32x512xf32>
    %140 = vector.extract_strided_slice %84 {offsets = [7, 0, 0], sizes = [1, 32, 32], strides = [1, 1, 1]} : vector<9x32x32xf32> to vector<1x32x32xf32>
    %141 = vector.shape_cast %140 : vector<1x32x32xf32> to vector<32x32xf32>
    %cst_35 = arith.constant dense<0.000000e+00> : vector<32x512xf32>
    %142 = tpu.matmul %141, %139, %cst_35 {dimension_numbers = #tpu.dot_dimension_numbers<[1], [0], [0], [1], [0, 0, 1, 1], [], []>} : vector<32x32xf32>, vector<32x512xf32>, vector<32x512xf32> -> vector<32x512xf32>
    %143 = arith.addf %135, %142 : vector<32x512xf32>
    %c495_i32_36 = arith.constant 495 : i32
    %144 = tpu.dynamic_rotate %83 by %c495_i32_36 dim 1 : vector<32x512xf32>, i32 -> vector<32x512xf32>
    %145 = vector.extract_strided_slice %2 {offsets = [7, 0], sizes = [1, 512], strides = [1, 1]} : vector<8x512xf32> to vector<1x512xf32>
    %146 = vector.broadcast %145 : vector<1x512xf32> to vector<32x512xf32>
    %147 = arith.mulf %144, %146 : vector<32x512xf32>
    %148 = vector.extract_strided_slice %84 {offsets = [8, 0, 0], sizes = [1, 32, 32], strides = [1, 1, 1]} : vector<9x32x32xf32> to vector<1x32x32xf32>
    %149 = vector.shape_cast %148 : vector<1x32x32xf32> to vector<32x32xf32>
    %cst_37 = arith.constant dense<0.000000e+00> : vector<32x512xf32>
    %150 = tpu.matmul %149, %147, %cst_37 {dimension_numbers = #tpu.dot_dimension_numbers<[1], [0], [0], [1], [0, 0, 1, 1], [], []>} : vector<32x32xf32>, vector<32x512xf32>, vector<32x512xf32> -> vector<32x512xf32>
    %151 = arith.addf %143, %150 : vector<32x512xf32>
    %152 = vector.broadcast %6 : vector<32x1xf32> to vector<32x512xf32>
    %153 = arith.addf %151, %152 : vector<32x512xf32>
    %cst_38 = arith.constant 0.00999999977 : f32
    %154 = vector.broadcast %cst_38 : f32 to vector<32x512xf32>
    %155 = arith.mulf %154, %153 : vector<32x512xf32>
    %156 = arith.maximumf %153, %155 : vector<32x512xf32>
    %157 = vector.broadcast %7 : vector<32x1xf32> to vector<32x512xf32>
    %158 = arith.addf %156, %157 : vector<32x512xf32>
    %c0_39 = arith.constant 0 : index
    %c0_40 = arith.constant 0 : index
    %c0_41 = arith.constant 0 : index
    %159 = vector.load %arg5[%c0_39, %c0_40, %c0_41] : memref<9x1x32xf32, #tpu.memory_space<vmem>>, vector<9x1x32xf32>
    %c17_i32_42 = arith.constant 17 : i32
    %160 = tpu.dynamic_rotate %158 by %c17_i32_42 dim 1 : vector<32x512xf32>, i32 -> vector<32x512xf32>
    %161 = vector.extract_strided_slice %2 {offsets = [0, 0], sizes = [1, 512], strides = [1, 1]} : vector<8x512xf32> to vector<1x512xf32>
    %162 = vector.broadcast %161 : vector<1x512xf32> to vector<32x512xf32>
    %163 = arith.mulf %160, %162 : vector<32x512xf32>
    %164 = vector.extract_strided_slice %159 {offsets = [0, 0, 0], sizes = [1, 1, 32], strides = [1, 1, 1]} : vector<9x1x32xf32> to vector<1x1x32xf32>
    %165 = vector.shape_cast %164 : vector<1x1x32xf32> to vector<1x32xf32>
    %cst_43 = arith.constant dense<0.000000e+00> : vector<1x512xf32>
    %166 = tpu.matmul %165, %163, %cst_43 {dimension_numbers = #tpu.dot_dimension_numbers<[1], [0], [0], [1], [0, 0, 1, 1], [], []>} : vector<1x32xf32>, vector<32x512xf32>, vector<1x512xf32> -> vector<1x512xf32>
    %c16_i32_44 = arith.constant 16 : i32
    %167 = tpu.dynamic_rotate %158 by %c16_i32_44 dim 1 : vector<32x512xf32>, i32 -> vector<32x512xf32>
    %168 = vector.extract_strided_slice %2 {offsets = [1, 0], sizes = [1, 512], strides = [1, 1]} : vector<8x512xf32> to vector<1x512xf32>
    %169 = vector.broadcast %168 : vector<1x512xf32> to vector<32x512xf32>
    %170 = arith.mulf %167, %169 : vector<32x512xf32>
    %171 = vector.extract_strided_slice %159 {offsets = [1, 0, 0], sizes = [1, 1, 32], strides = [1, 1, 1]} : vector<9x1x32xf32> to vector<1x1x32xf32>
    %172 = vector.shape_cast %171 : vector<1x1x32xf32> to vector<1x32xf32>
    %cst_45 = arith.constant dense<0.000000e+00> : vector<1x512xf32>
    %173 = tpu.matmul %172, %170, %cst_45 {dimension_numbers = #tpu.dot_dimension_numbers<[1], [0], [0], [1], [0, 0, 1, 1], [], []>} : vector<1x32xf32>, vector<32x512xf32>, vector<1x512xf32> -> vector<1x512xf32>
    %174 = arith.addf %166, %173 : vector<1x512xf32>
    %c15_i32_46 = arith.constant 15 : i32
    %175 = tpu.dynamic_rotate %158 by %c15_i32_46 dim 1 : vector<32x512xf32>, i32 -> vector<32x512xf32>
    %176 = vector.extract_strided_slice %2 {offsets = [2, 0], sizes = [1, 512], strides = [1, 1]} : vector<8x512xf32> to vector<1x512xf32>
    %177 = vector.broadcast %176 : vector<1x512xf32> to vector<32x512xf32>
    %178 = arith.mulf %175, %177 : vector<32x512xf32>
    %179 = vector.extract_strided_slice %159 {offsets = [2, 0, 0], sizes = [1, 1, 32], strides = [1, 1, 1]} : vector<9x1x32xf32> to vector<1x1x32xf32>
    %180 = vector.shape_cast %179 : vector<1x1x32xf32> to vector<1x32xf32>
    %cst_47 = arith.constant dense<0.000000e+00> : vector<1x512xf32>
    %181 = tpu.matmul %180, %178, %cst_47 {dimension_numbers = #tpu.dot_dimension_numbers<[1], [0], [0], [1], [0, 0, 1, 1], [], []>} : vector<1x32xf32>, vector<32x512xf32>, vector<1x512xf32> -> vector<1x512xf32>
    %182 = arith.addf %174, %181 : vector<1x512xf32>
    %c1_i32_48 = arith.constant 1 : i32
    %183 = tpu.dynamic_rotate %158 by %c1_i32_48 dim 1 : vector<32x512xf32>, i32 -> vector<32x512xf32>
    %184 = vector.extract_strided_slice %2 {offsets = [3, 0], sizes = [1, 512], strides = [1, 1]} : vector<8x512xf32> to vector<1x512xf32>
    %185 = vector.broadcast %184 : vector<1x512xf32> to vector<32x512xf32>
    %186 = arith.mulf %183, %185 : vector<32x512xf32>
    %187 = vector.extract_strided_slice %159 {offsets = [3, 0, 0], sizes = [1, 1, 32], strides = [1, 1, 1]} : vector<9x1x32xf32> to vector<1x1x32xf32>
    %188 = vector.shape_cast %187 : vector<1x1x32xf32> to vector<1x32xf32>
    %cst_49 = arith.constant dense<0.000000e+00> : vector<1x512xf32>
    %189 = tpu.matmul %188, %186, %cst_49 {dimension_numbers = #tpu.dot_dimension_numbers<[1], [0], [0], [1], [0, 0, 1, 1], [], []>} : vector<1x32xf32>, vector<32x512xf32>, vector<1x512xf32> -> vector<1x512xf32>
    %190 = arith.addf %182, %189 : vector<1x512xf32>
    %191 = vector.extract_strided_slice %159 {offsets = [4, 0, 0], sizes = [1, 1, 32], strides = [1, 1, 1]} : vector<9x1x32xf32> to vector<1x1x32xf32>
    %192 = vector.shape_cast %191 : vector<1x1x32xf32> to vector<1x32xf32>
    %cst_50 = arith.constant dense<0.000000e+00> : vector<1x512xf32>
    %193 = tpu.matmul %192, %158, %cst_50 {dimension_numbers = #tpu.dot_dimension_numbers<[1], [0], [0], [1], [0, 0, 1, 1], [], []>} : vector<1x32xf32>, vector<32x512xf32>, vector<1x512xf32> -> vector<1x512xf32>
    %194 = arith.addf %190, %193 : vector<1x512xf32>
    %c511_i32_51 = arith.constant 511 : i32
    %195 = tpu.dynamic_rotate %158 by %c511_i32_51 dim 1 : vector<32x512xf32>, i32 -> vector<32x512xf32>
    %196 = vector.extract_strided_slice %2 {offsets = [4, 0], sizes = [1, 512], strides = [1, 1]} : vector<8x512xf32> to vector<1x512xf32>
    %197 = vector.broadcast %196 : vector<1x512xf32> to vector<32x512xf32>
    %198 = arith.mulf %195, %197 : vector<32x512xf32>
    %199 = vector.extract_strided_slice %159 {offsets = [5, 0, 0], sizes = [1, 1, 32], strides = [1, 1, 1]} : vector<9x1x32xf32> to vector<1x1x32xf32>
    %200 = vector.shape_cast %199 : vector<1x1x32xf32> to vector<1x32xf32>
    %cst_52 = arith.constant dense<0.000000e+00> : vector<1x512xf32>
    %201 = tpu.matmul %200, %198, %cst_52 {dimension_numbers = #tpu.dot_dimension_numbers<[1], [0], [0], [1], [0, 0, 1, 1], [], []>} : vector<1x32xf32>, vector<32x512xf32>, vector<1x512xf32> -> vector<1x512xf32>
    %202 = arith.addf %194, %201 : vector<1x512xf32>
    %c497_i32_53 = arith.constant 497 : i32
    %203 = tpu.dynamic_rotate %158 by %c497_i32_53 dim 1 : vector<32x512xf32>, i32 -> vector<32x512xf32>
    %204 = vector.extract_strided_slice %2 {offsets = [5, 0], sizes = [1, 512], strides = [1, 1]} : vector<8x512xf32> to vector<1x512xf32>
    %205 = vector.broadcast %204 : vector<1x512xf32> to vector<32x512xf32>
    %206 = arith.mulf %203, %205 : vector<32x512xf32>
    %207 = vector.extract_strided_slice %159 {offsets = [6, 0, 0], sizes = [1, 1, 32], strides = [1, 1, 1]} : vector<9x1x32xf32> to vector<1x1x32xf32>
    %208 = vector.shape_cast %207 : vector<1x1x32xf32> to vector<1x32xf32>
    %cst_54 = arith.constant dense<0.000000e+00> : vector<1x512xf32>
    %209 = tpu.matmul %208, %206, %cst_54 {dimension_numbers = #tpu.dot_dimension_numbers<[1], [0], [0], [1], [0, 0, 1, 1], [], []>} : vector<1x32xf32>, vector<32x512xf32>, vector<1x512xf32> -> vector<1x512xf32>
    %210 = arith.addf %202, %209 : vector<1x512xf32>
    %c496_i32_55 = arith.constant 496 : i32
    %211 = tpu.dynamic_rotate %158 by %c496_i32_55 dim 1 : vector<32x512xf32>, i32 -> vector<32x512xf32>
    %212 = vector.extract_strided_slice %2 {offsets = [6, 0], sizes = [1, 512], strides = [1, 1]} : vector<8x512xf32> to vector<1x512xf32>
    %213 = vector.broadcast %212 : vector<1x512xf32> to vector<32x512xf32>
    %214 = arith.mulf %211, %213 : vector<32x512xf32>
    %215 = vector.extract_strided_slice %159 {offsets = [7, 0, 0], sizes = [1, 1, 32], strides = [1, 1, 1]} : vector<9x1x32xf32> to vector<1x1x32xf32>
    %216 = vector.shape_cast %215 : vector<1x1x32xf32> to vector<1x32xf32>
    %cst_56 = arith.constant dense<0.000000e+00> : vector<1x512xf32>
    %217 = tpu.matmul %216, %214, %cst_56 {dimension_numbers = #tpu.dot_dimension_numbers<[1], [0], [0], [1], [0, 0, 1, 1], [], []>} : vector<1x32xf32>, vector<32x512xf32>, vector<1x512xf32> -> vector<1x512xf32>
    %218 = arith.addf %210, %217 : vector<1x512xf32>
    %c495_i32_57 = arith.constant 495 : i32
    %219 = tpu.dynamic_rotate %158 by %c495_i32_57 dim 1 : vector<32x512xf32>, i32 -> vector<32x512xf32>
    %220 = vector.extract_strided_slice %2 {offsets = [7, 0], sizes = [1, 512], strides = [1, 1]} : vector<8x512xf32> to vector<1x512xf32>
    %221 = vector.broadcast %220 : vector<1x512xf32> to vector<32x512xf32>
    %222 = arith.mulf %219, %221 : vector<32x512xf32>
    %223 = vector.extract_strided_slice %159 {offsets = [8, 0, 0], sizes = [1, 1, 32], strides = [1, 1, 1]} : vector<9x1x32xf32> to vector<1x1x32xf32>
    %224 = vector.shape_cast %223 : vector<1x1x32xf32> to vector<1x32xf32>
    %cst_58 = arith.constant dense<0.000000e+00> : vector<1x512xf32>
    %225 = tpu.matmul %224, %222, %cst_58 {dimension_numbers = #tpu.dot_dimension_numbers<[1], [0], [0], [1], [0, 0, 1, 1], [], []>} : vector<1x32xf32>, vector<32x512xf32>, vector<1x512xf32> -> vector<1x512xf32>
    %226 = arith.addf %218, %225 : vector<1x512xf32>
    %227 = vector.broadcast %8 : vector<1x1xf32> to vector<1x512xf32>
    %228 = arith.addf %226, %227 : vector<1x512xf32>
    %c0_59 = arith.constant 0 : index
    %c0_60 = arith.constant 0 : index
    %c0_61 = arith.constant 0 : index
    %229 = vector.load %arg7[%c0_59, %c0_60, %c0_61] : memref<1x1x512xf32, #tpu.memory_space<vmem>>, vector<1x1x512xf32>
    %230 = vector.shape_cast %229 : vector<1x1x512xf32> to vector<1x512xf32>
    %231 = vector.shape_cast %228 : vector<1x512xf32> to vector<1x1x512xf32>
    tpu.vector_store %arg7[%c0_59, %c0_60, %c0_61], %231 {strides = array<i32>} : memref<1x1x512xf32, #tpu.memory_space<vmem>>, vector<1x1x512xf32>,
    return
  }
  func.func @transform_0(%arg0: i32) -> (i32, i32, i32) {
    %c0_i32 = arith.constant 0 : i32
    %c0_i32_0 = arith.constant 0 : i32
    %c0_i32_1 = arith.constant 0 : i32
    return %arg0, %c0_i32, %c0_i32_0 : i32, i32, i32
  }
  func.func @transform_1(%arg0: i32) -> (i32, i32) {
    %c0_i32 = arith.constant 0 : i32
    %c0_i32_0 = arith.constant 0 : i32
    %c0_i32_1 = arith.constant 0 : i32
    return %c0_i32, %c0_i32_0 : i32, i32
  }
  func.func @transform_2(%arg0: i32) -> (i32, i32, i32) {
    %c0_i32 = arith.constant 0 : i32
    %c0_i32_0 = arith.constant 0 : i32
    %c0_i32_1 = arith.constant 0 : i32
    %c0_i32_2 = arith.constant 0 : i32
    return %c0_i32, %c0_i32_0, %c0_i32_1 : i32, i32, i32
  }
  func.func @transform_3(%arg0: i32) -> (i32, i32, i32) {
    %c0_i32 = arith.constant 0 : i32
    %c0_i32_0 = arith.constant 0 : i32
    %c0_i32_1 = arith.constant 0 : i32
    %c0_i32_2 = arith.constant 0 : i32
    return %c0_i32, %c0_i32_0, %c0_i32_1 : i32, i32, i32
  }
  func.func @transform_4(%arg0: i32) -> (i32, i32, i32) {
    %c0_i32 = arith.constant 0 : i32
    %c0_i32_0 = arith.constant 0 : i32
    %c0_i32_1 = arith.constant 0 : i32
    %c0_i32_2 = arith.constant 0 : i32
    return %c0_i32, %c0_i32_0, %c0_i32_1 : i32, i32, i32
  }
  func.func @transform_5(%arg0: i32) -> (i32, i32) {
    %c0_i32 = arith.constant 0 : i32
    %c0_i32_0 = arith.constant 0 : i32
    %c0_i32_1 = arith.constant 0 : i32
    return %c0_i32, %c0_i32_0 : i32, i32
  }
  func.func @transform_6(%arg0: i32) -> (i32, i32, i32) {
    %c0_i32 = arith.constant 0 : i32
    %c0_i32_0 = arith.constant 0 : i32
    %c0_i32_1 = arith.constant 0 : i32
    return %arg0, %c0_i32, %c0_i32_0 : i32, i32, i32
  }
}

</mosaic_0001>

<bundles_post_ra>
// kernel: decoder_forward.1
= control target key start
LH: loop header
LB: loop body
LE: loop exit
PB: predicated region body
PF: predicated region fallthrough
CT: control target
= control target key end

     0   :  { %v10331_v2 = vmov 0.0   ;;  %s6819_s25 = smov 16   ;;  %s6820_s30 = smov 17   ;;  %v10330_v5 = vlaneseq  ;;  %vm139_vm2 = vcmask 64512   ;;  %vm2424_vm9 = vcmask 261120   ;;  %s10323_s0 = inlined_call_operand.vmem [shape: f32[1,8,512], index: 0, kind: input, shape index: {}]   ;;  %s10324_s1 = inlined_call_operand.vmem [shape: f32[8,512], index: 1, kind: input, shape index: {}]   ;;  %s10325_s2 = inlined_call_operand.vmem [shape: f32[9,32,8], index: 2, kind: input, shape index: {}]   ;;  %s10326_s5 = inlined_call_operand.vmem [shape: f32[32,8], index: 5, kind: input, shape index: {}]   ;;  %s10327_s3 = inlined_call_operand.vmem [shape: f32[9,32,32], index: 3, kind: input, shape index: {}]   ;;  %s10328_s4 = inlined_call_operand.vmem [shape: f32[9,1,32], index: 4, kind: input, shape index: {}]   ;;  %s10329_s6 = inlined_call_operand.vmem [shape: f32[1,1,512], index: 6, kind: output, shape index: {}]  }
   0x1   :  { %v6871_v0 = vld [vmem:[%s10323_s0 + $0x10] sm:$0xff]  ;;  %v6876_v1 = vld [vmem:[%s10323_s0] sm:$0xff]  ;;  %216 = vmatprep.mubr.f32.mxu0 %v10331_v2  ;;  %305 = vmatprep.mubr.f32.mxu1 %v10331_v2  ;;  %v6887_v3 = vld [vmem:[%s10323_s0 + $0x18] sm:$0xff]  ;;  %s6822_s7 = smov 1   ;;  %s6823_s8 = smov 127  }
   0x2   :  { %110 = vrot.lane.b32.xlu1 %v6871_v0, %s6819_s25  ;;  %106 = vrot.lane.b32.xlu0 %v6876_v1, %s6819_s25  ;;  %v6892_v4 = vld [vmem:[%s10323_s0 + $0x8] sm:$0xff]  ;;  %s6821_s0 = smov 15   ;;  %s6824_s9 = smov 113   ;;  %v6955_v6 = vshrl.u32 %v10330_v5, 7  ;;  %v6958_v7 = vand.u32 127, %v10330_v5  ;;  %v6963_v8 = vld [vmem:[%s10324_s1 + $0x18] sm:$0xff] }
   0x3   :  { %s6825_s10 = smov 112   ;;  %s6826_s11 = smov 111   ;;  %v6969_v10 = vld [vmem:[%s10324_s1 + $0x8] sm:$0xff]  ;;  %v6974_v11 = vld [vmem:[%s10324_s1] sm:$0xff]  ;;  %v6979_v12 = vld [vmem:[%s10324_s1 + $0x10] sm:$0xff] }
   0x4   :  { %10477 = vst [vmem:[#allocation2_spill] sm:$0xff] %v6955_v6  ;;  %10478 = vst [vmem:[#allocation3_spill] sm:$0xff] %v6958_v7  ;;  %v121_v9 = vsub.s32 1, %v6955_v6  ;;  %v88_v15 = vsub.s32 0, %v6955_v6  ;;  %vm114_vm0 = vcmp.lt.s32.totalorder %v6958_v7, 16  ;;  %vm81_vm1 = vcmp.lt.s32.totalorder %v6958_v7, 17 }
   0x5   :  { %v39_v31 = vld [vmem:[%s10325_s2 + $0x20] sm:$0xff]  ;;  %v535_v36 = vsub.s32 2, %v6955_v6  ;;  %v40_v40 = vld [vmem:[%s10325_s2 + $0x28] sm:$0xff]  ;;  %vm528_vm3 = vcmp.lt.s32.totalorder %v6958_v7, 15  ;;  %v41_v50 = vld [vmem:[%s10325_s2 + $0x30] sm:$0xff]  ;;  %v7063_v56 = vsub.s32 3, %v6955_v6 }
   0x6   :  { %112 = vrot.lane.b32.xlu1 %v6887_v3, %s6819_s25  ;;  %108 = vrot.lane.b32.xlu0 %v6892_v4, %s6819_s25  ;;  %v6984_v16 = vrot.slane %v6963_v8, %v121_v9  ;;  %v6987_v17 = vrot.slane %v6969_v10, %v121_v9  ;;  %v6990_v18 = vrot.slane %v6974_v11, %v121_v9  ;;  %v42_v57 = vld [vmem:[%s10325_s2 + $0x38] sm:$0xff]  ;;  %vm767_vm4 = vcmp.lt.s32.totalorder %v6958_v7, 1 }
   0x7   :  { %v6993_v19 = vrot.slane %v6979_v12, %v121_v9  ;;  %v6997_v22 = vrot.slane %v6969_v10, %v88_v15  ;;  %v7017_v35 = vrot.slane %v6974_v11, %v88_v15  ;;  %v7023_v37 = vrot.slane %v6979_v12, %v88_v15 }
   0x8   :  { %10479 = vst [vmem:[#allocation4_spill] sm:$0xff] %v6984_v16  ;;  %10480 = vst [vmem:[#allocation5_spill] sm:$0xff] %v6987_v17  ;;  %v7027_v39 = vrot.slane %v6963_v8, %v88_v15  ;;  %v7041_v46 = vrot.slane %v6969_v10, %v535_v36  ;;  %v7059_v54 = vrot.slane %v6963_v8, %v535_v36  ;;  %v35_v15 = vld [vmem:[%s10325_s2] sm:$0xff]  ;;  %vm1212_vm5 = vcmp.lt.s32.totalorder %v6958_v7, 127 }
   0x9   :  { %10481 = vst [vmem:[#allocation6_spill] sm:$0xff] %v6990_v18  ;;  %10482 = vst [vmem:[#allocation7_spill] sm:$0xff] %v6993_v19  ;;  %v7071_v58 = vrot.slane %v6974_v11, %v535_v36  ;;  %v7074_v60 = vrot.slane %v6979_v12, %v535_v36  ;;  %vm1451_vm6 = vcmp.lt.s32.totalorder %v6958_v7, 113  ;;  %vm1690_vm7 = vcmp.lt.s32.totalorder %v6958_v7, 112 }
   0xa   :  { %73 = vrot.lane.b32.xlu1 %v6892_v4, %s6820_s30  ;;  %71 = vrot.lane.b32.xlu0 %v6876_v1, %s6820_s30  ;;  %10483 = vst [vmem:[#allocation8_spill] sm:$0xff] %v6997_v22  ;;  %10484 = vst [vmem:[#allocation9_spill] sm:$0xff] %v7017_v35  ;;  %vm1929_vm8 = vcmp.lt.s32.totalorder %v6958_v7, 111 }
   0xb   :  { %10485 = vst [vmem:[#allocation10_spill] sm:$0xff] %v7023_v37  ;;  %10486 = vst [vmem:[#allocation11_spill] sm:$0xff] %v7027_v39 }
   0xc   :  { %10487 = vst [vmem:[#allocation12_spill] sm:$0xff] %v7041_v46  ;;  %10488 = vst [vmem:[#allocation13_spill] sm:$0xff] %v7059_v54 }
   0xd   :  { %10489 = vst [vmem:[#allocation14_spill] sm:$0xff] %v7071_v58  ;;  %10490 = vst [vmem:[#allocation15_spill] sm:$0xff] %v7074_v60 }
   0xe   :  { %77 = vrot.lane.b32.xlu1 %v6887_v3, %s6820_s30  ;;  %75 = vrot.lane.b32.xlu0 %v6871_v0, %s6820_s30 }
  0x12   :  { %522 = vrot.lane.b32.xlu1 %v6892_v4, %s6821_s0  ;;  %520 = vrot.lane.b32.xlu0 %v6876_v1, %s6821_s0 }
  0x16   :  { %526 = vrot.lane.b32.xlu1 %v6887_v3, %s6821_s0  ;;  %524 = vrot.lane.b32.xlu0 %v6871_v0, %s6821_s0 }
  0x1a   :  { %761 = vrot.lane.b32.xlu1 %v6892_v4, %s6822_s7  ;;  %759 = vrot.lane.b32.xlu0 %v6876_v1, %s6822_s7 }
  0x1e   :  { %765 = vrot.lane.b32.xlu1 %v6887_v3, %s6822_s7  ;;  %763 = vrot.lane.b32.xlu0 %v6871_v0, %s6822_s7 }
  0x22   :  { %1204 = vrot.lane.b32.xlu0 %v6876_v1, %s6823_s8  ;;  %1206 = vrot.lane.b32.xlu1 %v6892_v4, %s6823_s8 }
  0x26   :  { %1208 = vrot.lane.b32.xlu0 %v6871_v0, %s6823_s8  ;;  %1210 = vrot.lane.b32.xlu1 %v6887_v3, %s6823_s8 }
  0x2a   :  { %1443 = vrot.lane.b32.xlu0 %v6876_v1, %s6824_s9  ;;  %1445 = vrot.lane.b32.xlu1 %v6892_v4, %s6824_s9 }
  0x2e   :  { %1447 = vrot.lane.b32.xlu0 %v6871_v0, %s6824_s9  ;;  %1449 = vrot.lane.b32.xlu1 %v6887_v3, %s6824_s9 }
  0x32   :  { %1682 = vrot.lane.b32.xlu0 %v6876_v1, %s6825_s10  ;;  %1684 = vrot.lane.b32.xlu1 %v6892_v4, %s6825_s10 }
  0x36   :  { %1686 = vrot.lane.b32.xlu0 %v6871_v0, %s6825_s10  ;;  %1688 = vrot.lane.b32.xlu1 %v6887_v3, %s6825_s10 }
  0x3a   :  { %1921 = vrot.lane.b32.xlu0 %v6876_v1, %s6826_s11  ;;  %1923 = vrot.lane.b32.xlu1 %v6892_v4, %s6826_s11 }
  0x3e   :  { %1925 = vrot.lane.b32.xlu0 %v6871_v0, %s6826_s11  ;;  %1927 = vrot.lane.b32.xlu1 %v6887_v3, %s6826_s11 }
  0x74   :  { %v111_v13 = vpop.permute.xlu1 %110  ;;  %v107_v14 = vpop.permute.xlu0 %106 }
  0x78   :  { %v113_v20 = vpop.permute.xlu1 %112  ;;  %v109_v21 = vpop.permute.xlu0 %108 }
  0x79   :  { %v115_v23 = vsel %vm114_vm0, %v111_v13, %v113_v20  ;;  %v117_v24 = vsel %vm114_vm0, %v107_v14, %v109_v21  ;;  %v118_v25 = vsel %vm114_vm0, %v113_v20, %v107_v14  ;;  %v116_v26 = vsel %vm114_vm0, %v109_v21, %v111_v13  ;;  %v7098_v20 = vld [vmem:[%s10326_s5 + $0x10] sm:$0xff] }
  0x7a   :  { %v138_v27 = vmul.f32 %v6984_v16, %v115_v23  ;;  %v136_v28 = vmul.f32 %v6987_v17, %v117_v24  ;;  %v135_v29 = vmul.f32 %v6990_v18, %v118_v25  ;;  %v137_v30 = vmul.f32 %v6993_v19, %v116_v26 }
  0x7b   :  { %v7088_v14 = vrot.slane %v6969_v10, %v7063_v56  ;;  %v6827_v26 = vmov 0  }
  0x7c   :  { %271 = vmatprep.subr.mxu1 %v138_v27  ;;  %v74_v32 = vpop.permute.xlu1 %73  ;;  %182 = vmatprep.subr.mxu0 %v136_v28  ;;  %v72_v33 = vpop.permute.xlu0 %71  ;;  %v7109_v28 = vrot.slane %v6963_v8, %v7063_v56 }
  0x7d   :  { %v84_v34 = vsel %vm81_vm1, %v72_v33, %v74_v32  ;;  %183 = vmatpush1.msra.mxu0 %v135_v29  ;;  %272 = vmatpush1.msra.mxu1 %v137_v30  ;;  %10491 = vst [vmem:[#allocation16_spill] sm:$0xff] %v7088_v14  ;;  %v32_v30 = vld [vmem:[%s10326_s5 + $0x8] sm:$0xff] }
  0x7e   :  { %6627 = vmatmul.mubr.msk.f32.vlgmr.msra.gmra.mxu0 %vm139_vm2, %v39_v31  ;;  %6631 = vmatmul.mubr.msk.f32.vlgmr.msra.gmra.mxu1 %vm139_vm2, %v39_v31  ;;  %v103_v38 = vmul.f32 %v6997_v22, %v84_v34  ;;  %10492 = vst [vmem:[#allocation17_spill] sm:$0xff] %v7109_v28  ;;  %v36_v31 = vld [vmem:[%s10325_s2 + $0x8] sm:$0xff] }
  0x7f   :  { %222 = vmatprep.mubr.f32.mxu0 %v10331_v2  ;;  %311 = vmatprep.mubr.f32.mxu1 %v10331_v2 }
  0x80   :  { %v78_v41 = vpop.permute.xlu1 %77  ;;  %v76_v42 = vpop.permute.xlu0 %75  ;;  %372 = vmatprep.subr.mxu0 %v103_v38  ;;  %6805 = vset.pattern.permute.xlu1 %v6827_v26  ;;  %v37_v38 = vld [vmem:[%s10325_s2 + $0x10] sm:$0xff] }
  0x81   :  { %v85_v43 = vsel %vm81_vm1, %v78_v41, %v72_v33  ;;  %v82_v44 = vsel %vm81_vm1, %v76_v42, %v78_v41  ;;  %v83_v45 = vsel %vm81_vm1, %v74_v32, %v76_v42  ;;  %2172 = vperm.xlu1 %6805, %v7098_v20   ;;  %6804 = vset.pattern.permute.xlu0 %v6827_v26  ;;  %v6828_v41 = vmov 1   ;;  %v38_v42 = vld [vmem:[%s10325_s2 + $0x18] sm:$0xff] }
  0x82   :  { %v102_v47 = vmul.f32 %v7017_v35, %v85_v43  ;;  %v104_v48 = vmul.f32 %v7023_v37, %v83_v45  ;;  %6628 = vmatmul.mubr.msk.f32.gmra.mxu0 %vm139_vm2, %v40_v40  ;;  %6632 = vmatmul.mubr.msk.f32.gmra.mxu1 %vm139_vm2, %v40_v40  ;;  %v105_v49 = vmul.f32 %v7027_v39, %v82_v44  ;;  %v34_v40 = vld [vmem:[%s10326_s5 + $0x18] sm:$0xff] }
  0x83   :  { %228 = vmatprep.mubr.f32.mxu0 %v10331_v2  ;;  %317 = vmatprep.mubr.f32.mxu1 %v10331_v2  ;;  %v7143_v43 = vrot.slane %v6974_v11, %v7063_v56  ;;  %v7147_v44 = vrot.slane %v6979_v12, %v7063_v56  ;;  %v1219_v56 = vsub.s32 4, %v6955_v6 }
  0x84   :  { %461 = vmatprep.subr.mxu1 %v105_v49  ;;  %373 = vmatpush1.msra.mxu0 %v102_v47  ;;  %v523_v51 = vpop.permute.xlu1 %522  ;;  %v521_v52 = vpop.permute.xlu0 %520 }
  0x85   :  { %462 = vmatpush1.msra.mxu1 %v104_v48  ;;  %v531_v53 = vsel %vm528_vm3, %v521_v52, %v523_v51  ;;  %2167 = vperm.xlu1 %6805, %v32_v30   ;;  %10493 = vst [vmem:[#allocation18_spill] sm:$0xff] %v7143_v43  ;;  %10494 = vst [vmem:[#allocation19_spill] sm:$0xff] %v7147_v44  ;;  %v43_v48 = vld [vmem:[%s10325_s2 + $0x40] sm:$0xff] }
  0x86   :  { %6629 = vmatmul.mubr.msk.f32.gmra.mxu0 %vm139_vm2, %v41_v50  ;;  %6633 = vmatmul.mubr.msk.f32.gmra.mxu1 %vm139_vm2, %v41_v50  ;;  %v550_v55 = vmul.f32 %v7041_v46, %v531_v53 }
  0x87   :  { %234 = vmatprep.mubr.f32.mxu0 %v10331_v2  ;;  %323 = vmatprep.mubr.f32.mxu1 %v10331_v2 }
  0x88   :  { %v527_v59 = vpop.permute.xlu1 %526  ;;  %v525_v61 = vpop.permute.xlu0 %524  ;;  %595 = vmatprep.subr.mxu0 %v550_v55  ;;  %2177 = vperm.xlu0 %6804, %v34_v40   ;;  %v45_v55 = vld [vmem:[%s10325_s2 + $0x50] sm:$0xff] }
  0x89   :  { %v532_v62 = vsel %vm528_vm3, %v527_v59, %v521_v52  ;;  %v529_v63 = vsel %vm528_vm3, %v525_v61, %v527_v59  ;;  %v530_v9 = vsel %vm528_vm3, %v523_v51, %v525_v61  ;;  %6806 = vset.pattern.permute.xlu1 %v6828_v41  ;;  %v44_v51 = vld [vmem:[%s10325_s2 + $0x48] sm:$0xff]  ;;  %v7188_v59 = vrot.slane %v6969_v10, %v1219_v56 }
  0x8a   :  { %6630 = vmatmul.mubr.msk.f32.gmra.mxu0 %vm139_vm2, %v42_v57  ;;  %6634 = vmatmul.mubr.msk.f32.gmra.mxu1 %vm139_vm2, %v42_v57  ;;  %v552_v13 = vmul.f32 %v7059_v54, %v529_v63  ;;  %v549_v21 = vmul.f32 %v7071_v58, %v532_v62  ;;  %v551_v23 = vmul.f32 %v7074_v60, %v530_v9  ;;  %v47_v9 = vld [vmem:[%s10325_s2 + $0x60] sm:$0xff] }
  0x8b   :  { %406 = vmatprep.mubr.f32.mxu0 %v10331_v2  ;;  %495 = vmatprep.mubr.f32.mxu1 %v10331_v2  ;;  %10495 = vst [vmem:[#allocation20_spill] sm:$0xff] %v7188_v59  ;;  %v7191_v61 = vrot.slane %v6963_v8, %v1219_v56 }
  0x8c   :  { %684 = vmatprep.subr.mxu1 %v552_v13  ;;  %v762_v24 = vpop.permute.xlu1 %761  ;;  %v760_v25 = vpop.permute.xlu0 %759  ;;  %2241 = vperm.xlu1 %6806, %v34_v40   ;;  %v51_v40 = vld [vmem:[%s10325_s2 + $0x80] sm:$0xff] }
  0x8d   :  { %v770_v27 = vsel %vm767_vm4, %v760_v25, %v762_v24  ;;  %10496 = vst [vmem:[#allocation21_spill] sm:$0xff] %v7191_v61 }
  0x8e   :  { %6635 = vmatmul.mubr.msk.f32.vlgmr.msra.gmra.mxu0 %vm139_vm2, %v35_v15  ;;  %6639 = vmatmul.mubr.msk.f32.vlgmr.msra.gmra.mxu1 %vm139_vm2, %v35_v15  ;;  %v789_v29 = vmul.f32 %v7088_v14, %v770_v27 }
  0x8f   :  { %412 = vmatprep.mubr.f32.mxu0 %v10331_v2  ;;  %501 = vmatprep.mubr.f32.mxu1 %v10331_v2 }
  0x90   :  { %685 = vmatpush1.msra.mxu1 %v551_v23  ;;  %596 = vmatpush1.msra.mxu0 %v549_v21  ;;  %v766_v32 = vpop.permute.xlu1 %765  ;;  %v764_v33 = vpop.permute.xlu0 %763  ;;  %v48_v21 = vld [vmem:[%s10325_s2 + $0x68] sm:$0xff] }
  0x91   :  { %v768_v34 = vsel %vm767_vm4, %v764_v33, %v766_v32  ;;  %834 = vmatprep.subr.mxu0 %v789_v29  ;;  %v771_v45 = vsel %vm767_vm4, %v766_v32, %v760_v25  ;;  %v769_v47 = vsel %vm767_vm4, %v762_v24, %v764_v33  ;;  %2233 = vperm.xlu1 %6806, %v32_v30   ;;  %v50_v25 = vld [vmem:[%s10325_s2 + $0x78] sm:$0xff] }
  0x92   :  { %6636 = vmatmul.mubr.msk.f32.gmra.mxu0 %vm139_vm2, %v36_v31  ;;  %6640 = vmatmul.mubr.msk.f32.gmra.mxu1 %vm139_vm2, %v36_v31  ;;  %v791_v36 = vmul.f32 %v7109_v28, %v768_v34  ;;  %v788_v49 = vmul.f32 %v7143_v43, %v771_v45  ;;  %v790_v50 = vmul.f32 %v7147_v44, %v769_v47 }
  0x93   :  { %418 = vmatprep.mubr.f32.mxu0 %v10331_v2  ;;  %507 = vmatprep.mubr.f32.mxu1 %v10331_v2  ;;  %v7236_v29 = vrot.slane %v6974_v11, %v1219_v56  ;;  %v7239_v30 = vrot.slane %v6979_v12, %v1219_v56  ;;  %v54_v56 = vld [vmem:[%s10325_s2 + $0x98] sm:$0xff] }
  0x94   :  { %923 = vmatprep.subr.mxu1 %v791_v36  ;;  %v1205_v52 = vpop.permute.xlu0 %1204  ;;  %v1207_v53 = vpop.permute.xlu1 %1206 }
  0x95   :  { %10497 = vst [vmem:[#allocation22_spill] sm:$0xff] %v7236_v29  ;;  %10498 = vst [vmem:[#allocation23_spill] sm:$0xff] %v7239_v30  ;;  %v1215_v31 = vsel %vm1212_vm5, %v1205_v52, %v1207_v53 }
  0x96   :  { %6637 = vmatmul.mubr.msk.f32.gmra.mxu0 %vm139_vm2, %v37_v38  ;;  %6641 = vmatmul.mubr.msk.f32.gmra.mxu1 %vm139_vm2, %v37_v38 }
  0x97   :  { %424 = vmatprep.mubr.f32.mxu0 %v10331_v2  ;;  %513 = vmatprep.mubr.f32.mxu1 %v10331_v2 }
  0x98   :  { %v1211_v57 = vpop.permute.xlu1 %1210 }
  0x99   :  { %v1216_v63 = vsel %vm1212_vm5, %v1211_v57, %v1205_v52  ;;  %v31_v52 = vld [vmem:[%s10326_s5] sm:$0xff] }
  0x9a   :  { %6638 = vmatmul.mubr.msk.f32.gmra.mxu0 %vm139_vm2, %v38_v42  ;;  %6642 = vmatmul.mubr.msk.f32.gmra.mxu1 %vm139_vm2, %v38_v42  ;;  %v1236_v15 = vmul.f32 %v7191_v61, %v1216_v63  ;;  %v1233_v42 = vmul.f32 %v7236_v29, %v1215_v31  ;;  %v57_v31 = vld [vmem:[%s10325_s2 + $0xb0] sm:$0xff] }
  0x9b   :  { %629 = vmatprep.mubr.f32.mxu0 %v10331_v2  ;;  %718 = vmatprep.mubr.f32.mxu1 %v10331_v2 }
  0x9c   :  { %v7217_v24 = vpop.permute.xlu1 %1445  ;;  %2162 = vperm.xlu0 %6804, %v31_v52   ;;  %2229 = vperm.xlu1 %6806, %v31_v52  }
  0x9e   :  { %6643 = vmatmul.mubr.msk.f32.vlgmr.msra.gmra.mxu0 %vm139_vm2, %v43_v48  ;;  %6647 = vmatmul.mubr.msk.f32.vlgmr.msra.gmra.mxu1 %vm139_vm2, %v43_v48 }
  0x9f   :  { %635 = vmatprep.mubr.f32.mxu0 %v10331_v2  ;;  %724 = vmatprep.mubr.f32.mxu1 %v10331_v2 }
  0xa0   :  { %924 = vmatpush1.msra.mxu1 %v790_v50  ;;  %835 = vmatpush1.msra.mxu0 %v788_v49  ;;  %v1450_v27 = vpop.permute.xlu1 %1449  ;;  %v52_v49 = vld [vmem:[%s10325_s2 + $0x88] sm:$0xff] }
  0xa1   :  { %1040 = vmatprep.subr.mxu0 %v6892_v4  ;;  %1129 = vmatprep.subr.mxu1 %v6887_v3  ;;  %v46_v3 = vld [vmem:[%s10325_s2 + $0x58] sm:$0xff]  ;;  %v1209_v4 = vpop.permute.xlu0 %1208 }
  0xa2   :  { %6644 = vmatmul.mubr.msk.f32.gmra.mxu0 %vm139_vm2, %v44_v51  ;;  %6648 = vmatmul.mubr.msk.f32.gmra.mxu1 %vm139_vm2, %v44_v51  ;;  %v1214_v62 = vsel %vm1212_vm5, %v1207_v53, %v1209_v4  ;;  %v1213_v32 = vsel %vm1212_vm5, %v1209_v4, %v1211_v57  ;;  %v53_v53 = vld [vmem:[%s10325_s2 + $0x90] sm:$0xff] }
  0xa3   :  { %641 = vmatprep.mubr.f32.mxu0 %v10331_v2  ;;  %730 = vmatprep.mubr.f32.mxu1 %v10331_v2  ;;  %v1234_v13 = vmul.f32 %v7188_v59, %v1214_v62  ;;  %v1235_v45 = vmul.f32 %v7239_v30, %v1213_v32  ;;  %v1936_v32 = vsub.s32 7, %v6955_v6 }
  0xa4   :  { %v7277_v51 = vpop.permute.xlu1 %1684  ;;  %6807 = vset.pattern.permute.xlu0 %v6828_v41 }
  0xa5   :  { %v7215_v23 = vpop.permute.xlu0 %1443  ;;  %2237 = vperm.xlu0 %6807, %v7098_v20   ;;  %v55_v20 = vld [vmem:[%s10325_s2 + $0xa0] sm:$0xff]  ;;  %v7374_v52 = vrot.slane %v6963_v8, %v1936_v32 }
  0xa6   :  { %6645 = vmatmul.mubr.msk.f32.gmra.mxu0 %vm139_vm2, %v45_v55  ;;  %6649 = vmatmul.mubr.msk.f32.gmra.mxu1 %vm139_vm2, %v45_v55  ;;  %v1455_v38 = vsel %vm1451_vm6, %v1450_v27, %v7215_v23  ;;  %v1697_v55 = vsub.s32 6, %v6955_v6  ;;  %v1454_v63 = vsel %vm1451_vm6, %v7215_v23, %v7217_v24 }
  0xa7   :  { %647 = vmatprep.mubr.f32.mxu0 %v10331_v2  ;;  %736 = vmatprep.mubr.f32.mxu1 %v10331_v2  ;;  %10508 = vst [vmem:[#allocation33_spill] sm:$0xff] %v7374_v52 }
  0xa8   :  { %v1689_v4 = vpop.permute.xlu1 %1688 }
  0xa9   :  { %v1448_v26 = vpop.permute.xlu0 %1447 }
  0xaa   :  { %6646 = vmatmul.mubr.msk.f32.gmra.mxu0 %vm139_vm2, %v46_v3  ;;  %6650 = vmatmul.mubr.msk.f32.gmra.mxu1 %vm139_vm2, %v46_v3  ;;  %v1453_v36 = vsel %vm1451_vm6, %v7217_v24, %v1448_v26 }
  0xab   :  { %868 = vmatprep.mubr.f32.mxu0 %v10331_v2  ;;  %957 = vmatprep.mubr.f32.mxu1 %v10331_v2 }
  0xad   :  { %v7275_v50 = vpop.permute.xlu0 %1682 }
  0xae   :  { %6651 = vmatmul.mubr.msk.f32.vlgmr.msra.gmra.mxu0 %vm139_vm2, %v47_v9  ;;  %6655 = vmatmul.mubr.msk.f32.vlgmr.msra.gmra.mxu1 %vm139_vm2, %v47_v9  ;;  %v1452_v9 = vsel %vm1451_vm6, %v1448_v26, %v1450_v27  ;;  %v1924_v27 = vpop.permute.xlu1 %1923 }
  0xaf   :  { %874 = vmatprep.mubr.f32.mxu0 %v10331_v2  ;;  %963 = vmatprep.mubr.f32.mxu1 %v10331_v2 }
  0xb0   :  { %1041 = vmatpush1.msra.mxu0 %v6876_v1  ;;  %1130 = vmatpush1.msra.mxu1 %v6871_v0  ;;  %v49_v1 = vld [vmem:[%s10325_s2 + $0x70] sm:$0xff]  ;;  %v1458_v0 = vsub.s32 5, %v6955_v6 }
  0xb1   :  { %1279 = vmatprep.subr.mxu0 %v1234_v13  ;;  %1368 = vmatprep.subr.mxu1 %v1236_v15  ;;  %v1687_v3 = vpop.permute.xlu0 %1686  ;;  %v7312_v13 = vrot.slane %v6969_v10, %v1697_v55  ;;  %v7315_v15 = vrot.slane %v6963_v8, %v1697_v55 }
  0xb2   :  { %6652 = vmatmul.mubr.msk.f32.gmra.mxu0 %vm139_vm2, %v48_v21  ;;  %6656 = vmatmul.mubr.msk.f32.gmra.mxu1 %vm139_vm2, %v48_v21  ;;  %v7246_v33 = vrot.slane %v6969_v10, %v1458_v0  ;;  %v7249_v34 = vrot.slane %v6963_v8, %v1458_v0  ;;  %v7299_v57 = vrot.slane %v6974_v11, %v1458_v0 }
  0xb3   :  { %880 = vmatprep.mubr.f32.mxu0 %v10331_v2  ;;  %969 = vmatprep.mubr.f32.mxu1 %v10331_v2  ;;  %v7302_v62 = vrot.slane %v6979_v12, %v1458_v0  ;;  %10503 = vst [vmem:[#allocation28_spill] sm:$0xff] %v7312_v13  ;;  %10504 = vst [vmem:[#allocation29_spill] sm:$0xff] %v7315_v15  ;;  %v1692_v41 = vsel %vm1690_vm7, %v7277_v51, %v1687_v3 }
  0xb4   :  { %10499 = vst [vmem:[#allocation24_spill] sm:$0xff] %v7246_v33  ;;  %10500 = vst [vmem:[#allocation25_spill] sm:$0xff] %v7249_v34  ;;  %v1473_v47 = vmul.f32 %v7246_v33, %v1453_v36  ;;  %v1475_v48 = vmul.f32 %v7249_v34, %v1455_v38  ;;  %v1694_v21 = vsel %vm1690_vm7, %v1689_v4, %v7275_v50  ;;  %v58_v36 = vld [vmem:[%s10325_s2 + $0xb8] sm:$0xff] }
  0xb5   :  { %10501 = vst [vmem:[#allocation26_spill] sm:$0xff] %v7299_v57  ;;  %10502 = vst [vmem:[#allocation27_spill] sm:$0xff] %v7302_v62  ;;  %v1472_v23 = vmul.f32 %v7299_v57, %v1454_v63  ;;  %v1474_v24 = vmul.f32 %v7302_v62, %v1452_v9  ;;  %v1714_v0 = vmul.f32 %v7315_v15, %v1694_v21  ;;  %v1922_v26 = vpop.permute.xlu0 %1921  ;;  %v62_v63 = vld [vmem:[%s10325_s2 + $0xd8] sm:$0xff] }
  0xb6   :  { %6653 = vmatmul.mubr.msk.f32.gmra.mxu0 %vm139_vm2, %v49_v1  ;;  %6657 = vmatmul.mubr.msk.f32.gmra.mxu1 %vm139_vm2, %v49_v1  ;;  %v1712_v1 = vmul.f32 %v7312_v13, %v1692_v41  ;;  %v7413_v9 = vrot.slane %v6974_v11, %v1936_v32  ;;  %v7416_v41 = vrot.slane %v6979_v12, %v1936_v32 }
  0xb7   :  { %886 = vmatprep.mubr.f32.mxu0 %v10331_v2  ;;  %975 = vmatprep.mubr.f32.mxu1 %v10331_v2  ;;  %v1932_v21 = vsel %vm1929_vm8, %v1922_v26, %v1924_v27 }
  0xb8   :  { %10509 = vst [vmem:[#allocation34_spill] sm:$0xff] %v7413_v9  ;;  %10510 = vst [vmem:[#allocation35_spill] sm:$0xff] %v7416_v41 }
  0xb9   :  { %v1926_v38 = vpop.permute.xlu0 %1925 }
  0xba   :  { %6654 = vmatmul.mubr.msk.f32.gmra.mxu0 %vm139_vm2, %v50_v25  ;;  %6658 = vmatmul.mubr.msk.f32.gmra.mxu1 %vm139_vm2, %v50_v25  ;;  %v56_v25 = vld [vmem:[%s10325_s2 + $0xa8] sm:$0xff] }
  0xbb   :  { %1074 = vmatprep.mubr.f32.mxu0 %v10331_v2  ;;  %1163 = vmatprep.mubr.f32.mxu1 %v10331_v2 }
  0xbe   :  { %6659 = vmatmul.mubr.msk.f32.vlgmr.msra.gmra.mxu0 %vm139_vm2, %v51_v40  ;;  %6663 = vmatmul.mubr.msk.f32.vlgmr.msra.gmra.mxu1 %vm139_vm2, %v51_v40  ;;  %v1928_v40 = vpop.permute.xlu1 %1927 }
  0xbf   :  { %1080 = vmatprep.mubr.f32.mxu0 %v10331_v2  ;;  %1169 = vmatprep.mubr.f32.mxu1 %v10331_v2 }
  0xc0   :  { %1280 = vmatpush1.msra.mxu0 %v1233_v42  ;;  %1369 = vmatpush1.msra.mxu1 %v1235_v45  ;;  %v7359_v42 = vrot.slane %v6974_v11, %v1697_v55  ;;  %v7362_v45 = vrot.slane %v6979_v12, %v1697_v55  ;;  %v1933_v55 = vsel %vm1929_vm8, %v1928_v40, %v1922_v26  ;;  %v63_v11 = vld [vmem:[%s10325_s2 + $0xe0] sm:$0xff]  ;;  %v68_v26 = vld [vmem:[%s10325_s2 + $0x108] sm:$0xff] }
  0xc1   :  { %1518 = vmatprep.subr.mxu0 %v1473_v47  ;;  %1607 = vmatprep.subr.mxu1 %v1475_v48  ;;  %v1693_v47 = vsel %vm1690_vm7, %v7275_v50, %v7277_v51  ;;  %v1691_v48 = vsel %vm1690_vm7, %v1687_v3, %v1689_v4  ;;  %v60_v3 = vld [vmem:[%s10325_s2 + $0xc8] sm:$0xff]  ;;  %v61_v4 = vld [vmem:[%s10325_s2 + $0xd0] sm:$0xff]  ;;  %v1950_v12 = vmul.f32 %v7413_v9, %v1932_v21 }
  0xc2   :  { %6660 = vmatmul.mubr.msk.f32.gmra.mxu0 %vm139_vm2, %v52_v49  ;;  %6664 = vmatmul.mubr.msk.f32.gmra.mxu1 %vm139_vm2, %v52_v49  ;;  %10505 = vst [vmem:[#allocation30_spill] sm:$0xff] %v7359_v42  ;;  %10506 = vst [vmem:[#allocation31_spill] sm:$0xff] %v7362_v45  ;;  %v7371_v49 = vrot.slane %v6969_v10, %v1936_v32  ;;  %v59_v10 = vld [vmem:[%s10325_s2 + $0xc0] sm:$0xff]  ;;  %v1711_v8 = vmul.f32 %v7359_v42, %v1693_v47 }
  0xc3   :  { %1086 = vmatprep.mubr.f32.mxu0 %v10331_v2  ;;  %1175 = vmatprep.mubr.f32.mxu1 %v10331_v2  ;;  %v1713_v50 = vmul.f32 %v7362_v45, %v1691_v48 }
  0xc4   :  { %10507 = vst [vmem:[#allocation32_spill] sm:$0xff] %v7371_v49 }
  0xc6   :  { %6661 = vmatmul.mubr.msk.f32.gmra.mxu0 %vm139_vm2, %v53_v53  ;;  %6665 = vmatmul.mubr.msk.f32.gmra.mxu1 %vm139_vm2, %v53_v53  ;;  %v1931_v53 = vsel %vm1929_vm8, %v1924_v27, %v1926_v38  ;;  %v69_v27 = vld [vmem:[%s10325_s2 + $0x110] sm:$0xff] }
  0xc7   :  { %1092 = vmatprep.mubr.f32.mxu0 %v10331_v2  ;;  %1181 = vmatprep.mubr.f32.mxu1 %v10331_v2  ;;  %v1951_v51 = vmul.f32 %v7371_v49, %v1931_v53 }
  0xca   :  { %6662 = vmatmul.mubr.msk.f32.gmra.mxu0 %vm139_vm2, %v54_v56  ;;  %6666 = vmatmul.mubr.msk.f32.gmra.mxu1 %vm139_vm2, %v54_v56  ;;  %v1953_v56 = vmul.f32 %v7374_v52, %v1933_v55 }
  0xcb   :  { %1313 = vmatprep.mubr.f32.mxu0 %v10331_v2  ;;  %1402 = vmatprep.mubr.f32.mxu1 %v10331_v2 }
  0xce   :  { %6667 = vmatmul.mubr.msk.f32.vlgmr.msra.gmra.mxu0 %vm139_vm2, %v55_v20  ;;  %6671 = vmatmul.mubr.msk.f32.vlgmr.msra.gmra.mxu1 %vm139_vm2, %v55_v20  ;;  %v1930_v20 = vsel %vm1929_vm8, %v1926_v38, %v1928_v40 }
  0xcf   :  { %1319 = vmatprep.mubr.f32.mxu0 %v10331_v2  ;;  %1408 = vmatprep.mubr.f32.mxu1 %v10331_v2 }
  0xd0   :  { %1519 = vmatpush1.msra.mxu0 %v1472_v23  ;;  %1608 = vmatpush1.msra.mxu1 %v1474_v24  ;;  %v1952_v23 = vmul.f32 %v7416_v41, %v1930_v20  ;;  %v64_v24 = vld [vmem:[%s10325_s2 + $0xe8] sm:$0xff] }
  0xd1   :  { %1757 = vmatprep.subr.mxu0 %v1712_v1  ;;  %1846 = vmatprep.subr.mxu1 %v1714_v0  ;;  %v65_v1 = vld [vmem:[%s10325_s2 + $0xf0] sm:$0xff]  ;;  %v66_v0 = vld [vmem:[%s10325_s2 + $0xf8] sm:$0xff] }
  0xd2   :  { %6668 = vmatmul.mubr.msk.f32.gmra.mxu0 %vm139_vm2, %v56_v25  ;;  %6672 = vmatmul.mubr.msk.f32.gmra.mxu1 %vm139_vm2, %v56_v25  ;;  %v67_v25 = vld [vmem:[%s10325_s2 + $0x100] sm:$0xff] }
  0xd3   :  { %1325 = vmatprep.mubr.f32.mxu0 %v10331_v2  ;;  %1414 = vmatprep.mubr.f32.mxu1 %v10331_v2 }
  0xd6   :  { %6669 = vmatmul.mubr.msk.f32.gmra.mxu0 %vm139_vm2, %v57_v31  ;;  %6673 = vmatmul.mubr.msk.f32.gmra.mxu1 %vm139_vm2, %v57_v31  ;;  %v70_v31 = vld [vmem:[%s10325_s2 + $0x118] sm:$0xff] }
  0xd7   :  { %1331 = vmatprep.mubr.f32.mxu0 %v10331_v2  ;;  %1420 = vmatprep.mubr.f32.mxu1 %v10331_v2 }
  0xda   :  { %6670 = vmatmul.mubr.msk.f32.gmra.mxu0 %vm139_vm2, %v58_v36  ;;  %6674 = vmatmul.mubr.msk.f32.gmra.mxu1 %vm139_vm2, %v58_v36 }
  0xdb   :  { %1552 = vmatprep.mubr.f32.mxu0 %v10331_v2  ;;  %1641 = vmatprep.mubr.f32.mxu1 %v10331_v2 }
  0xde   :  { %6675 = vmatmul.mubr.msk.f32.vlgmr.msra.gmra.mxu0 %vm139_vm2, %v59_v10  ;;  %6679 = vmatmul.mubr.msk.f32.vlgmr.msra.gmra.mxu1 %vm139_vm2, %v59_v10 }
  0xdf   :  { %1558 = vmatprep.mubr.f32.mxu0 %v10331_v2  ;;  %1647 = vmatprep.mubr.f32.mxu1 %v10331_v2 }
  0xe0   :  { %1758 = vmatpush1.msra.mxu0 %v1711_v8  ;;  %1847 = vmatpush1.msra.mxu1 %v1713_v50 }
  0xe1   :  { %1996 = vmatprep.subr.mxu0 %v1951_v51  ;;  %2085 = vmatprep.subr.mxu1 %v1953_v56 }
  0xe2   :  { %6676 = vmatmul.mubr.msk.f32.gmra.mxu0 %vm139_vm2, %v60_v3  ;;  %6680 = vmatmul.mubr.msk.f32.gmra.mxu1 %vm139_vm2, %v60_v3 }
  0xe3   :  { %1564 = vmatprep.mubr.f32.mxu0 %v10331_v2  ;;  %1653 = vmatprep.mubr.f32.mxu1 %v10331_v2 }
  0xe6   :  { %6677 = vmatmul.mubr.msk.f32.gmra.mxu0 %vm139_vm2, %v61_v4  ;;  %6681 = vmatmul.mubr.msk.f32.gmra.mxu1 %vm139_vm2, %v61_v4 }
  0xe7   :  { %1570 = vmatprep.mubr.f32.mxu0 %v10331_v2  ;;  %1659 = vmatprep.mubr.f32.mxu1 %v10331_v2 }
  0xea   :  { %6678 = vmatmul.mubr.msk.f32.gmra.mxu0 %vm139_vm2, %v62_v63  ;;  %6682 = vmatmul.mubr.msk.f32.gmra.mxu1 %vm139_vm2, %v62_v63 }
  0xeb   :  { %1791 = vmatprep.mubr.f32.mxu0 %v10331_v2  ;;  %1880 = vmatprep.mubr.f32.mxu1 %v10331_v2 }
  0xee   :  { %6683 = vmatmul.mubr.msk.f32.vlgmr.msra.gmra.mxu0 %vm139_vm2, %v63_v11  ;;  %6687 = vmatmul.mubr.msk.f32.vlgmr.msra.gmra.mxu1 %vm139_vm2, %v63_v11 }
  0xef   :  { %1797 = vmatprep.mubr.f32.mxu0 %v10331_v2  ;;  %1886 = vmatprep.mubr.f32.mxu1 %v10331_v2 }
  0xf0   :  { %1997 = vmatpush1.msra.mxu0 %v1950_v12  ;;  %2086 = vmatpush1.msra.mxu1 %v1952_v23 }
  0xf2   :  { %6684 = vmatmul.mubr.msk.f32.gmra.mxu0 %vm139_vm2, %v64_v24  ;;  %6688 = vmatmul.mubr.msk.f32.gmra.mxu1 %vm139_vm2, %v64_v24 }
  0xf3   :  { %1803 = vmatprep.mubr.f32.mxu0 %v10331_v2  ;;  %1892 = vmatprep.mubr.f32.mxu1 %v10331_v2 }
  0xf6   :  { %6685 = vmatmul.mubr.msk.f32.gmra.mxu0 %vm139_vm2, %v65_v1  ;;  %6689 = vmatmul.mubr.msk.f32.gmra.mxu1 %vm139_vm2, %v65_v1 }
  0xf7   :  { %1809 = vmatprep.mubr.f32.mxu0 %v10331_v2  ;;  %1898 = vmatprep.mubr.f32.mxu1 %v10331_v2 }
  0xfa   :  { %6686 = vmatmul.mubr.msk.f32.gmra.mxu0 %vm139_vm2, %v66_v0  ;;  %6690 = vmatmul.mubr.msk.f32.gmra.mxu1 %vm139_vm2, %v66_v0 }
  0xfb   :  { %2030 = vmatprep.mubr.f32.mxu0 %v10331_v2  ;;  %2119 = vmatprep.mubr.f32.mxu1 %v10331_v2 }
  0xfe   :  { %6691 = vmatmul.mubr.msk.f32.vlgmr.msra.gmra.mxu0 %vm139_vm2, %v67_v25  ;;  %6695 = vmatmul.mubr.msk.f32.vlgmr.msra.gmra.mxu1 %vm139_vm2, %v67_v25 }
  0xff   :  { %2036 = vmatprep.mubr.f32.mxu0 %v10331_v2  ;;  %2125 = vmatprep.mubr.f32.mxu1 %v10331_v2 }
 0x102   :  { %6692 = vmatmul.mubr.msk.f32.gmra.mxu0 %vm139_vm2, %v68_v26  ;;  %6696 = vmatmul.mubr.msk.f32.gmra.mxu1 %vm139_vm2, %v68_v26 }
 0x103   :  { %2042 = vmatprep.mubr.f32.mxu0 %v10331_v2  ;;  %2131 = vmatprep.mubr.f32.mxu1 %v10331_v2 }
 0x106   :  { %6693 = vmatmul.mubr.msk.f32.gmra.mxu0 %vm139_vm2, %v69_v27  ;;  %6697 = vmatmul.mubr.msk.f32.gmra.mxu1 %vm139_vm2, %v69_v27 }
 0x107   :  { %2048 = vmatprep.mubr.f32.mxu0 %v10331_v2  ;;  %2137 = vmatprep.mubr.f32.mxu1 %v10331_v2 }
 0x10a   :  { %6694 = vmatmul.mubr.msk.f32.gmra.mxu0 %vm139_vm2, %v70_v31  ;;  %6698 = vmatmul.mubr.msk.f32.gmra.mxu1 %vm139_vm2, %v70_v31 }
 0x10b   :  { %2501 = vmatprep.mubr.f32.mxu0 %v10331_v2  ;;  %2590 = vmatprep.mubr.f32.mxu1 %v10331_v2 }
 0x13e   :  { %v218_v32 = vpop.f32.mrf.mxu0  ;;  %v307_v36 = vpop.f32.mrf.mxu1 }
 0x140   :  { %v7484_v38 = vpop.f32.mrf.mxu0  ;;  %v7486_v40 = vpop.f32.mrf.mxu1 }
 0x142   :  { %v224_v47 = vpop.f32.mrf.mxu0  ;;  %v313_v48 = vpop.f32.mrf.mxu1 }
 0x144   :  { %v7488_v53 = vpop.f32.mrf.mxu0  ;;  %v7490_v55 = vpop.f32.mrf.mxu1 }
 0x145   :  { %10511 = vst [vmem:[#allocation36_spill] sm:$0xff] %v7488_v53  ;;  %10512 = vst [vmem:[#allocation37_spill] sm:$0xff] %v7490_v55 }
 0x146   :  { %v230_v10 = vpop.f32.mrf.mxu0  ;;  %v319_v8 = vpop.f32.mrf.mxu1 }
 0x148   :  { %v7492_v50 = vpop.f32.mrf.mxu0  ;;  %v7494_v51 = vpop.f32.mrf.mxu1 }
 0x14a   :  { %v236_v56 = vpop.f32.mrf.mxu0  ;;  %v325_v3 = vpop.f32.mrf.mxu1 }
 0x14c   :  { %v7496_v4 = vpop.f32.mrf.mxu0  ;;  %v7498_v63 = vpop.f32.mrf.mxu1 }
 0x14e   :  { %v408_v21 = vpop.f32.mrf.mxu0  ;;  %v497_v20 = vpop.f32.mrf.mxu1 }
 0x14f   :  { %v409_v11 = vadd.f32 %v408_v21, %v218_v32  ;;  %v498_v12 = vadd.f32 %v497_v20, %v307_v36 }
 0x150   :  { %v7500_v23 = vpop.f32.mrf.mxu0  ;;  %v7502_v24 = vpop.f32.mrf.mxu1 }
 0x152   :  { %v414_v1 = vpop.f32.mrf.mxu0  ;;  %v503_v0 = vpop.f32.mrf.mxu1 }
 0x153   :  { %v415_v25 = vadd.f32 %v414_v1, %v224_v47  ;;  %v504_v26 = vadd.f32 %v503_v0, %v313_v48 }
 0x154   :  { %v7504_v27 = vpop.f32.mrf.mxu0  ;;  %v7506_v31 = vpop.f32.mrf.mxu1 }
 0x155   :  { %10513 = vst [vmem:[#allocation38_spill] sm:$0xff] %v7504_v27  ;;  %10514 = vst [vmem:[#allocation39_spill] sm:$0xff] %v7506_v31 }
 0x156   :  { %v420_v5 = vpop.f32.mrf.mxu0  ;;  %v509_v2 = vpop.f32.mrf.mxu1 }
 0x157   :  { %v421_v6 = vadd.f32 %v420_v5, %v230_v10  ;;  %v510_v41 = vadd.f32 %v509_v2, %v319_v8 }
 0x158   :  { %v7508_v52 = vpop.f32.mrf.mxu0  ;;  %v7510_v32 = vpop.f32.mrf.mxu1 }
 0x15a   :  { %v426_v36 = vpop.f32.mrf.mxu0  ;;  %v515_v21 = vpop.f32.mrf.mxu1 }
 0x15b   :  { %v427_v20 = vadd.f32 %v426_v36, %v236_v56  ;;  %v516_v9 = vadd.f32 %v515_v21, %v325_v3 }
 0x15c   :  { %v7512_v49 = vpop.f32.mrf.mxu0  ;;  %v7514_v47 = vpop.f32.mrf.mxu1 }
 0x15e   :  { %v631_v48 = vpop.f32.mrf.mxu0  ;;  %v720_v1 = vpop.f32.mrf.mxu1 }
 0x15f   :  { %v743_v0 = vadd.f32 %v631_v48, %v409_v11  ;;  %v745_v45 = vadd.f32 %v720_v1, %v498_v12 }
 0x160   :  { %v7516_v15 = vpop.f32.mrf.mxu0  ;;  %v7518_v5 = vpop.f32.mrf.mxu1 }
 0x162   :  { %v637_v2 = vpop.f32.mrf.mxu0  ;;  %v726_v10 = vpop.f32.mrf.mxu1 }
 0x163   :  { %v747_v8 = vadd.f32 %v637_v2, %v415_v25  ;;  %v749_v42 = vadd.f32 %v726_v10, %v504_v26 }
 0x164   :  { %v7520_v13 = vpop.f32.mrf.mxu0  ;;  %v7522_v56 = vpop.f32.mrf.mxu1 }
 0x165   :  { %10515 = vst [vmem:[#allocation40_spill] sm:$0xff] %v7520_v13  ;;  %10516 = vst [vmem:[#allocation41_spill] sm:$0xff] %v7522_v56 }
 0x166   :  { %v643_v3 = vpop.f32.mrf.mxu0  ;;  %v732_v36 = vpop.f32.mrf.mxu1 }
 0x167   :  { %v751_v21 = vadd.f32 %v643_v3, %v421_v6  ;;  %v753_v62 = vadd.f32 %v732_v36, %v510_v41 }
 0x168   :  { %v7524_v34 = vpop.f32.mrf.mxu0  ;;  %v7526_v11 = vpop.f32.mrf.mxu1 }
 0x16a   :  { %v649_v12 = vpop.f32.mrf.mxu0  ;;  %v738_v48 = vpop.f32.mrf.mxu1 }
 0x16b   :  { %v755_v1 = vadd.f32 %v649_v12, %v427_v20  ;;  %v757_v57 = vadd.f32 %v738_v48, %v516_v9 }
 0x16c   :  { %v7528_v33 = vpop.f32.mrf.mxu0  ;;  %v7530_v25 = vpop.f32.mrf.mxu1 }
 0x16e   :  { %v870_v26 = vpop.f32.mrf.mxu0  ;;  %v959_v2 = vpop.f32.mrf.mxu1 }
 0x16f   :  { %v7532_v10 = vadd.f32 %v870_v26, %v743_v0  ;;  %v7534_v30 = vadd.f32 %v959_v2, %v745_v45 }
 0x170   :  { %v7536_v6 = vpop.f32.mrf.mxu0  ;;  %v7538_v41 = vpop.f32.mrf.mxu1 }
 0x172   :  { %v876_v3 = vpop.f32.mrf.mxu0  ;;  %v965_v36 = vpop.f32.mrf.mxu1 }
 0x173   :  { %v986_v61 = vadd.f32 %v876_v3, %v747_v8  ;;  %v988_v29 = vadd.f32 %v965_v36, %v749_v42 }
 0x174   :  { %v7540_v20 = vpop.f32.mrf.mxu0  ;;  %v7542_v9 = vpop.f32.mrf.mxu1 }
 0x175   :  { %10517 = vst [vmem:[#allocation42_spill] sm:$0xff] %v7540_v20  ;;  %10518 = vst [vmem:[#allocation43_spill] sm:$0xff] %v7542_v9 }
 0x176   :  { %v882_v12 = vpop.f32.mrf.mxu0  ;;  %v971_v48 = vpop.f32.mrf.mxu1 }
 0x177   :  { %v990_v59 = vadd.f32 %v882_v12, %v751_v21  ;;  %v992_v44 = vadd.f32 %v971_v48, %v753_v62 }
 0x178   :  { %v7544_v0 = vpop.f32.mrf.mxu0  ;;  %v7546_v45 = vpop.f32.mrf.mxu1 }
 0x17a   :  { %v888_v26 = vpop.f32.mrf.mxu0  ;;  %v977_v2 = vpop.f32.mrf.mxu1 }
 0x17b   :  { %v994_v28 = vadd.f32 %v888_v26, %v755_v1  ;;  %v996_v43 = vadd.f32 %v977_v2, %v757_v57 }
 0x17c   :  { %v7548_v14 = vpop.f32.mrf.mxu0  ;;  %v7550_v8 = vpop.f32.mrf.mxu1 }
 0x17e   :  { %v7552_v42 = vpop.f32.mrf.mxu0  ;;  %v7554_v3 = vpop.f32.mrf.mxu1 }
 0x180   :  { %v7556_v36 = vpop.f32.mrf.mxu0  ;;  %v7558_v21 = vpop.f32.mrf.mxu1 }
 0x182   :  { %v1082_v62 = vpop.f32.mrf.mxu0  ;;  %v1171_v12 = vpop.f32.mrf.mxu1 }
 0x183   :  { %v1192_v48 = vadd.f32 %v1082_v62, %v986_v61  ;;  %v1194_v60 = vadd.f32 %v1171_v12, %v988_v29 }
 0x184   :  { %v7560_v54 = vpop.f32.mrf.mxu0  ;;  %v7562_v1 = vpop.f32.mrf.mxu1 }
 0x185   :  { %10519 = vst [vmem:[#allocation44_spill] sm:$0xff] %v7560_v54  ;;  %10520 = vst [vmem:[#allocation45_spill] sm:$0xff] %v7562_v1 }
 0x186   :  { %v1088_v57 = vpop.f32.mrf.mxu0  ;;  %v1177_v26 = vpop.f32.mrf.mxu1 }
 0x187   :  { %v1196_v2 = vadd.f32 %v1088_v57, %v990_v59  ;;  %v1198_v58 = vadd.f32 %v1177_v26, %v992_v44 }
 0x188   :  { %v7564_v46 = vpop.f32.mrf.mxu0  ;;  %v7566_v37 = vpop.f32.mrf.mxu1 }
 0x18a   :  { %v1094_v39 = vpop.f32.mrf.mxu0  ;;  %v1183_v35 = vpop.f32.mrf.mxu1 }
 0x18b   :  { %v1200_v22 = vadd.f32 %v1094_v39, %v994_v28  ;;  %v1202_v19 = vadd.f32 %v1183_v35, %v996_v43 }
 0x18c   :  { %v7568_v16 = vpop.f32.mrf.mxu0  ;;  %v7570_v61 = vpop.f32.mrf.mxu1 }
 0x18e   :  { %v7572_v29 = vpop.f32.mrf.mxu0  ;;  %v7574_v62 = vpop.f32.mrf.mxu1 }
 0x190   :  { %v7576_v12 = vpop.f32.mrf.mxu0  ;;  %v7578_v59 = vpop.f32.mrf.mxu1 }
 0x192   :  { %v1321_v44 = vpop.f32.mrf.mxu0  ;;  %v1410_v57 = vpop.f32.mrf.mxu1 }
 0x193   :  { %v7580_v26 = vadd.f32 %v1321_v44, %v1192_v48  ;;  %v7582_v18 = vadd.f32 %v1410_v57, %v1194_v60 }
 0x194   :  { %v7584_v39 = vpop.f32.mrf.mxu0  ;;  %v7586_v35 = vpop.f32.mrf.mxu1 }
 0x195   :  { %10521 = vst [vmem:[#allocation46_spill] sm:$0xff] %v7580_v26  ;;  %10522 = vst [vmem:[#allocation47_spill] sm:$0xff] %v7582_v18 }
 0x196   :  { %10523 = vst [vmem:[#allocation48_spill] sm:$0xff] %v7584_v39  ;;  %10524 = vst [vmem:[#allocation49_spill] sm:$0xff] %v7586_v35  ;;  %v1327_v28 = vpop.f32.mrf.mxu0  ;;  %v1416_v43 = vpop.f32.mrf.mxu1 }
 0x197   :  { %v1435_v17 = vadd.f32 %v1327_v28, %v1196_v2  ;;  %v1437_v7 = vadd.f32 %v1416_v43, %v1198_v58 }
 0x198   :  { %v1329_v1 = vpop.f32.mrf.mxu0  ;;  %v1418_v9 = vpop.f32.mrf.mxu1 }
 0x19a   :  { %v1333_v54 = vpop.f32.mrf.mxu0  ;;  %v1422_v56 = vpop.f32.mrf.mxu1 }
 0x19b   :  { %v1439_v20 = vadd.f32 %v1333_v54, %v1200_v22  ;;  %v1441_v31 = vadd.f32 %v1422_v56, %v1202_v19 }
 0x19c   :  { %v7588_v55 = vpop.f32.mrf.mxu0  ;;  %v7590_v48 = vpop.f32.mrf.mxu1 }
 0x19e   :  { %v7592_v60 = vpop.f32.mrf.mxu0  ;;  %v7594_v44 = vpop.f32.mrf.mxu1 }
 0x1a0   :  { %v7596_v57 = vpop.f32.mrf.mxu0  ;;  %v7598_v18 = vpop.f32.mrf.mxu1 }
 0x1a1   :  { %10525 = vst [vmem:[#allocation50_spill] sm:$0xff] %v7598_v18 }
 0x1a2   :  { %v7600_v2 = vpop.f32.mrf.mxu0  ;;  %v7602_v58 = vpop.f32.mrf.mxu1 }
 0x1a3   :  { %10526 = vst [vmem:[#allocation51_spill] sm:$0xff] %v7600_v2  ;;  %10527 = vst [vmem:[#allocation52_spill] sm:$0xff] %v7602_v58  ;;  %v423_v58 = vadd.f32 %v7508_v52, %v7492_v50 }
 0x1a4   :  { %v7604_v28 = vpop.f32.mrf.mxu0  ;;  %v7606_v22 = vpop.f32.mrf.mxu1 }
 0x1a5   :  { %10528 = vst [vmem:[#allocation53_spill] sm:$0xff] %v7604_v28  ;;  %10529 = vst [vmem:[#allocation54_spill] sm:$0xff] %v7606_v22  ;;  %v512_v22 = vadd.f32 %v7510_v32, %v7494_v51  ;;  %v7616_v28 = vpop.permute.xlu1 %2172  ;;  %v411_v51 = vadd.f32 %v7500_v23, %v7484_v38  ;;  %v500_v32 = vadd.f32 %v7502_v24, %v7486_v40 }
 0x1a6   :  { %v1566_v19 = vpop.f32.mrf.mxu0  ;;  %v1655_v54 = vpop.f32.mrf.mxu1 }
 0x1a7   :  { %v1674_v56 = vadd.f32 %v1566_v19, %v1435_v17  ;;  %v1676_v43 = vadd.f32 %v1655_v54, %v1437_v7  ;;  %v752_v19 = vadd.f32 %v7524_v34, %v423_v58  ;;  %v746_v58 = vadd.f32 %v7518_v5, %v500_v32 }
 0x1a8   :  { %v1568_v35 = vpop.f32.mrf.mxu0  ;;  %v1657_v26 = vpop.f32.mrf.mxu1 }
 0x1a9   :  { %v991_v34 = vadd.f32 %v7544_v0, %v752_v19  ;;  %v7648_v23 = vpop.permute.xlu1 %2167 }
 0x1aa   :  { %v1572_v39 = vpop.f32.mrf.mxu0  ;;  %v1661_v13 = vpop.f32.mrf.mxu1 }
 0x1ab   :  { %v7608_v27 = vadd.f32 %v1572_v39, %v1439_v20  ;;  %v7610_v53 = vadd.f32 %v1661_v13, %v1441_v31  ;;  %v754_v20 = vadd.f32 %v7526_v11, %v512_v22  ;;  %v429_v13 = vadd.f32 %v7512_v49, %v7496_v4 }
 0x1ac   :  { %v1574_v18 = vpop.f32.mrf.mxu0  ;;  %v1663_v2 = vpop.f32.mrf.mxu1  ;;  %v518_v31 = vadd.f32 %v7514_v47, %v7498_v63  ;;  %v744_v47 = vadd.f32 %v7516_v15, %v411_v51  ;;  %v1197_v38 = vadd.f32 %v7564_v46, %v991_v34  ;;  %v985_v15 = vadd.f32 %v7538_v41, %v746_v58 }
 0x1ad   :  { %v993_v11 = vadd.f32 %v7546_v45, %v754_v20  ;;  %v756_v39 = vadd.f32 %v7528_v33, %v429_v13  ;;  %v1188_v46 = vadd.f32 %v7552_v42, %v7532_v10 }
 0x1ae   :  { %v7618_v17 = vpop.f32.mrf.mxu0  ;;  %v7620_v7 = vpop.f32.mrf.mxu1  ;;  %v758_v49 = vadd.f32 %v7530_v25, %v518_v31  ;;  %v983_v45 = vadd.f32 %v7536_v6, %v744_v47  ;;  %v1436_v22 = vadd.f32 %v1329_v1, %v1197_v38 }
 0x1af   :  { %v1199_v40 = vadd.f32 %v7566_v37, %v993_v11  ;;  %v995_v24 = vadd.f32 %v7548_v14, %v756_v39  ;;  %v1190_v37 = vadd.f32 %v7554_v3, %v7534_v30  ;;  %v1427_v10 = vadd.f32 %v7572_v29, %v1188_v46  ;;  %v10530_v39 = vld [vmem:[#allocation50_spill] sm:$0xff] }
 0x1b0   :  { %v7628_v52 = vpop.f32.mrf.mxu0  ;;  %v7630_v50 = vpop.f32.mrf.mxu1  ;;  %v997_v33 = vadd.f32 %v7550_v8, %v758_v49  ;;  %v1675_v20 = vadd.f32 %v1568_v35, %v1436_v22  ;;  %v1189_v41 = vadd.f32 %v7556_v36, %v983_v45 }
 0x1b1   :  { %v1438_v5 = vadd.f32 %v1418_v9, %v1199_v40  ;;  %v1201_v14 = vadd.f32 %v7568_v16, %v995_v24  ;;  %v1191_v9 = vadd.f32 %v7558_v21, %v985_v15  ;;  %v1429_v30 = vadd.f32 %v7574_v62, %v1190_v37 }
 0x1b2   :  { %v7640_v4 = vpop.f32.mrf.mxu0  ;;  %v7642_v63 = vpop.f32.mrf.mxu1  ;;  %v1203_v8 = vadd.f32 %v7570_v61, %v997_v33  ;;  %v1428_v36 = vadd.f32 %v7576_v12, %v1189_v41  ;;  %v1666_v29 = vadd.f32 %v7592_v60, %v1427_v10  ;;  %v10531_v10 = vld [vmem:[#allocation36_spill] sm:$0xff] }
 0x1b3   :  { %v1677_v13 = vadd.f32 %v1657_v26, %v1438_v5  ;;  %v1440_v3 = vadd.f32 %v7588_v55, %v1201_v14  ;;  %v7674_v61 = vpop.permute.xlu1 %2241  ;;  %v1430_v21 = vadd.f32 %v7578_v59, %v1191_v9  ;;  %v1668_v62 = vadd.f32 %v7594_v44, %v1429_v30  ;;  %v10532_v30 = vld [vmem:[#allocation38_spill] sm:$0xff] }
 0x1b4   :  { %v7652_v0 = vpop.f32.mrf.mxu0  ;;  %v7654_v25 = vpop.f32.mrf.mxu1  ;;  %v1442_v1 = vadd.f32 %v7590_v48, %v1203_v8  ;;  %v1667_v11 = vadd.f32 %v7596_v57, %v1428_v36  ;;  %v1905_v60 = vadd.f32 %v7618_v17, %v1666_v29  ;;  %v10535_v29 = vld [vmem:[#allocation39_spill] sm:$0xff] }
 0x1b5   :  { %v1679_v51 = vadd.f32 %v1574_v18, %v1440_v3  ;;  %v1669_v12 = vadd.f32 %v10530_v39, %v1430_v21  ;;  %v1907_v44 = vadd.f32 %v7620_v7, %v1668_v62  ;;  %v10533_v3 = vld [vmem:[#allocation40_spill] sm:$0xff]  ;;  %v10534_v21 = vld [vmem:[#allocation37_spill] sm:$0xff] }
 0x1b6   :  { %v1805_v54 = vpop.f32.mrf.mxu0  ;;  %v1894_v19 = vpop.f32.mrf.mxu1  ;;  %v1681_v48 = vadd.f32 %v1663_v2, %v1442_v1  ;;  %v1906_v58 = vadd.f32 %v7628_v52, %v1667_v11  ;;  %v506_v62 = vadd.f32 %v10535_v29, %v10534_v21  ;;  %v10538_v11 = vld [vmem:[#allocation44_spill] sm:$0xff] }
 0x1b7   :  { %v7664_v31 = vadd.f32 %v1805_v54, %v1674_v56  ;;  %v7666_v6 = vadd.f32 %v1894_v19, %v1676_v43  ;;  %v7680_v56 = vpop.permute.xlu0 %2177  ;;  %v7702_v38 = vpop.permute.xlu1 %2233 }
 0x1b8   :  { %v1807_v42 = vpop.f32.mrf.mxu0  ;;  %v1896_v16 = vpop.f32.mrf.mxu1 }
 0x1b9   :  { %v7676_v26 = vadd.f32 %v1807_v42, %v1675_v20  ;;  %v7678_v35 = vadd.f32 %v1896_v16, %v1677_v13  ;;  %v417_v42 = vadd.f32 %v10532_v30, %v10531_v10 }
 0x1ba   :  { %v1811_v43 = vpop.f32.mrf.mxu0  ;;  %v1900_v55 = vpop.f32.mrf.mxu1 }
 0x1bb   :  { %v7687_v32 = vadd.f32 %v1811_v43, %v7608_v27  ;;  %v7690_v34 = vadd.f32 %v1900_v55, %v7610_v53  ;;  %v1908_v53 = vadd.f32 %v7630_v50, %v1669_v12  ;;  %v2163_v24 = vpop.permute.xlu0 %2162  ;;  %v2230_v19 = vpop.permute.xlu1 %2229  ;;  %v748_v1 = vadd.f32 %v10533_v3, %v417_v42  ;;  %v10536_v43 = vld [vmem:[#allocation42_spill] sm:$0xff] }
 0x1bc   :  { %v1813_v49 = vpop.f32.mrf.mxu0  ;;  %v1902_v59 = vpop.f32.mrf.mxu1 }
 0x1bd   :  { %v7696_v47 = vadd.f32 %v1813_v49, %v1679_v51  ;;  %v7698_v18 = vadd.f32 %v1902_v59, %v1681_v48  ;;  %v987_v55 = vadd.f32 %v10536_v43, %v748_v1  ;;  %v10537_v51 = vld [vmem:[#allocation41_spill] sm:$0xff]  ;;  %v10539_v49 = vld [vmem:[#allocation43_spill] sm:$0xff] }
 0x1be   :  { %v2032_v2 = vpop.f32.mrf.mxu0  ;;  %v2121_v27 = vpop.f32.mrf.mxu1  ;;  %v750_v48 = vadd.f32 %v10537_v51, %v506_v62 }
 0x1bf   :  { %v2144_v57 = vadd.f32 %v2032_v2, %v1905_v60  ;;  %v2146_v40 = vadd.f32 %v2121_v27, %v1907_v44  ;;  %v1193_v39 = vadd.f32 %v10538_v11, %v987_v55  ;;  %v10540_v60 = vld [vmem:[#allocation48_spill] sm:$0xff]  ;;  %v10541_v2 = vld [vmem:[#allocation46_spill] sm:$0xff]  ;;  %v10542_v27 = vld [vmem:[#allocation51_spill] sm:$0xff] }
 0x1c0   :  { %v2034_v33 = vpop.f32.mrf.mxu0  ;;  %v2123_v45 = vpop.f32.mrf.mxu1  ;;  %v989_v59 = vadd.f32 %v10539_v49, %v750_v48 }
 0x1c1   :  { %v2180_v17 = vadd.f32 %v2163_v24, %v2144_v57  ;;  %v2182_v15 = vadd.f32 %v2163_v24, %v2146_v40  ;;  %v2145_v7 = vadd.f32 %v2034_v33, %v1906_v58  ;;  %v2147_v22 = vadd.f32 %v2123_v45, %v1908_v53  ;;  %v10543_v53 = vld [vmem:[#allocation45_spill] sm:$0xff] }
 0x1c2   :  { %v2038_v12 = vpop.f32.mrf.mxu0  ;;  %v1432_v44 = vadd.f32 %v10540_v60, %v1193_v39  ;;  %v1670_v58 = vadd.f32 %v10542_v27, %v10541_v2  ;;  %v1195_v57 = vadd.f32 %v10543_v53, %v989_v59  ;;  %v10544_v40 = vld [vmem:[#allocation53_spill] sm:$0xff]  ;;  %v2127_v45 = vpop.f32.mrf.mxu1 }
 0x1c3   :  { %v2196_v5 = vmul.f32 0.01, %v2180_v17  ;;  %v2198_v46 = vmul.f32 0.01, %v2182_v15  ;;  %v2181_v37 = vadd.f32 %v2163_v24, %v2145_v7  ;;  %v2183_v14 = vadd.f32 %v2163_v24, %v2147_v22  ;;  %v10546_v22 = vld [vmem:[#allocation47_spill] sm:$0xff] }
 0x1c4   :  { %v1671_v24 = vadd.f32 %v10544_v40, %v1432_v44  ;;  %v1909_v33 = vadd.f32 %v7640_v4, %v1670_v58 }
 0x1c5   :  { %v2212_v8 = vmax.f32 %v2180_v17, %v2196_v5  ;;  %v2197_v54 = vmul.f32 0.01, %v2181_v37  ;;  %v2199_v52 = vmul.f32 0.01, %v2183_v14  ;;  %v2214_v50 = vmax.f32 %v2182_v15, %v2198_v46  ;;  %v2040_v17 = vpop.f32.mrf.mxu0  ;;  %v10545_v15 = vld [vmem:[#allocation49_spill] sm:$0xff]  ;;  %v10547_v5 = vld [vmem:[#allocation52_spill] sm:$0xff] }
 0x1c6   :  { %v1434_v7 = vadd.f32 %v10545_v15, %v1195_v57  ;;  %v1672_v46 = vadd.f32 %v10547_v5, %v10546_v22 }
 0x1c7   :  { %v7704_v20 = vadd.f32 %v2230_v19, %v2212_v8  ;;  %v2213_v13 = vmax.f32 %v2181_v37, %v2197_v54  ;;  %v2215_v9 = vmax.f32 %v2183_v14, %v2199_v52  ;;  %v7712_v16 = vadd.f32 %v2230_v19, %v2214_v50  ;;  %v10548_v8 = vld [vmem:[#allocation54_spill] sm:$0xff] }
 0x1c8   :  { %v1910_v37 = vadd.f32 %v7652_v0, %v1671_v24  ;;  %v2148_v14 = vadd.f32 %v2038_v12, %v1909_v33  ;;  %v1673_v54 = vadd.f32 %v10548_v8, %v1434_v7  ;;  %v1911_v4 = vadd.f32 %v7642_v63, %v1672_v46 }
 0x1c9   :  { %v7706_v41 = vadd.f32 %v2230_v19, %v2213_v13  ;;  %2360 = vrot.lane.b32.xlu0 %v7704_v20, %s6819_s25  ;;  %v7717_v36 = vadd.f32 %v2230_v19, %v2215_v9  ;;  %v2129_v19 = vpop.f32.mrf.mxu1 }
 0x1ca   :  { %v2149_v52 = vadd.f32 %v2040_v17, %v1910_v37  ;;  %v1912_v50 = vadd.f32 %v7654_v25, %v1673_v54  ;;  %v2184_v13 = vadd.f32 %v7648_v23, %v2148_v14  ;;  %v2150_v9 = vadd.f32 %v2127_v45, %v1911_v4 }
 0x1cb   :  { %2368 = vrot.lane.b32.xlu1 %v7706_v41, %s6819_s25  ;;  %v2133_v11 = vpop.f32.mrf.mxu1 }
 0x1cc   :  { %v2185_v0 = vadd.f32 %v7648_v23, %v2149_v52  ;;  %v2151_v10 = vadd.f32 %v2129_v19, %v1912_v50  ;;  %v2200_v63 = vmul.f32 0.01, %v2184_v13  ;;  %v2186_v30 = vadd.f32 %v7648_v23, %v2150_v9 }
 0x1cd   :  { %2376 = vrot.lane.b32.xlu0 %v7712_v16, %s6819_s25  ;;  %v2135_v59 = vpop.f32.mrf.mxu1  ;;  %v2154_v44 = vadd.f32 %v2133_v11, %v7666_v6 }
 0x1ce   :  { %v2201_v42 = vmul.f32 0.01, %v2185_v0  ;;  %v2187_v25 = vadd.f32 %v7648_v23, %v2151_v10  ;;  %v2216_v3 = vmax.f32 %v2184_v13, %v2200_v63  ;;  %v2202_v1 = vmul.f32 0.01, %v2186_v30 }
 0x1cf   :  { %2384 = vrot.lane.b32.xlu1 %v7717_v36, %s6819_s25  ;;  %v2139_v5 = vpop.f32.mrf.mxu1 }
 0x1d0   :  { %v2217_v21 = vmax.f32 %v2185_v0, %v2201_v42  ;;  %v2203_v29 = vmul.f32 0.01, %v2187_v25  ;;  %v7769_v62 = vadd.f32 %v7702_v38, %v2216_v3  ;;  %v2218_v43 = vmax.f32 %v2186_v30, %v2202_v1 }
 0x1d1   :  { %2296 = vrot.lane.b32.xlu0 %v7704_v20, %s6820_s30  ;;  %v2141_v8 = vpop.f32.mrf.mxu1  ;;  %v2158_v4 = vadd.f32 %v2139_v5, %v7690_v34 }
 0x1d2   :  { %v7774_v23 = vadd.f32 %v7702_v38, %v2217_v21  ;;  %v2219_v55 = vmax.f32 %v2187_v25, %v2203_v29  ;;  %v7779_v51 = vadd.f32 %v7702_v38, %v2218_v43 }
 0x1d3   :  { %2304 = vrot.lane.b32.xlu1 %v7706_v41, %s6820_s30 }
 0x1d4   :  { %v7784_v48 = vadd.f32 %v7702_v38, %v2219_v55  ;;  %v2044_v38 = vpop.f32.mrf.mxu0 }
 0x1d5   :  { %2312 = vrot.lane.b32.xlu0 %v7712_v16, %s6820_s30  ;;  %v2152_v12 = vadd.f32 %v2044_v38, %v7664_v31  ;;  %v2155_v31 = vadd.f32 %v2135_v59, %v7678_v35  ;;  %v2238_v35 = vpop.permute.xlu0 %2237 }
 0x1d6   :  { %v2046_v39 = vpop.f32.mrf.mxu0 }
 0x1d7   :  { %2320 = vrot.lane.b32.xlu1 %v7717_v36, %s6820_s30  ;;  %v2153_v49 = vadd.f32 %v2046_v39, %v7676_v26  ;;  %v2188_v60 = vadd.f32 %v7616_v28, %v2152_v12  ;;  %v2190_v26 = vadd.f32 %v7616_v28, %v2154_v44  ;;  %v2191_v53 = vadd.f32 %v7616_v28, %v2155_v31 }
 0x1d8   :  { %v2050_v22 = vpop.f32.mrf.mxu0 }
 0x1d9   :  { %2805 = vrot.lane.b32.xlu0 %v7704_v20, %s6821_s0  ;;  %v2189_v2 = vadd.f32 %v7616_v28, %v2153_v49  ;;  %v2204_v27 = vmul.f32 0.01, %v2188_v60  ;;  %v2206_v57 = vmul.f32 0.01, %v2190_v26  ;;  %v2207_v24 = vmul.f32 0.01, %v2191_v53 }
 0x1da   :  { %v2052_v46 = vpop.f32.mrf.mxu0  ;;  %v2156_v37 = vadd.f32 %v2050_v22, %v7687_v32  ;;  %v2159_v32 = vadd.f32 %v2141_v8, %v7698_v18 }
 0x1db   :  { %2813 = vrot.lane.b32.xlu1 %v7706_v41, %s6821_s0  ;;  %v2205_v58 = vmul.f32 0.01, %v2189_v2  ;;  %v2220_v6 = vmax.f32 %v2188_v60, %v2204_v27  ;;  %v2222_v33 = vmax.f32 %v2190_v26, %v2206_v57  ;;  %v2223_v28 = vmax.f32 %v2191_v53, %v2207_v24 }
 0x1dc   :  { %v2157_v14 = vadd.f32 %v2052_v46, %v7696_v47  ;;  %v2192_v54 = vadd.f32 %v7680_v56, %v2156_v37  ;;  %v2194_v47 = vadd.f32 %v7680_v56, %v2158_v4  ;;  %v2195_v13 = vadd.f32 %v7680_v56, %v2159_v32 }
 0x1dd   :  { %2821 = vrot.lane.b32.xlu0 %v7712_v16, %s6821_s0  ;;  %v2221_v40 = vmax.f32 %v2189_v2, %v2205_v58  ;;  %v7828_v45 = vadd.f32 %v2238_v35, %v2220_v6  ;;  %v7836_v15 = vadd.f32 %v2238_v35, %v2222_v33  ;;  %v7840_v7 = vadd.f32 %v2238_v35, %v2223_v28 }
 0x1de   :  { %v2193_v52 = vadd.f32 %v7680_v56, %v2157_v14  ;;  %v2208_v19 = vmul.f32 0.01, %v2192_v54  ;;  %v2210_v9 = vmul.f32 0.01, %v2194_v47  ;;  %v2211_v0 = vmul.f32 0.01, %v2195_v13 }
 0x1df   :  { %2829 = vrot.lane.b32.xlu1 %v7717_v36, %s6821_s0  ;;  %10549 = vst [vmem:[#allocation50_spill] sm:$0xff] %v7828_v45  ;;  %v7832_v17 = vadd.f32 %v2238_v35, %v2221_v40  ;;  %10551 = vst [vmem:[#allocation38_spill] sm:$0xff] %v7840_v7 }
 0x1e0   :  { %v2209_v50 = vmul.f32 0.01, %v2193_v52  ;;  %v2224_v34 = vmax.f32 %v2192_v54, %v2208_v19  ;;  %v2226_v63 = vmax.f32 %v2194_v47, %v2210_v9  ;;  %v2227_v30 = vmax.f32 %v2195_v13, %v2211_v0 }
 0x1e1   :  { %3075 = vrot.lane.b32.xlu0 %v7704_v20, %s6822_s7  ;;  %10550 = vst [vmem:[#allocation36_spill] sm:$0xff] %v7832_v17 }
 0x1e2   :  { %v2225_v18 = vmax.f32 %v2193_v52, %v2209_v50  ;;  %v7885_v10 = vadd.f32 %v7674_v61, %v2224_v34  ;;  %v7895_v42 = vadd.f32 %v7674_v61, %v2226_v63  ;;  %v7902_v3 = vadd.f32 %v7674_v61, %v2227_v30 }
 0x1e3   :  { %3083 = vrot.lane.b32.xlu1 %v7706_v41, %s6822_s7 }
 0x1e4   :  { %10552 = vst [vmem:[#allocation40_spill] sm:$0xff] %v7885_v10  ;;  %v7890_v56 = vadd.f32 %v7674_v61, %v2225_v18  ;;  %10553 = vst [vmem:[#allocation37_spill] sm:$0xff] %v7895_v42 }
 0x1e5   :  { %3091 = vrot.lane.b32.xlu0 %v7712_v16, %s6822_s7 }
 0x1e7   :  { %3099 = vrot.lane.b32.xlu1 %v7717_v36, %s6822_s7 }
 0x1e9   :  { %2362 = vrot.lane.b32.xlu0 %v7769_v62, %s6819_s25 }
 0x1eb   :  { %2370 = vrot.lane.b32.xlu1 %v7774_v23, %s6819_s25 }
 0x1ed   :  { %2378 = vrot.lane.b32.xlu0 %v7779_v51, %s6819_s25 }
 0x1ef   :  { %2386 = vrot.lane.b32.xlu1 %v7784_v48, %s6819_s25 }
 0x1f1   :  { %2298 = vrot.lane.b32.xlu0 %v7769_v62, %s6820_s30 }
 0x1f3   :  { %2306 = vrot.lane.b32.xlu1 %v7774_v23, %s6820_s30 }
 0x1f5   :  { %2314 = vrot.lane.b32.xlu0 %v7779_v51, %s6820_s30 }
 0x1f7   :  { %2322 = vrot.lane.b32.xlu1 %v7784_v48, %s6820_s30 }
 0x1f9   :  { %2807 = vrot.lane.b32.xlu0 %v7769_v62, %s6821_s0 }
 0x1fb   :  { %2815 = vrot.lane.b32.xlu1 %v7774_v23, %s6821_s0 }
 0x1fd   :  { %2823 = vrot.lane.b32.xlu0 %v7779_v51, %s6821_s0 }
 0x1ff   :  { %2831 = vrot.lane.b32.xlu1 %v7784_v48, %s6821_s0 }
 0x201   :  { %3077 = vrot.lane.b32.xlu0 %v7769_v62, %s6822_s7 }
 0x203   :  { %3085 = vrot.lane.b32.xlu1 %v7774_v23, %s6822_s7 }
 0x205   :  { %3093 = vrot.lane.b32.xlu0 %v7779_v51, %s6822_s7 }
 0x207   :  { %3101 = vrot.lane.b32.xlu1 %v7784_v48, %s6822_s7 }
 0x209   :  { %3553 = vrot.lane.b32.xlu0 %v7769_v62, %s6823_s8 }
 0x20b   :  { %3561 = vrot.lane.b32.xlu1 %v7774_v23, %s6823_s8 }
 0x20d   :  { %3569 = vrot.lane.b32.xlu0 %v7779_v51, %s6823_s8 }
 0x20f   :  { %3577 = vrot.lane.b32.xlu1 %v7784_v48, %s6823_s8 }
 0x211   :  { %2364 = vrot.lane.b32.xlu0 %v7828_v45, %s6819_s25 }
 0x213   :  { %2372 = vrot.lane.b32.xlu1 %v7832_v17, %s6819_s25 }
 0x215   :  { %2380 = vrot.lane.b32.xlu0 %v7836_v15, %s6819_s25 }
 0x217   :  { %2388 = vrot.lane.b32.xlu1 %v7840_v7, %s6819_s25 }
 0x219   :  { %2300 = vrot.lane.b32.xlu0 %v7828_v45, %s6820_s30 }
 0x21b   :  { %2308 = vrot.lane.b32.xlu1 %v7832_v17, %s6820_s30 }
 0x21d   :  { %2316 = vrot.lane.b32.xlu0 %v7836_v15, %s6820_s30 }
 0x21f   :  { %2324 = vrot.lane.b32.xlu1 %v7840_v7, %s6820_s30 }
 0x221   :  { %2809 = vrot.lane.b32.xlu0 %v7828_v45, %s6821_s0 }
 0x223   :  { %2817 = vrot.lane.b32.xlu1 %v7832_v17, %s6821_s0 }
 0x225   :  { %2825 = vrot.lane.b32.xlu0 %v7836_v15, %s6821_s0 }
 0x227   :  { %2833 = vrot.lane.b32.xlu1 %v7840_v7, %s6821_s0 }
 0x229   :  { %3079 = vrot.lane.b32.xlu0 %v7828_v45, %s6822_s7 }
 0x22b   :  { %3087 = vrot.lane.b32.xlu1 %v7832_v17, %s6822_s7 }
 0x22d   :  { %3095 = vrot.lane.b32.xlu0 %v7836_v15, %s6822_s7 }
 0x22f   :  { %3103 = vrot.lane.b32.xlu1 %v7840_v7, %s6822_s7 }
 0x231   :  { %3555 = vrot.lane.b32.xlu0 %v7828_v45, %s6823_s8 }
 0x233   :  { %3563 = vrot.lane.b32.xlu1 %v7832_v17, %s6823_s8 }
 0x235   :  { %3571 = vrot.lane.b32.xlu0 %v7836_v15, %s6823_s8 }
 0x237   :  { %3579 = vrot.lane.b32.xlu1 %v7840_v7, %s6823_s8 }
 0x239   :  { %2366 = vrot.lane.b32.xlu0 %v7885_v10, %s6819_s25 }
 0x23b   :  { %2374 = vrot.lane.b32.xlu1 %v7890_v56, %s6819_s25  ;;  %v7899_v25 = vpop.permute.xlu0 %2360 }
 0x23d   :  { %v7904_v1 = vpop.permute.xlu1 %2368  ;;  %2382 = vrot.lane.b32.xlu0 %v7895_v42, %s6819_s25 }
 0x23f   :  { %2390 = vrot.lane.b32.xlu1 %v7902_v3, %s6819_s25  ;;  %v7910_v21 = vpop.permute.xlu0 %2376 }
 0x241   :  { %v7912_v29 = vpop.permute.xlu1 %2384  ;;  %3551 = vrot.lane.b32.xlu0 %v7704_v20, %s6823_s8 }
 0x243   :  { %3559 = vrot.lane.b32.xlu1 %v7706_v41, %s6823_s8  ;;  %v7918_v61 = vpop.permute.xlu0 %2296 }
 0x245   :  { %v7920_v43 = vpop.permute.xlu1 %2304  ;;  %2302 = vrot.lane.b32.xlu0 %v7885_v10, %s6820_s30 }
 0x247   :  { %3575 = vrot.lane.b32.xlu1 %v7717_v36, %s6823_s8  ;;  %v7926_v55 = vpop.permute.xlu0 %2312 }
 0x249   :  { %v7928_v38 = vpop.permute.xlu1 %2320  ;;  %2318 = vrot.lane.b32.xlu0 %v7895_v42, %s6820_s30 }
 0x24b   :  { %2310 = vrot.lane.b32.xlu1 %v7890_v56, %s6820_s30  ;;  %v7934_v11 = vpop.permute.xlu0 %2805 }
 0x24d   :  { %v7936_v39 = vpop.permute.xlu1 %2813  ;;  %2811 = vrot.lane.b32.xlu0 %v7885_v10, %s6821_s0 }
 0x24f   :  { %2326 = vrot.lane.b32.xlu1 %v7902_v3, %s6820_s30  ;;  %v7942_v12 = vpop.permute.xlu0 %2821 }
 0x251   :  { %v7944_v49 = vpop.permute.xlu1 %2829  ;;  %2827 = vrot.lane.b32.xlu0 %v7895_v42, %s6821_s0 }
 0x253   :  { %3833 = vrot.lane.b32.xlu1 %v7832_v17, %s6824_s9  ;;  %v7950_v59 = vpop.permute.xlu0 %3075 }
 0x254   :  { %10554 = vst [vmem:[#allocation39_spill] sm:$0xff] %v7950_v59 }
 0x255   :  { %v7952_v60 = vpop.permute.xlu1 %3083  ;;  %3081 = vrot.lane.b32.xlu0 %v7885_v10, %s6822_s7 }
 0x256   :  { %10555 = vst [vmem:[#allocation42_spill] sm:$0xff] %v7952_v60 }
 0x257   :  { %3849 = vrot.lane.b32.xlu1 %v7840_v7, %s6824_s9  ;;  %v7958_v44 = vpop.permute.xlu0 %3091 }
 0x258   :  { %10556 = vst [vmem:[#allocation41_spill] sm:$0xff] %v7958_v44 }
 0x259   :  { %v7960_v2 = vpop.permute.xlu1 %3099  ;;  %3097 = vrot.lane.b32.xlu0 %v7895_v42, %s6822_s7 }
 0x25a   :  { %10557 = vst [vmem:[#allocation44_spill] sm:$0xff] %v7960_v2 }
 0x25b   :  { %2819 = vrot.lane.b32.xlu1 %v7890_v56, %s6821_s0  ;;  %v7966_v31 = vpop.permute.xlu0 %2362 }
 0x25d   :  { %v7968_v27 = vpop.permute.xlu1 %2370  ;;  %3557 = vrot.lane.b32.xlu0 %v7885_v10, %s6823_s8 }
 0x25f   :  { %2835 = vrot.lane.b32.xlu1 %v7902_v3, %s6821_s0  ;;  %v7974_v26 = vpop.permute.xlu0 %2378 }
 0x261   :  { %v7976_v58 = vpop.permute.xlu1 %2386  ;;  %3573 = vrot.lane.b32.xlu0 %v7895_v42, %s6823_s8 }
 0x263   :  { %3831 = vrot.lane.b32.xlu1 %v7774_v23, %s6824_s9  ;;  %v7982_v53 = vpop.permute.xlu0 %2298 }
 0x265   :  { %v7984_v6 = vpop.permute.xlu1 %2306  ;;  %3567 = vrot.lane.b32.xlu0 %v7712_v16, %s6823_s8 }
 0x267   :  { %3847 = vrot.lane.b32.xlu1 %v7784_v48, %s6824_s9  ;;  %v7990_v57 = vpop.permute.xlu0 %2314 }
 0x269   :  { %v7992_v35 = vpop.permute.xlu1 %2322  ;;  %3827 = vrot.lane.b32.xlu0 %v7885_v10, %s6824_s9 }
 0x26b   :  { %3089 = vrot.lane.b32.xlu1 %v7890_v56, %s6822_s7  ;;  %v7998_v40 = vpop.permute.xlu0 %2807 }
 0x26d   :  { %v8000_v24 = vpop.permute.xlu1 %2815  ;;  %3843 = vrot.lane.b32.xlu0 %v7895_v42, %s6824_s9 }
 0x26f   :  { %3105 = vrot.lane.b32.xlu1 %v7902_v3, %s6822_s7  ;;  %v8006_v33 = vpop.permute.xlu0 %2823 }
 0x271   :  { %v8008_v28 = vpop.permute.xlu1 %2831  ;;  %3825 = vrot.lane.b32.xlu0 %v7828_v45, %s6824_s9 }
 0x273   :  { %3829 = vrot.lane.b32.xlu1 %v7706_v41, %s6824_s9  ;;  %v8014_v22 = vpop.permute.xlu0 %3077 }
 0x274   :  { %10558 = vst [vmem:[#allocation43_spill] sm:$0xff] %v8014_v22 }
 0x275   :  { %v8016_v5 = vpop.permute.xlu1 %3085  ;;  %3841 = vrot.lane.b32.xlu0 %v7836_v15, %s6824_s9 }
 0x276   :  { %10559 = vst [vmem:[#allocation48_spill] sm:$0xff] %v8016_v5 }
 0x277   :  { %3845 = vrot.lane.b32.xlu1 %v7717_v36, %s6824_s9  ;;  %v8022_v46 = vpop.permute.xlu0 %3093 }
 0x278   :  { %10560 = vst [vmem:[#allocation46_spill] sm:$0xff] %v8022_v46 }
 0x279   :  { %v8024_v37 = vpop.permute.xlu1 %3101  ;;  %3823 = vrot.lane.b32.xlu0 %v7769_v62, %s6824_s9 }
 0x27a   :  { %10561 = vst [vmem:[#allocation51_spill] sm:$0xff] %v8024_v37 }
 0x27b   :  { %4103 = vrot.lane.b32.xlu1 %v7832_v17, %s6825_s10  ;;  %v8030_v14 = vpop.permute.xlu0 %3553 }
 0x27c   :  { %10562 = vst [vmem:[#allocation45_spill] sm:$0xff] %v8030_v14 }
 0x27d   :  { %v8032_v8 = vpop.permute.xlu1 %3561  ;;  %3839 = vrot.lane.b32.xlu0 %v7779_v51, %s6824_s9 }
 0x27e   :  { %10563 = vst [vmem:[#allocation53_spill] sm:$0xff] %v8032_v8 }
 0x27f   :  { %4119 = vrot.lane.b32.xlu1 %v7840_v7, %s6825_s10  ;;  %v8038_v54 = vpop.permute.xlu0 %3569 }
 0x280   :  { %10564 = vst [vmem:[#allocation49_spill] sm:$0xff] %v8038_v54 }
 0x281   :  { %v8040_v4 = vpop.permute.xlu1 %3577  ;;  %3821 = vrot.lane.b32.xlu0 %v7704_v20, %s6824_s9 }
 0x282   :  { %10565 = vst [vmem:[#allocation47_spill] sm:$0xff] %v8040_v4 }
 0x283   :  { %4101 = vrot.lane.b32.xlu1 %v7774_v23, %s6825_s10  ;;  %v2365_v52 = vpop.permute.xlu0 %2364 }
 0x285   :  { %v2373_v32 = vpop.permute.xlu1 %2372  ;;  %3837 = vrot.lane.b32.xlu0 %v7712_v16, %s6824_s9 }
 0x287   :  { %4117 = vrot.lane.b32.xlu1 %v7784_v48, %s6825_s10  ;;  %v2381_v19 = vpop.permute.xlu0 %2380 }
 0x289   :  { %v2389_v47 = vpop.permute.xlu1 %2388  ;;  %4097 = vrot.lane.b32.xlu0 %v7885_v10, %s6825_s10 }
 0x28b   :  { %3565 = vrot.lane.b32.xlu1 %v7890_v56, %s6823_s8  ;;  %v8054_v50 = vpop.permute.xlu0 %2300 }
 0x28d   :  { %v8056_v13 = vpop.permute.xlu1 %2308  ;;  %4113 = vrot.lane.b32.xlu0 %v7895_v42, %s6825_s10 }
 0x28f   :  { %3581 = vrot.lane.b32.xlu1 %v7902_v3, %s6823_s8  ;;  %v8062_v34 = vpop.permute.xlu0 %2316 }
 0x291   :  { %v8064_v9 = vpop.permute.xlu1 %2324  ;;  %4095 = vrot.lane.b32.xlu0 %v7828_v45, %s6825_s10 }
 0x293   :  { %4099 = vrot.lane.b32.xlu1 %v7706_v41, %s6825_s10  ;;  %v8070_v18 = vpop.permute.xlu0 %2809 }
 0x295   :  { %v8072_v0 = vpop.permute.xlu1 %2817  ;;  %4111 = vrot.lane.b32.xlu0 %v7836_v15, %s6825_s10 }
 0x297   :  { %4115 = vrot.lane.b32.xlu1 %v7717_v36, %s6825_s10  ;;  %v8078_v63 = vpop.permute.xlu0 %2825 }
 0x299   :  { %v8080_v30 = vpop.permute.xlu1 %2833  ;;  %4093 = vrot.lane.b32.xlu0 %v7769_v62, %s6825_s10 }
 0x29b   :  { %3835 = vrot.lane.b32.xlu1 %v7890_v56, %s6824_s9  ;;  %v8086_v4 = vpop.permute.xlu0 %3079 }
 0x29c   :  { %10566 = vst [vmem:[#allocation52_spill] sm:$0xff] %v8086_v4 }
 0x29d   :  { %v8088_v14 = vpop.permute.xlu1 %3087  ;;  %4109 = vrot.lane.b32.xlu0 %v7779_v51, %s6825_s10 }
 0x29f   :  { %3851 = vrot.lane.b32.xlu1 %v7902_v3, %s6824_s9  ;;  %v8094_v8 = vpop.permute.xlu0 %3095 }
 0x2a0   :  { %10567 = vst [vmem:[#allocation54_spill] sm:$0xff] %v8094_v8  ;;  %v2406_v8 = vsel %vm114_vm0, %v2389_v47, %v2365_v52 }
 0x2a1   :  { %v8096_v54 = vpop.permute.xlu1 %3103  ;;  %4091 = vrot.lane.b32.xlu0 %v7704_v20, %s6825_s10 }
 0x2a2   :  { %10568 = vst [vmem:[#allocation55_spill] sm:$0xff] %v8096_v54  ;;  %v10575_v54 = vld [vmem:[#allocation6_spill] sm:$0xff] }
 0x2a3   :  { %4373 = vrot.lane.b32.xlu1 %v7832_v17, %s6826_s11  ;;  %v8102_v44 = vpop.permute.xlu0 %3555 }
 0x2a4   :  { %10569 = vst [vmem:[#allocation56_spill] sm:$0xff] %v8102_v44 }
 0x2a5   :  { %v8104_v2 = vpop.permute.xlu1 %3563  ;;  %4107 = vrot.lane.b32.xlu0 %v7712_v16, %s6825_s10 }
 0x2a6   :  { %10570 = vst [vmem:[#allocation57_spill] sm:$0xff] %v8104_v2  ;;  %v4735_v2 = vld [vmem:[%s10328_s4 + $0x8] sm:$0x1] }
 0x2a7   :  { %4389 = vrot.lane.b32.xlu1 %v7840_v7, %s6826_s11  ;;  %v8110_v59 = vpop.permute.xlu0 %3571  ;;  %v10574_v7 = vld [vmem:[#allocation5_spill] sm:$0xff] }
 0x2a8   :  { %10571 = vst [vmem:[#allocation58_spill] sm:$0xff] %v8110_v59 }
 0x2a9   :  { %v8112_v60 = vpop.permute.xlu1 %3579  ;;  %4367 = vrot.lane.b32.xlu0 %v7885_v10, %s6826_s11  ;;  %v2402_v10 = vsel %vm114_vm0, %v2365_v52, %v2373_v32  ;;  %v10578_v52 = vld [vmem:[#allocation7_spill] sm:$0xff] }
 0x2aa   :  { %10572 = vst [vmem:[#allocation59_spill] sm:$0xff] %v8112_v60 }
 0x2ab   :  { %4105 = vrot.lane.b32.xlu1 %v7890_v56, %s6825_s10  ;;  %v2367_v17 = vpop.permute.xlu0 %2366 }
 0x2ad   :  { %v2375_v44 = vpop.permute.xlu1 %2374  ;;  %4383 = vrot.lane.b32.xlu0 %v7895_v42, %s6826_s11 }
 0x2ae   :  { %v2403_v46 = vsel %vm114_vm0, %v2367_v17, %v2375_v44 }
 0x2af   :  { %4121 = vrot.lane.b32.xlu1 %v7902_v3, %s6825_s10  ;;  %v2383_v59 = vpop.permute.xlu0 %2382  ;;  %v2421_v60 = vmul.f32 %v2403_v46, %v10574_v7  ;;  %v2394_v46 = vsel %vm114_vm0, %v2381_v19, %v2389_v47 }
 0x2b0   :  { %v2399_v42 = vsel %vm114_vm0, %v2375_v44, %v2383_v59  ;;  %v10577_v44 = vld [vmem:[#allocation4_spill] sm:$0xff] }
 0x2b1   :  { %v2391_v37 = vpop.permute.xlu1 %2390  ;;  %4365 = vrot.lane.b32.xlu0 %v7828_v45, %s6826_s11  ;;  %2461 = vmatprep.subr.mxu0 %v2421_v60  ;;  %v2422_v47 = vmul.f32 %v2399_v42, %v10578_v52  ;;  %v2397_v42 = vsel %vm114_vm0, %v7968_v27, %v7974_v26 }
 0x2b2   :  { %v2395_v22 = vsel %vm114_vm0, %v2383_v59, %v2391_v37  ;;  %v2407_v5 = vsel %vm114_vm0, %v2391_v37, %v2367_v17  ;;  %v2401_v17 = vsel %vm114_vm0, %v7966_v31, %v7968_v27  ;;  %v2398_v59 = vsel %vm114_vm0, %v2373_v32, %v2381_v19 }
 0x2b3   :  { %v2420_v4 = vmul.f32 %v2407_v5, %v10575_v54  ;;  %4371 = vrot.lane.b32.xlu1 %v7774_v23, %s6826_s11  ;;  %v8142_v60 = vpop.permute.xlu0 %3551  ;;  %v2423_v45 = vmul.f32 %v2395_v22, %v10577_v44  ;;  %v2417_v37 = vmul.f32 %v2402_v10, %v10574_v7  ;;  %v2400_v5 = vsel %vm114_vm0, %v7899_v25, %v7904_v1 }
 0x2b4   :  { %10576 = vst [vmem:[#allocation3_spill] sm:$0xff] %v8142_v60  ;;  %v2405_v22 = vsel %vm114_vm0, %v7976_v58, %v7966_v31  ;;  %v2393_v10 = vsel %vm114_vm0, %v7974_v26, %v7976_v58  ;;  %v2416_v32 = vmul.f32 %v2406_v8, %v10575_v54  ;;  %v2419_v19 = vmul.f32 %v2394_v46, %v10577_v44 }
 0x2b5   :  { %v8161_v60 = vpop.permute.xlu1 %3559  ;;  %4381 = vrot.lane.b32.xlu0 %v7836_v15, %s6826_s11  ;;  %2462 = vmatpush1.msra.mxu0 %v2420_v4  ;;  %v2418_v31 = vmul.f32 %v2398_v59, %v10578_v52  ;;  %v2413_v58 = vmul.f32 %v2401_v17, %v10574_v7  ;;  %v2404_v8 = vsel %vm114_vm0, %v7912_v29, %v7899_v25 }
 0x2b6   :  { %2550 = vmatprep.subr.mxu1 %v2423_v45  ;;  %2463 = vmatprep.subr.mxu0 %v2417_v37  ;;  %v2392_v45 = vsel %vm114_vm0, %v7910_v21, %v7912_v29  ;;  %v2412_v27 = vmul.f32 %v2405_v22, %v10575_v54  ;;  %v2396_v26 = vsel %vm114_vm0, %v7904_v1, %v7910_v21  ;;  %v2264_v29 = vld [vmem:[%s10327_s3 + $0x20] sm:$0xff] }
 0x2b7   :  { %2551 = vmatpush1.msra.mxu1 %v2422_v47  ;;  %4387 = vrot.lane.b32.xlu1 %v7784_v48, %s6826_s11  ;;  %v2303_v4 = vpop.permute.xlu0 %2302  ;;  %v2415_v17 = vmul.f32 %v2393_v10, %v10577_v44  ;;  %v2409_v59 = vmul.f32 %v2400_v5, %v10574_v7  ;;  %v2414_v37 = vmul.f32 %v2397_v42, %v10578_v52 }
 0x2b8   :  { %2464 = vmatpush1.msra.mxu0 %v2416_v32  ;;  %2552 = vmatprep.subr.mxu1 %v2419_v19  ;;  %v2408_v25 = vmul.f32 %v2404_v8, %v10575_v54  ;;  %v2411_v1 = vmul.f32 %v2392_v45, %v10577_v44  ;;  %v2410_v5 = vmul.f32 %v2396_v26, %v10578_v52  ;;  %v2265_v32 = vld [vmem:[%s10327_s3 + $0x28] sm:$0xff]  ;;  %v10579_v19 = vld [vmem:[#allocation8_spill] sm:$0xff] }
 0x2b9   :  { %2465 = vmatprep.subr.mxu0 %v2413_v58  ;;  %2553 = vmatpush1.msra.mxu1 %v2418_v31  ;;  %v8192_v46 = vpop.permute.xlu1 %3575  ;;  %v10580_v31 = vmov 0.0   ;;  %v2338_v45 = vsel %vm81_vm1, %v8054_v50, %v8056_v13 }
 0x2ba   :  { %4363 = vrot.lane.b32.xlu0 %v7769_v62, %s6826_s11  ;;  %2466 = vmatpush1.msra.mxu0 %v2412_v27 }
 0x2bb   :  { %2554 = vmatprep.subr.mxu1 %v2415_v17  ;;  %2467 = vmatprep.subr.mxu0 %v2409_v59  ;;  %v2319_v21 = vpop.permute.xlu0 %2318  ;;  %v10581_v17 = vld [vmem:[#allocation9_spill] sm:$0xff] }
 0x2bc   :  { %2555 = vmatpush1.msra.mxu1 %v2414_v37  ;;  %4375 = vrot.lane.b32.xlu1 %v7890_v56, %s6826_s11 }
 0x2bd   :  { %2468 = vmatpush1.msra.mxu0 %v2408_v25  ;;  %2556 = vmatprep.subr.mxu1 %v2411_v1  ;;  %v2311_v22 = vpop.permute.xlu1 %2310  ;;  %v2266_v25 = vld [vmem:[%s10327_s3 + $0x30] sm:$0xff]  ;;  %v10582_v1 = vld [vmem:[#allocation11_spill] sm:$0xff] }
 0x2be   :  { %6699 = vmatmul.mubr.msk.f32.vlgmr.msra.gmra.mxu0 %vm2424_vm9, %v2264_v29  ;;  %2557 = vmatpush1.msra.mxu1 %v2410_v5  ;;  %v2339_v47 = vsel %vm81_vm1, %v2303_v4, %v2311_v22  ;;  %v2335_v26 = vsel %vm81_vm1, %v2311_v22, %v2319_v21  ;;  %v10583_v22 = vld [vmem:[#allocation10_spill] sm:$0xff] }
 0x2bf   :  { %4379 = vrot.lane.b32.xlu0 %v7779_v51, %s6826_s11  ;;  %6703 = vmatmul.mubr.msk.f32.vlgmr.msra.gmra.mxu1 %vm2424_vm9, %v2264_v29  ;;  %v8213_v10 = vpop.permute.xlu0 %2811  ;;  %v2357_v42 = vmul.f32 %v2339_v47, %v10579_v19  ;;  %v2358_v47 = vmul.f32 %v2335_v26, %v10583_v22 }
 0x2c0   :  { %4391 = vrot.lane.b32.xlu1 %v7902_v3, %s6826_s11  ;;  %2507 = vmatprep.mubr.f32.mxu0 %v10580_v31 }
 0x2c1   :  { %2596 = vmatprep.mubr.f32.mxu1 %v10580_v31  ;;  %v2327_v58 = vpop.permute.xlu1 %2326  ;;  %2651 = vmatprep.subr.mxu0 %v2357_v42  ;;  %v2337_v42 = vsel %vm81_vm1, %v7982_v53, %v7984_v6 }
 0x2c2   :  { %6700 = vmatmul.mubr.msk.f32.gmra.mxu0 %vm2424_vm9, %v2265_v32  ;;  %v2331_v8 = vsel %vm81_vm1, %v2319_v21, %v2327_v58  ;;  %v2343_v27 = vsel %vm81_vm1, %v2327_v58, %v2303_v4  ;;  %v2330_v4 = vsel %vm81_vm1, %v8062_v34, %v8064_v9  ;;  %v2342_v21 = vsel %vm81_vm1, %v8064_v9, %v8054_v50 }
 0x2c3   :  { %v2356_v59 = vmul.f32 %v2343_v27, %v10581_v17  ;;  %4361 = vrot.lane.b32.xlu0 %v7704_v20, %s6826_s11  ;;  %6704 = vmatmul.mubr.msk.f32.gmra.mxu1 %vm2424_vm9, %v2265_v32  ;;  %v8238_v37 = vpop.permute.xlu0 %2827  ;;  %v2359_v29 = vmul.f32 %v2331_v8, %v10582_v1  ;;  %v2353_v32 = vmul.f32 %v2338_v45, %v10579_v19 }
 0x2c4   :  { %4369 = vrot.lane.b32.xlu1 %v7706_v41, %s6826_s11  ;;  %2513 = vmatprep.mubr.f32.mxu0 %v10580_v31  ;;  %v2334_v50 = vsel %vm81_vm1, %v8056_v13, %v8062_v34  ;;  %v2341_v58 = vsel %vm81_vm1, %v7992_v35, %v7982_v53  ;;  %v2352_v45 = vmul.f32 %v2342_v21, %v10581_v17  ;;  %v2267_v13 = vld [vmem:[%s10327_s3 + $0x38] sm:$0xff] }
 0x2c5   :  { %2602 = vmatprep.mubr.f32.mxu1 %v10580_v31  ;;  %v8256_v5 = vpop.permute.xlu1 %3833  ;;  %2652 = vmatpush1.msra.mxu0 %v2356_v59  ;;  %v2355_v8 = vmul.f32 %v2330_v4, %v10582_v1  ;;  %v2336_v34 = vsel %vm81_vm1, %v7918_v61, %v7920_v43  ;;  %v2340_v53 = vsel %vm81_vm1, %v7928_v38, %v7918_v61 }
 0x2c6   :  { %6701 = vmatmul.mubr.msk.f32.gmra.mxu0 %vm2424_vm9, %v2266_v25  ;;  %2740 = vmatprep.subr.mxu1 %v2359_v29  ;;  %v2329_v27 = vsel %vm81_vm1, %v7990_v57, %v7992_v35  ;;  %v2333_v59 = vsel %vm81_vm1, %v7984_v6, %v7990_v57  ;;  %v2349_v61 = vmul.f32 %v2337_v42, %v10579_v19 }
 0x2c7   :  { %4377 = vrot.lane.b32.xlu0 %v7712_v16, %s6826_s11  ;;  %6705 = vmatmul.mubr.msk.f32.gmra.mxu1 %vm2424_vm9, %v2266_v25  ;;  %v8272_v9 = vpop.permute.xlu0 %3081  ;;  %v2354_v25 = vmul.f32 %v2334_v50, %v10583_v22  ;;  %v2328_v35 = vsel %vm81_vm1, %v7926_v55, %v7928_v38  ;;  %v2348_v29 = vmul.f32 %v2341_v58, %v10581_v17 }
 0x2c8   :  { %2653 = vmatprep.subr.mxu0 %v2353_v32  ;;  %2741 = vmatpush1.msra.mxu1 %v2358_v47  ;;  %v2332_v6 = vsel %vm81_vm1, %v7920_v43, %v7926_v55  ;;  %v2351_v57 = vmul.f32 %v2329_v27, %v10582_v1  ;;  %v2345_v21 = vmul.f32 %v2336_v34, %v10579_v19  ;;  %v2260_v43 = vld [vmem:[%s10327_s3] sm:$0xff] }
 0x2c9   :  { %4385 = vrot.lane.b32.xlu1 %v7717_v36, %s6826_s11  ;;  %2519 = vmatprep.mubr.f32.mxu0 %v10580_v31  ;;  %v8298_v26 = vpop.permute.xlu1 %3849  ;;  %v2344_v38 = vmul.f32 %v2340_v53, %v10581_v17  ;;  %v2350_v47 = vmul.f32 %v2333_v59, %v10583_v22  ;;  %v2347_v42 = vmul.f32 %v2328_v35, %v10582_v1  ;;  %v2261_v53 = vld [vmem:[%s10327_s3 + $0x8] sm:$0xff] }
 0x2ca   :  { %2654 = vmatpush1.msra.mxu0 %v2352_v45  ;;  %2742 = vmatprep.subr.mxu1 %v2355_v8  ;;  %v2346_v50 = vmul.f32 %v2332_v6, %v10583_v22  ;;  %v10584_v45 = vld [vmem:[#allocation12_spill] sm:$0xff]  ;;  %v2847_v34 = vsel %vm528_vm3, %v8070_v18, %v8072_v0  ;;  %v10586_v6 = vld [vmem:[#allocation13_spill] sm:$0xff] }
 0x2cb   :  { %6702 = vmatmul.mubr.msk.f32.gmra.mxu0 %vm2424_vm9, %v2267_v13  ;;  %2608 = vmatprep.mubr.f32.mxu1 %v10580_v31  ;;  %v8313_v4 = vpop.permute.xlu0 %3097 }
 0x2cc   :  { %2655 = vmatprep.subr.mxu0 %v2349_v61  ;;  %2743 = vmatpush1.msra.mxu1 %v2354_v25  ;;  %v10585_v61 = vld [vmem:[#allocation14_spill] sm:$0xff] }
 0x2cd   :  { %6706 = vmatmul.mubr.msk.f32.gmra.mxu1 %vm2424_vm9, %v2267_v13  ;;  %2656 = vmatpush1.msra.mxu0 %v2348_v29  ;;  %v2820_v32 = vpop.permute.xlu1 %2819 }
 0x2ce   :  { %2744 = vmatprep.subr.mxu1 %v2351_v57  ;;  %2657 = vmatprep.subr.mxu0 %v2345_v21  ;;  %v2848_v55 = vsel %vm528_vm3, %v8213_v10, %v2820_v32  ;;  %v2844_v25 = vsel %vm528_vm3, %v2820_v32, %v8238_v37  ;;  %v2839_v21 = vsel %vm528_vm3, %v8078_v63, %v8080_v30 }
 0x2cf   :  { %2745 = vmatpush1.msra.mxu1 %v2350_v47  ;;  %2658 = vmatpush1.msra.mxu0 %v2344_v38  ;;  %v8332_v58 = vpop.permute.xlu0 %3557  ;;  %v2866_v8 = vmul.f32 %v2848_v55, %v10584_v45  ;;  %v2862_v47 = vmul.f32 %v2847_v34, %v10584_v45  ;;  %v2846_v32 = vsel %vm528_vm3, %v7998_v40, %v8000_v24 }
 0x2d0   :  { %2691 = vmatprep.mubr.f32.mxu0 %v10580_v31  ;;  %2746 = vmatprep.subr.mxu1 %v2347_v42  ;;  %v10587_v42 = vld [vmem:[#allocation15_spill] sm:$0xff]  ;;  %v2864_v55 = vmul.f32 %v2839_v21, %v10586_v6  ;;  %v2858_v34 = vmul.f32 %v2846_v32, %v10584_v45 }
 0x2d1   :  { %6707 = vmatmul.mubr.msk.f32.vlgmr.msra.gmra.mxu0 %vm2424_vm9, %v2260_v43  ;;  %2747 = vmatpush1.msra.mxu1 %v2346_v50  ;;  %v2836_v13 = vpop.permute.xlu1 %2835 }
 0x2d2   :  { %2780 = vmatprep.mubr.f32.mxu1 %v10580_v31  ;;  %2697 = vmatprep.mubr.f32.mxu0 %v10580_v31  ;;  %v2840_v27 = vsel %vm528_vm3, %v8238_v37, %v2836_v13  ;;  %v2852_v59 = vsel %vm528_vm3, %v2836_v13, %v8213_v10  ;;  %v6829_v10 = vmov 2   ;;  %v2851_v37 = vsel %vm528_vm3, %v8080_v30, %v8070_v18  ;;  %v2262_v18 = vld [vmem:[%s10327_s3 + $0x10] sm:$0xff] }
 0x2d3   :  { %6711 = vmatmul.mubr.msk.f32.vlgmr.msra.gmra.mxu1 %vm2424_vm9, %v2260_v43  ;;  %v2865_v35 = vmul.f32 %v2852_v59, %v10585_v61  ;;  %2905 = vmatprep.subr.mxu0 %v2866_v8  ;;  %v8357_v29 = vpop.permute.xlu0 %3573  ;;  %v2868_v57 = vmul.f32 %v2840_v27, %v10586_v6  ;;  %v2867_v43 = vmul.f32 %v2844_v25, %v10587_v42 }
 0x2d4   :  { %2786 = vmatprep.mubr.f32.mxu1 %v10580_v31  ;;  %6809 = vset.pattern.permute.xlu1 %v6829_v10  ;;  %v2843_v30 = vsel %vm528_vm3, %v8072_v0, %v8078_v63  ;;  %v2838_v8 = vsel %vm528_vm3, %v8006_v33, %v8008_v28  ;;  %v2861_v13 = vmul.f32 %v2851_v37, %v10585_v61 }
 0x2d5   :  { %6708 = vmatmul.mubr.msk.f32.gmra.mxu0 %vm2424_vm9, %v2261_v53  ;;  %v8371_v38 = vpop.permute.xlu1 %3831  ;;  %2994 = vmatprep.subr.mxu1 %v2868_v57  ;;  %v2842_v0 = vsel %vm528_vm3, %v8000_v24, %v8006_v33  ;;  %v2850_v63 = vsel %vm528_vm3, %v8008_v28, %v7998_v40  ;;  %v2845_v27 = vsel %vm528_vm3, %v7934_v11, %v7936_v39  ;;  %v2263_v40 = vld [vmem:[%s10327_s3 + $0x18] sm:$0xff] }
 0x2d6   :  { %2703 = vmatprep.mubr.f32.mxu0 %v10580_v31  ;;  %2906 = vmatpush1.msra.mxu0 %v2865_v35  ;;  %v2863_v59 = vmul.f32 %v2843_v30, %v10587_v42  ;;  %v2849_v24 = vsel %vm528_vm3, %v7944_v49, %v7934_v11  ;;  %v2860_v33 = vmul.f32 %v2838_v8, %v10586_v6  ;;  %v10589_v8 = vld [vmem:[#allocation52_spill] sm:$0xff] }
 0x2d7   :  { %6712 = vmatmul.mubr.msk.f32.gmra.mxu1 %vm2424_vm9, %v2261_v53  ;;  %2907 = vmatprep.subr.mxu0 %v2862_v47  ;;  %v8389_v50 = vpop.permute.xlu0 %3567  ;;  %v2837_v25 = vsel %vm528_vm3, %v7942_v12, %v7944_v49  ;;  %v2859_v35 = vmul.f32 %v2842_v0, %v10587_v42  ;;  %v2857_v57 = vmul.f32 %v2850_v63, %v10585_v61  ;;  %v2268_v47 = vld [vmem:[%s10327_s3 + $0x40] sm:$0xff]  ;;  %v2269_v0 = vld [vmem:[%s10327_s3 + $0x48] sm:$0xff] }
 0x2d8   :  { %2792 = vmatprep.mubr.f32.mxu1 %v10580_v31  ;;  %2995 = vmatpush1.msra.mxu1 %v2867_v43  ;;  %v2841_v11 = vsel %vm528_vm3, %v7936_v39, %v7942_v12  ;;  %v2854_v21 = vmul.f32 %v2845_v27, %v10584_v45  ;;  %v2853_v49 = vmul.f32 %v2849_v24, %v10585_v61 }
 0x2d9   :  { %6709 = vmatmul.mubr.msk.f32.gmra.mxu0 %vm2424_vm9, %v2262_v18  ;;  %2996 = vmatprep.subr.mxu1 %v2864_v55  ;;  %v8407_v53 = vpop.permute.xlu1 %3847  ;;  %v2856_v39 = vmul.f32 %v2837_v25, %v10586_v6  ;;  %v2855_v43 = vmul.f32 %v2841_v11, %v10587_v42 }
 0x2da   :  { %2709 = vmatprep.mubr.f32.mxu0 %v10580_v31  ;;  %2908 = vmatpush1.msra.mxu0 %v2861_v13  ;;  %v3117_v13 = vsel %vm767_vm4, %v10589_v8, %v8088_v14 }
 0x2db   :  { %6713 = vmatmul.mubr.msk.f32.gmra.mxu1 %vm2424_vm9, %v2262_v18  ;;  %2909 = vmatprep.subr.mxu0 %v2858_v34  ;;  %v8424_v28 = vpop.permute.xlu0 %3827  ;;  %v10588_v18 = vld [vmem:[#allocation16_spill] sm:$0xff] }
 0x2dc   :  { %2798 = vmatprep.mubr.f32.mxu1 %v10580_v31  ;;  %2997 = vmatpush1.msra.mxu1 %v2863_v59  ;;  %v10590_v59 = vld [vmem:[#allocation18_spill] sm:$0xff] }
 0x2dd   :  { %6710 = vmatmul.mubr.msk.f32.gmra.mxu0 %vm2424_vm9, %v2263_v40  ;;  %2998 = vmatprep.subr.mxu1 %v2860_v33  ;;  %v3090_v37 = vpop.permute.xlu1 %3089  ;;  %v10591_v33 = vld [vmem:[#allocation17_spill] sm:$0xff] }
 0x2de   :  { %2910 = vmatpush1.msra.mxu0 %v2857_v57  ;;  %2999 = vmatpush1.msra.mxu1 %v2859_v35  ;;  %v3118_v32 = vsel %vm767_vm4, %v8272_v9, %v3090_v37  ;;  %v3114_v27 = vsel %vm767_vm4, %v3090_v37, %v8313_v4  ;;  %v10592_v35 = vld [vmem:[#allocation55_spill] sm:$0xff]  ;;  %v10593_v57 = vld [vmem:[#allocation54_spill] sm:$0xff]  ;;  %v10594_v37 = vld [vmem:[#allocation48_spill] sm:$0xff] }
 0x2df   :  { %6714 = vmatmul.mubr.msk.f32.gmra.mxu1 %vm2424_vm9, %v2263_v40  ;;  %2911 = vmatprep.subr.mxu0 %v2854_v21  ;;  %v8448_v12 = vpop.permute.xlu0 %3843  ;;  %v3136_v30 = vmul.f32 %v3118_v32, %v10588_v18  ;;  %v3109_v11 = vsel %vm767_vm4, %v10593_v57, %v10592_v35  ;;  %v3132_v21 = vmul.f32 %v3117_v13, %v10588_v18  ;;  %v10596_v32 = vld [vmem:[#allocation19_spill] sm:$0xff] }
 0x2e0   :  { %2912 = vmatpush1.msra.mxu0 %v2853_v49  ;;  %2945 = vmatprep.mubr.f32.mxu0 %v10580_v31  ;;  %v10595_v49 = vld [vmem:[#allocation43_spill] sm:$0xff] }
 0x2e1   :  { %3000 = vmatprep.subr.mxu1 %v2856_v39  ;;  %6715 = vmatmul.mubr.msk.f32.vlgmr.msra.gmra.mxu0 %vm2424_vm9, %v2268_v47  ;;  %v3106_v55 = vpop.permute.xlu1 %3105  ;;  %v3137_v39 = vmul.f32 %v3114_v27, %v10596_v32  ;;  %v10597_v13 = vld [vmem:[#allocation51_spill] sm:$0xff] }
 0x2e2   :  { %3001 = vmatpush1.msra.mxu1 %v2855_v43  ;;  %3034 = vmatprep.mubr.f32.mxu1 %v10580_v31  ;;  %v3110_v63 = vsel %vm767_vm4, %v8313_v4, %v3106_v55  ;;  %v3122_v34 = vsel %vm767_vm4, %v3106_v55, %v8272_v9  ;;  %v3121_v9 = vsel %vm767_vm4, %v10592_v35, %v10589_v8  ;;  %v2270_v43 = vld [vmem:[%s10327_s3 + $0x50] sm:$0xff]  ;;  %v10599_v35 = vld [vmem:[#allocation42_spill] sm:$0xff] }
 0x2e3   :  { %6719 = vmatmul.mubr.msk.f32.vlgmr.msra.gmra.mxu1 %vm2424_vm9, %v2268_v47  ;;  %2951 = vmatprep.mubr.f32.mxu0 %v10580_v31  ;;  %v3135_v40 = vmul.f32 %v3122_v34, %v10590_v59  ;;  %v8474_v24 = vpop.permute.xlu0 %3825  ;;  %v3138_v25 = vmul.f32 %v3110_v63, %v10591_v33  ;;  %v3116_v47 = vsel %vm767_vm4, %v10595_v49, %v10594_v37  ;;  %v10598_v63 = vld [vmem:[#allocation46_spill] sm:$0xff] }
 0x2e4   :  { %3040 = vmatprep.mubr.f32.mxu1 %v10580_v31  ;;  %3175 = vmatprep.subr.mxu0 %v3136_v30  ;;  %v3113_v30 = vsel %vm767_vm4, %v8088_v14, %v10593_v57  ;;  %v3134_v55 = vmul.f32 %v3109_v11, %v10591_v33  ;;  %v3108_v34 = vsel %vm767_vm4, %v10598_v63, %v10597_v13  ;;  %v10600_v57 = vld [vmem:[#allocation39_spill] sm:$0xff] }
 0x2e5   :  { %6716 = vmatmul.mubr.msk.f32.gmra.mxu0 %vm2424_vm9, %v2269_v0  ;;  %v8487_v4 = vpop.permute.xlu1 %3829  ;;  %3264 = vmatprep.subr.mxu1 %v3138_v25  ;;  %v3131_v27 = vmul.f32 %v3121_v9, %v10590_v59  ;;  %v3112_v14 = vsel %vm767_vm4, %v10594_v37, %v10598_v63  ;;  %v3115_v11 = vsel %vm767_vm4, %v10600_v57, %v10599_v35  ;;  %v10601_v37 = vld [vmem:[#allocation44_spill] sm:$0xff] }
 0x2e6   :  { %2957 = vmatprep.mubr.f32.mxu0 %v10580_v31  ;;  %3176 = vmatpush1.msra.mxu0 %v3135_v40  ;;  %v3128_v40 = vmul.f32 %v3116_v47, %v10588_v18  ;;  %v3133_v9 = vmul.f32 %v3113_v30, %v10596_v32  ;;  %v3130_v47 = vmul.f32 %v3108_v34, %v10591_v33  ;;  %v10602_v30 = vld [vmem:[#allocation41_spill] sm:$0xff] }
 0x2e7   :  { %6720 = vmatmul.mubr.msk.f32.gmra.mxu1 %vm2424_vm9, %v2269_v0  ;;  %3177 = vmatprep.subr.mxu0 %v3132_v21  ;;  %v8505_v8 = vpop.permute.xlu0 %3841  ;;  %v3120_v0 = vsel %vm767_vm4, %v10597_v13, %v10595_v49  ;;  %v2271_v21 = vld [vmem:[%s10327_s3 + $0x58] sm:$0xff]  ;;  %v3119_v49 = vsel %vm767_vm4, %v10601_v37, %v10600_v57  ;;  %v3129_v13 = vmul.f32 %v3112_v14, %v10596_v32  ;;  %v2272_v14 = vld [vmem:[%s10327_s3 + $0x60] sm:$0xff] }
 0x2e8   :  { %3046 = vmatprep.mubr.f32.mxu1 %v10580_v31  ;;  %3265 = vmatpush1.msra.mxu1 %v3137_v39  ;;  %v3127_v63 = vmul.f32 %v3120_v0, %v10590_v59  ;;  %v3124_v34 = vmul.f32 %v3115_v11, %v10588_v18 }
 0x2e9   :  { %6717 = vmatmul.mubr.msk.f32.gmra.mxu0 %vm2424_vm9, %v2270_v43  ;;  %3266 = vmatprep.subr.mxu1 %v3134_v55  ;;  %v8523_v25 = vpop.permute.xlu1 %3845  ;;  %v3107_v55 = vsel %vm767_vm4, %v10602_v30, %v10601_v37  ;;  %v2273_v37 = vld [vmem:[%s10327_s3 + $0x68] sm:$0xff] }
 0x2ea   :  { %2963 = vmatprep.mubr.f32.mxu0 %v10580_v31  ;;  %3178 = vmatpush1.msra.mxu0 %v3131_v27  ;;  %v3126_v0 = vmul.f32 %v3107_v55, %v10591_v33  ;;  %v10607_v55 = vld [vmem:[#allocation38_spill] sm:$0xff]  ;;  %v3587_v33 = vsel %vm1212_vm5, %v8161_v60, %v8389_v50 }
 0x2eb   :  { %6721 = vmatmul.mubr.msk.f32.gmra.mxu1 %vm2424_vm9, %v2270_v43  ;;  %3179 = vmatprep.subr.mxu0 %v3128_v40  ;;  %v8540_v39 = vpop.permute.xlu0 %3823  ;;  %v3111_v43 = vsel %vm767_vm4, %v10599_v35, %v10602_v30  ;;  %v3123_v40 = vmul.f32 %v3119_v49, %v10590_v59  ;;  %v10604_v49 = vld [vmem:[#allocation36_spill] sm:$0xff]  ;;  %v10618_v59 = vld [vmem:[#allocation23_spill] sm:$0xff] }
 0x2ec   :  { %3052 = vmatprep.mubr.f32.mxu1 %v10580_v31  ;;  %3267 = vmatpush1.msra.mxu1 %v3133_v9  ;;  %v3125_v57 = vmul.f32 %v3111_v43, %v10596_v32 }
 0x2ed   :  { %6718 = vmatmul.mubr.msk.f32.gmra.mxu0 %vm2424_vm9, %v2271_v21  ;;  %3268 = vmatprep.subr.mxu1 %v3130_v47  ;;  %v8555_v27 = vpop.permute.xlu1 %4103  ;;  %v10605_v47 = vld [vmem:[#allocation37_spill] sm:$0xff] }
 0x2ee   :  { %3180 = vmatpush1.msra.mxu0 %v3127_v63  ;;  %3269 = vmatpush1.msra.mxu1 %v3129_v13  ;;  %v2274_v63 = vld [vmem:[%s10327_s3 + $0x70] sm:$0xff] }
 0x2ef   :  { %6722 = vmatmul.mubr.msk.f32.gmra.mxu1 %vm2424_vm9, %v2271_v21  ;;  %3181 = vmatprep.subr.mxu0 %v3124_v34  ;;  %v8563_v35 = vpop.permute.xlu0 %3839  ;;  %v10603_v21 = vld [vmem:[#allocation40_spill] sm:$0xff]  ;;  %v10609_v34 = vld [vmem:[#allocation58_spill] sm:$0xff] }
 0x2f0   :  { %3182 = vmatpush1.msra.mxu0 %v3123_v40  ;;  %3215 = vmatprep.mubr.f32.mxu0 %v10580_v31  ;;  %v10610_v40 = vld [vmem:[#allocation57_spill] sm:$0xff] }
 0x2f1   :  { %3270 = vmatprep.subr.mxu1 %v3126_v0  ;;  %6723 = vmatmul.mubr.msk.f32.vlgmr.msra.gmra.mxu0 %vm2424_vm9, %v2272_v14  ;;  %v8568_v11 = vpop.permute.xlu1 %4119  ;;  %v2276_v0 = vld [vmem:[%s10327_s3 + $0x80] sm:$0xff] }
 0x2f2   :  { %3271 = vmatpush1.msra.mxu1 %v3125_v57  ;;  %3304 = vmatprep.mubr.f32.mxu1 %v10580_v31  ;;  %v10611_v57 = vld [vmem:[#allocation22_spill] sm:$0xff] }
 0x2f3   :  { %3381 = vmatprep.subr.mxu0 %v7890_v56  ;;  %6727 = vmatmul.mubr.msk.f32.vlgmr.msra.gmra.mxu1 %vm2424_vm9, %v2272_v14  ;;  %v8573_v9 = vpop.permute.xlu0 %3821  ;;  %v10606_v56 = vld [vmem:[#allocation50_spill] sm:$0xff]  ;;  %v3589_v14 = vsel %vm1212_vm5, %v10610_v40, %v10609_v34 }
 0x2f4   :  { %3382 = vmatpush1.msra.mxu0 %v10603_v21  ;;  %3470 = vmatprep.subr.mxu1 %v7902_v3 }
 0x2f5   :  { %3383 = vmatprep.subr.mxu0 %v10604_v49  ;;  %3471 = vmatpush1.msra.mxu1 %v10605_v47  ;;  %v8582_v30 = vpop.permute.xlu1 %4101  ;;  %v10612_v49 = vld [vmem:[#allocation56_spill] sm:$0xff] }
 0x2f6   :  { %3221 = vmatprep.mubr.f32.mxu0 %v10580_v31  ;;  %3384 = vmatpush1.msra.mxu0 %v10606_v56  ;;  %v3593_v47 = vsel %vm1212_vm5, %v10612_v49, %v10610_v40 }
 0x2f7   :  { %3472 = vmatprep.subr.mxu1 %v10607_v55  ;;  %6724 = vmatmul.mubr.msk.f32.gmra.mxu0 %vm2424_vm9, %v2273_v37  ;;  %v8588_v13 = vpop.permute.xlu0 %3837  ;;  %v10613_v55 = vld [vmem:[#allocation21_spill] sm:$0xff]  ;;  %v3607_v18 = vmul.f32 %v3593_v47, %v10611_v57  ;;  %v10617_v47 = vld [vmem:[#allocation59_spill] sm:$0xff] }
 0x2f8   :  { %3310 = vmatprep.mubr.f32.mxu1 %v10580_v31  ;;  %3385 = vmatprep.subr.mxu0 %v7774_v23 }
 0x2f9   :  { %3473 = vmatpush1.msra.mxu1 %v7836_v15  ;;  %3386 = vmatpush1.msra.mxu0 %v7769_v62  ;;  %v8594_v3 = vpop.permute.xlu1 %4117 }
 0x2fa   :  { %6728 = vmatmul.mubr.msk.f32.gmra.mxu1 %vm2424_vm9, %v2273_v37  ;;  %3474 = vmatprep.subr.mxu1 %v7784_v48  ;;  %v8629_v48 = vld [vmem:[%s10326_s5 + $0x10] sm:$0xff] }
 0x2fb   :  { %3387 = vmatprep.subr.mxu0 %v7706_v41  ;;  %3475 = vmatpush1.msra.mxu1 %v7779_v51  ;;  %v8603_v43 = vpop.permute.xlu0 %4097  ;;  %v2275_v41 = vld [vmem:[%s10327_s3 + $0x78] sm:$0xff]  ;;  %v10608_v51 = vld [vmem:[#allocation20_spill] sm:$0xff] }
 0x2fc   :  { %3227 = vmatprep.mubr.f32.mxu0 %v10580_v31  ;;  %3388 = vmatpush1.msra.mxu0 %v7704_v20 }
 0x2fd   :  { %3476 = vmatprep.subr.mxu1 %v7717_v36  ;;  %6725 = vmatmul.mubr.msk.f32.gmra.mxu0 %vm2424_vm9, %v2274_v63  ;;  %v3566_v62 = vpop.permute.xlu1 %3565 }
 0x2fe   :  { %3316 = vmatprep.mubr.f32.mxu1 %v10580_v31  ;;  %3477 = vmatpush1.msra.mxu1 %v7712_v16  ;;  %v3590_v23 = vsel %vm1212_vm5, %v3566_v62, %v8357_v29  ;;  %v3594_v20 = vsel %vm1212_vm5, %v8332_v58, %v3566_v62  ;;  %v8657_v62 = vld [vmem:[%s10326_s5 + $0x18] sm:$0xff] }
 0x2ff   :  { %6729 = vmatmul.mubr.msk.f32.gmra.mxu1 %vm2424_vm9, %v2274_v63  ;;  %3233 = vmatprep.mubr.f32.mxu0 %v10580_v31  ;;  %v8622_v36 = vpop.permute.xlu0 %4113  ;;  %v3612_v16 = vmul.f32 %v3590_v23, %v10608_v51  ;;  %v3611_v21 = vmul.f32 %v3594_v20, %v10611_v57  ;;  %v10616_v20 = vld [vmem:[#allocation45_spill] sm:$0xff] }
 0x300   :  { %3322 = vmatprep.mubr.f32.mxu1 %v10580_v31  ;;  %4640 = vperm.xlu1 %6809, %v8629_v48  }
 0x301   :  { %6726 = vmatmul.mubr.msk.f32.gmra.mxu0 %vm2424_vm9, %v2275_v41  ;;  %v3582_v15 = vpop.permute.xlu1 %3581  ;;  %3651 = vmatprep.subr.mxu0 %v3612_v16 }
 0x302   :  { %3421 = vmatprep.mubr.f32.mxu0 %v10580_v31  ;;  %v3598_v37 = vsel %vm1212_vm5, %v3582_v15, %v8332_v58  ;;  %6808 = vset.pattern.permute.xlu0 %v6829_v10  ;;  %v10614_v58 = vld [vmem:[#allocation49_spill] sm:$0xff]  ;;  %v3586_v40 = vsel %vm1212_vm5, %v8357_v29, %v3582_v15 }
 0x303   :  { %6730 = vmatmul.mubr.msk.f32.gmra.mxu1 %vm2424_vm9, %v2275_v41  ;;  %v8651_v56 = vpop.permute.xlu0 %4095  ;;  %v3614_v63 = vmul.f32 %v3598_v37, %v10613_v55  ;;  %4644 = vperm.xlu0 %6808, %v8657_v62   ;;  %v10615_v10 = vld [vmem:[#allocation53_spill] sm:$0xff]  ;;  %v8668_v41 = vld [vmem:[%s10326_s5 + $0x8] sm:$0xff]  ;;  %v3608_v37 = vmul.f32 %v3589_v14, %v10608_v51  ;;  %v3613_v42 = vmul.f32 %v3586_v40, %v10618_v59 }
 0x304   :  { %v3588_v23 = vsel %vm1212_vm5, %v10615_v10, %v10614_v58  ;;  %3510 = vmatprep.mubr.f32.mxu1 %v10580_v31  ;;  %4636 = vperm.xlu1 %6809, %v8668_v41   ;;  %v3592_v16 = vsel %vm1212_vm5, %v10616_v20, %v10615_v10  ;;  %v2277_v10 = vld [vmem:[%s10327_s3 + $0x88] sm:$0xff] }
 0x305   :  { %6731 = vmatmul.mubr.msk.f32.vlgmr.msra.gmra.mxu0 %vm2424_vm9, %v2276_v0  ;;  %v8680_v32 = vpop.permute.xlu1 %4099  ;;  %3740 = vmatprep.subr.mxu1 %v3614_v63  ;;  %v3604_v29 = vmul.f32 %v3588_v23, %v10608_v51  ;;  %v3603_v14 = vmul.f32 %v3592_v16, %v10611_v57  ;;  %v3597_v63 = vsel %vm1212_vm5, %v10617_v47, %v10612_v49  ;;  %v2278_v49 = vld [vmem:[%s10327_s3 + $0x90] sm:$0xff]  ;;  %v10620_v40 = vld [vmem:[#allocation47_spill] sm:$0xff] }
 0x306   :  { %3427 = vmatprep.mubr.f32.mxu0 %v10580_v31  ;;  %3652 = vmatpush1.msra.mxu0 %v3611_v21  ;;  %v10619_v21 = vld [vmem:[#allocation3_spill] sm:$0xff]  ;;  %v3600_v23 = vmul.f32 %v3587_v33, %v10608_v51 }
 0x307   :  { %6735 = vmatmul.mubr.msk.f32.vlgmr.msra.gmra.mxu1 %vm2424_vm9, %v2276_v0  ;;  %3653 = vmatprep.subr.mxu0 %v3608_v37  ;;  %v8693_v15 = vpop.permute.xlu0 %4111  ;;  %v3591_v0 = vsel %vm1212_vm5, %v10619_v21, %v8161_v60  ;;  %v3610_v60 = vmul.f32 %v3597_v63, %v10613_v55  ;;  %v3596_v37 = vsel %vm1212_vm5, %v10620_v40, %v10616_v20 }
 0x308   :  { %3516 = vmatprep.mubr.f32.mxu1 %v10580_v31  ;;  %3654 = vmatpush1.msra.mxu0 %v3607_v18  ;;  %v3585_v18 = vsel %vm1212_vm5, %v10609_v34, %v10617_v47  ;;  %v3584_v34 = vsel %vm1212_vm5, %v10614_v58, %v10620_v40  ;;  %v3595_v20 = vsel %vm1212_vm5, %v8192_v46, %v10619_v21 }
 0x309   :  { %6732 = vmatmul.mubr.msk.f32.gmra.mxu0 %vm2424_vm9, %v2277_v10  ;;  %3655 = vmatprep.subr.mxu0 %v3604_v29  ;;  %v8708_v16 = vpop.permute.xlu1 %4115  ;;  %v3599_v29 = vmul.f32 %v3591_v0, %v10611_v57  ;;  %v3583_v47 = vsel %vm1212_vm5, %v8389_v50, %v8192_v46  ;;  %v3606_v63 = vmul.f32 %v3596_v37, %v10613_v55 }
 0x30a   :  { %3433 = vmatprep.mubr.f32.mxu0 %v10580_v31  ;;  %3656 = vmatpush1.msra.mxu0 %v3603_v14  ;;  %v3609_v14 = vmul.f32 %v3585_v18, %v10618_v59  ;;  %v3605_v18 = vmul.f32 %v3584_v34, %v10618_v59  ;;  %v3602_v46 = vmul.f32 %v3595_v20, %v10613_v55  ;;  %v10622_v34 = vld [vmem:[#allocation26_spill] sm:$0xff] }
 0x30b   :  { %6736 = vmatmul.mubr.msk.f32.gmra.mxu1 %vm2424_vm9, %v2277_v10  ;;  %3657 = vmatprep.subr.mxu0 %v3600_v23  ;;  %v8720_v33 = vpop.permute.xlu0 %4093  ;;  %v6830_v23 = vmov 3   ;;  %v3601_v40 = vmul.f32 %v3583_v47, %v10618_v59  ;;  %v3859_v37 = vsel %vm1451_vm6, %v8256_v5, %v8505_v8  ;;  %v3858_v47 = vsel %vm1451_vm6, %v8371_v38, %v8563_v35 }
 0x30c   :  { %3522 = vmatprep.mubr.f32.mxu1 %v10580_v31  ;;  %3741 = vmatpush1.msra.mxu1 %v3613_v42  ;;  %v2279_v42 = vld [vmem:[%s10327_s3 + $0x98] sm:$0xff] }
 0x30d   :  { %6733 = vmatmul.mubr.msk.f32.gmra.mxu0 %vm2424_vm9, %v2278_v49  ;;  %3742 = vmatprep.subr.mxu1 %v3610_v60  ;;  %v3836_v10 = vpop.permute.xlu1 %3835 }
 0x30e   :  { %3439 = vmatprep.mubr.f32.mxu0 %v10580_v31  ;;  %3658 = vmatpush1.msra.mxu0 %v3599_v29  ;;  %v3860_v58 = vsel %vm1451_vm6, %v3836_v10, %v8448_v12  ;;  %v3864_v21 = vsel %vm1451_vm6, %v8424_v28, %v3836_v10  ;;  %v2280_v29 = vld [vmem:[%s10327_s3 + $0xa0] sm:$0xff] }
 0x30f   :  { %6737 = vmatmul.mubr.msk.f32.gmra.mxu1 %vm2424_vm9, %v2278_v49  ;;  %v8754_v0 = vpop.permute.xlu0 %4109  ;;  %6810 = vset.pattern.permute.xlu1 %v6830_v23  ;;  %v10621_v49 = vld [vmem:[#allocation24_spill] sm:$0xff]  ;;  %v3881_v10 = vmul.f32 %v3864_v21, %v10622_v34  ;;  %v3862_v21 = vsel %vm1451_vm6, %v8540_v39, %v8371_v38  ;;  %v3857_v38 = vsel %vm1451_vm6, %v8487_v4, %v8588_v13 }
 0x310   :  { %3528 = vmatprep.mubr.f32.mxu1 %v10580_v31  ;;  %3743 = vmatpush1.msra.mxu1 %v3609_v14  ;;  %v3882_v60 = vmul.f32 %v3860_v58, %v10621_v49  ;;  %v3863_v14 = vsel %vm1451_vm6, %v8474_v24, %v8256_v5 }
 0x311   :  { %6734 = vmatmul.mubr.msk.f32.gmra.mxu0 %vm2424_vm9, %v2279_v42  ;;  %3744 = vmatprep.subr.mxu1 %v3606_v63  ;;  %v3852_v50 = vpop.permute.xlu1 %3851  ;;  %v3877_v63 = vmul.f32 %v3863_v14, %v10622_v34 }
 0x312   :  { %3745 = vmatpush1.msra.mxu1 %v3605_v18  ;;  %3691 = vmatprep.mubr.f32.mxu0 %v10580_v31  ;;  %v3868_v20 = vsel %vm1451_vm6, %v3852_v50, %v8424_v28  ;;  %v3856_v5 = vsel %vm1451_vm6, %v8448_v12, %v3852_v50  ;;  %v2281_v18 = vld [vmem:[%s10327_s3 + $0xa8] sm:$0xff]  ;;  %v10623_v12 = vld [vmem:[#allocation25_spill] sm:$0xff]  ;;  %v3874_v50 = vmul.f32 %v3858_v47, %v10621_v49  ;;  %v2282_v47 = vld [vmem:[%s10327_s3 + $0xb0] sm:$0xff] }
 0x313   :  { %6738 = vmatmul.mubr.msk.f32.gmra.mxu1 %vm2424_vm9, %v2279_v42  ;;  %3746 = vmatprep.subr.mxu1 %v3602_v46  ;;  %v8780_v58 = vpop.permute.xlu0 %4091  ;;  %v3878_v42 = vmul.f32 %v3859_v37, %v10621_v49  ;;  %v3884_v46 = vmul.f32 %v3868_v20, %v10623_v12  ;;  %v3861_v20 = vsel %vm1451_vm6, %v8573_v9, %v8487_v4 }
 0x314   :  { %3747 = vmatpush1.msra.mxu1 %v3601_v40  ;;  %3780 = vmatprep.mubr.f32.mxu1 %v10580_v31  ;;  %v10624_v40 = vld [vmem:[#allocation27_spill] sm:$0xff]  ;;  %v3866_v4 = vsel %vm1451_vm6, %v8407_v53, %v8540_v39  ;;  %v3865_v39 = vsel %vm1451_vm6, %v8523_v25, %v8573_v9 }
 0x315   :  { %6739 = vmatmul.mubr.msk.f32.vlgmr.msra.gmra.mxu0 %vm2424_vm9, %v2280_v29  ;;  %3921 = vmatprep.subr.mxu0 %v3882_v60  ;;  %v8792_v28 = vpop.permute.xlu1 %4373  ;;  %v3883_v37 = vmul.f32 %v3856_v5, %v10624_v40  ;;  %v3870_v5 = vmul.f32 %v3857_v38, %v10621_v49  ;;  %v3876_v9 = vmul.f32 %v3866_v4, %v10623_v12 }
 0x316   :  { %3697 = vmatprep.mubr.f32.mxu0 %v10580_v31  ;;  %3922 = vmatpush1.msra.mxu0 %v3881_v10  ;;  %v3873_v10 = vmul.f32 %v3862_v21, %v10622_v34 }
 0x317   :  { %6743 = vmatmul.mubr.msk.f32.vlgmr.msra.gmra.mxu1 %vm2424_vm9, %v2280_v29  ;;  %3923 = vmatprep.subr.mxu0 %v3878_v42  ;;  %v8806_v60 = vpop.permute.xlu0 %4107  ;;  %v3867_v29 = vsel %vm1451_vm6, %v8298_v26, %v8474_v24  ;;  %v3855_v24 = vsel %vm1451_vm6, %v8505_v8, %v8298_v26  ;;  %v3854_v26 = vsel %vm1451_vm6, %v8563_v35, %v8407_v53  ;;  %v2283_v53 = vld [vmem:[%s10327_s3 + $0xb8] sm:$0xff] }
 0x318   :  { %3786 = vmatprep.mubr.f32.mxu1 %v10580_v31  ;;  %3924 = vmatpush1.msra.mxu0 %v3877_v63  ;;  %v3880_v63 = vmul.f32 %v3867_v29, %v10623_v12  ;;  %v3869_v8 = vmul.f32 %v3861_v20, %v10622_v34  ;;  %v10625_v29 = vld [vmem:[#allocation28_spill] sm:$0xff] }
 0x319   :  { %6740 = vmatmul.mubr.msk.f32.gmra.mxu0 %vm2424_vm9, %v2281_v18  ;;  %3925 = vmatprep.subr.mxu0 %v3874_v50  ;;  %v8820_v14 = vpop.permute.xlu1 %4389 }
 0x31a   :  { %3703 = vmatprep.mubr.f32.mxu0 %v10580_v31  ;;  %4010 = vmatprep.subr.mxu1 %v3884_v46  ;;  %v3853_v46 = vsel %vm1451_vm6, %v8588_v13, %v8523_v25  ;;  %v3872_v25 = vmul.f32 %v3865_v39, %v10623_v12 }
 0x31b   :  { %6744 = vmatmul.mubr.msk.f32.gmra.mxu1 %vm2424_vm9, %v2281_v18  ;;  %3926 = vmatpush1.msra.mxu0 %v3873_v10  ;;  %v8836_v42 = vpop.permute.xlu0 %4367  ;;  %v3879_v18 = vmul.f32 %v3855_v24, %v10624_v40  ;;  %v3871_v20 = vmul.f32 %v3853_v46, %v10624_v40  ;;  %v2284_v24 = vld [vmem:[%s10327_s3 + $0xc0] sm:$0xff] }
 0x31c   :  { %3792 = vmatprep.mubr.f32.mxu1 %v10580_v31  ;;  %4011 = vmatpush1.msra.mxu1 %v3883_v37  ;;  %v3875_v37 = vmul.f32 %v3854_v26, %v10624_v40 }
 0x31d   :  { %6741 = vmatmul.mubr.msk.f32.gmra.mxu0 %vm2424_vm9, %v2282_v47  ;;  %3927 = vmatprep.subr.mxu0 %v3870_v5  ;;  %v4106_v21 = vpop.permute.xlu1 %4105  ;;  %v10626_v5 = vld [vmem:[#allocation30_spill] sm:$0xff] }
 0x31e   :  { %3709 = vmatprep.mubr.f32.mxu0 %v10580_v31  ;;  %4012 = vmatprep.subr.mxu1 %v3880_v63  ;;  %v4130_v35 = vsel %vm1690_vm7, %v4106_v21, %v8622_v36  ;;  %v4134_v50 = vsel %vm1690_vm7, %v8603_v43, %v4106_v21  ;;  %v4133_v63 = vsel %vm1690_vm7, %v8651_v56, %v8555_v27 }
 0x31f   :  { %6745 = vmatmul.mubr.msk.f32.gmra.mxu1 %vm2424_vm9, %v2282_v47  ;;  %3928 = vmatpush1.msra.mxu0 %v3869_v8  ;;  %v8871_v38 = vpop.permute.xlu0 %4383  ;;  %v4152_v10 = vmul.f32 %v4130_v35, %v10625_v29  ;;  %v4129_v47 = vsel %vm1690_vm7, %v8555_v27, %v8693_v15  ;;  %v4151_v4 = vmul.f32 %v4134_v50, %v10626_v5  ;;  %v2285_v35 = vld [vmem:[%s10327_s3 + $0xc8] sm:$0xff] }
 0x320   :  { %3798 = vmatprep.mubr.f32.mxu1 %v10580_v31  ;;  %4013 = vmatpush1.msra.mxu1 %v3879_v18  ;;  %v4128_v21 = vsel %vm1690_vm7, %v8582_v30, %v8754_v0  ;;  %v4148_v18 = vmul.f32 %v4129_v47, %v10625_v29  ;;  %v4147_v39 = vmul.f32 %v4133_v63, %v10626_v5 }
 0x321   :  { %6742 = vmatmul.mubr.msk.f32.gmra.mxu0 %vm2424_vm9, %v2283_v53  ;;  %4014 = vmatprep.subr.mxu1 %v3876_v9  ;;  %v4122_v13 = vpop.permute.xlu1 %4121  ;;  %v4144_v9 = vmul.f32 %v4128_v21, %v10625_v29  ;;  %v4131_v47 = vsel %vm1690_vm7, %v8780_v58, %v8680_v32  ;;  %v4135_v21 = vsel %vm1690_vm7, %v8708_v16, %v8780_v58 }
 0x322   :  { %4015 = vmatpush1.msra.mxu1 %v3875_v37  ;;  %3961 = vmatprep.mubr.f32.mxu0 %v10580_v31  ;;  %v4138_v26 = vsel %vm1690_vm7, %v4122_v13, %v8603_v43  ;;  %v4126_v27 = vsel %vm1690_vm7, %v8622_v36, %v4122_v13  ;;  %v10627_v36 = vld [vmem:[#allocation29_spill] sm:$0xff]  ;;  %v10628_v37 = vld [vmem:[#allocation31_spill] sm:$0xff]  ;;  %v4137_v13 = vsel %vm1690_vm7, %v8568_v11, %v8651_v56 }
 0x323   :  { %6746 = vmatmul.mubr.msk.f32.gmra.mxu1 %vm2424_vm9, %v2283_v53  ;;  %4016 = vmatprep.subr.mxu1 %v3872_v25  ;;  %v8896_v8 = vpop.permute.xlu0 %4365  ;;  %v4132_v53 = vsel %vm1690_vm7, %v8720_v33, %v8582_v30  ;;  %v4154_v46 = vmul.f32 %v4138_v26, %v10627_v36  ;;  %v4127_v30 = vsel %vm1690_vm7, %v8680_v32, %v8806_v60 }
 0x324   :  { %4017 = vmatpush1.msra.mxu1 %v3871_v20  ;;  %4050 = vmatprep.mubr.f32.mxu1 %v10580_v31  ;;  %v4153_v25 = vmul.f32 %v4126_v27, %v10628_v37  ;;  %v4125_v56 = vsel %vm1690_vm7, %v8693_v15, %v8568_v11  ;;  %v4140_v32 = vmul.f32 %v4127_v30, %v10625_v29  ;;  %v2287_v27 = vld [vmem:[%s10327_s3 + $0xd8] sm:$0xff] }
 0x325   :  { %6747 = vmatmul.mubr.msk.f32.vlgmr.msra.gmra.mxu0 %vm2424_vm9, %v2284_v24  ;;  %4191 = vmatprep.subr.mxu0 %v4152_v10  ;;  %v8908_v43 = vpop.permute.xlu1 %4371  ;;  %v4143_v10 = vmul.f32 %v4132_v53, %v10626_v5  ;;  %v4150_v63 = vmul.f32 %v4137_v13, %v10627_v36  ;;  %v4124_v11 = vsel %vm1690_vm7, %v8754_v0, %v8594_v3  ;;  %v10630_v13 = vld [vmem:[#allocation34_spill] sm:$0xff] }
 0x326   :  { %3967 = vmatprep.mubr.f32.mxu0 %v10580_v31  ;;  %4192 = vmatpush1.msra.mxu0 %v4151_v4  ;;  %v4136_v4 = vsel %vm1690_vm7, %v8594_v3, %v8720_v33  ;;  %v4139_v15 = vmul.f32 %v4131_v47, %v10626_v5  ;;  %v4149_v33 = vmul.f32 %v4125_v56, %v10628_v37 }
 0x327   :  { %6751 = vmatmul.mubr.msk.f32.vlgmr.msra.gmra.mxu1 %vm2424_vm9, %v2284_v24  ;;  %4193 = vmatprep.subr.mxu0 %v4148_v18  ;;  %v8922_v50 = vpop.permute.xlu0 %4381  ;;  %v2286_v24 = vld [vmem:[%s10327_s3 + $0xd0] sm:$0xff]  ;;  %v4146_v3 = vmul.f32 %v4136_v4, %v10627_v36  ;;  %v4123_v18 = vsel %vm1690_vm7, %v8806_v60, %v8708_v16  ;;  %v4145_v53 = vmul.f32 %v4124_v11, %v10628_v37 }
 0x328   :  { %4056 = vmatprep.mubr.f32.mxu1 %v10580_v31  ;;  %4194 = vmatpush1.msra.mxu0 %v4147_v39  ;;  %v4142_v16 = vmul.f32 %v4135_v21, %v10627_v36  ;;  %v4399_v30 = vsel %vm1929_vm8, %v8792_v28, %v8922_v50  ;;  %v10631_v21 = vld [vmem:[#allocation33_spill] sm:$0xff] }
 0x329   :  { %6748 = vmatmul.mubr.msk.f32.gmra.mxu0 %vm2424_vm9, %v2285_v35  ;;  %4195 = vmatprep.subr.mxu0 %v4144_v9  ;;  %v8936_v20 = vpop.permute.xlu1 %4387  ;;  %v4141_v9 = vmul.f32 %v4123_v18, %v10628_v37  ;;  %v4395_v18 = vsel %vm1929_vm8, %v8922_v50, %v8820_v14 }
 0x32a   :  { %3973 = vmatprep.mubr.f32.mxu0 %v10580_v31  ;;  %4280 = vmatprep.subr.mxu1 %v4154_v46 }
 0x32b   :  { %6752 = vmatmul.mubr.msk.f32.gmra.mxu1 %vm2424_vm9, %v2285_v35  ;;  %4196 = vmatpush1.msra.mxu0 %v4143_v10  ;;  %v10629_v35 = vld [vmem:[#allocation32_spill] sm:$0xff] }
 0x32c   :  { %4062 = vmatprep.mubr.f32.mxu1 %v10580_v31  ;;  %4281 = vmatpush1.msra.mxu1 %v4153_v25  ;;  %v4364_v26 = vpop.permute.xlu0 %4363  ;;  %v2288_v25 = vld [vmem:[%s10327_s3 + $0xe0] sm:$0xff] }
 0x32d   :  { %6749 = vmatmul.mubr.msk.f32.gmra.mxu0 %vm2424_vm9, %v2286_v24  ;;  %4197 = vmatprep.subr.mxu0 %v4140_v32  ;;  %v4418_v32 = vmul.f32 %v4399_v30, %v10629_v35 }
 0x32e   :  { %3979 = vmatprep.mubr.f32.mxu0 %v10580_v31  ;;  %4282 = vmatprep.subr.mxu1 %v4150_v63  ;;  %v4376_v0 = vpop.permute.xlu1 %4375 }
 0x32f   :  { %6753 = vmatmul.mubr.msk.f32.gmra.mxu1 %vm2424_vm9, %v2286_v24  ;;  %4198 = vmatpush1.msra.mxu0 %v4139_v15  ;;  %v4400_v58 = vsel %vm1929_vm8, %v4376_v0, %v8871_v38  ;;  %v4404_v39 = vsel %vm1929_vm8, %v8836_v42, %v4376_v0  ;;  %v4403_v24 = vsel %vm1929_vm8, %v8896_v8, %v8792_v28  ;;  %v2289_v15 = vld [vmem:[%s10327_s3 + $0xe8] sm:$0xff] }
 0x330   :  { %4068 = vmatprep.mubr.f32.mxu1 %v10580_v31  ;;  %4283 = vmatpush1.msra.mxu1 %v4149_v33  ;;  %v4422_v46 = vmul.f32 %v4400_v58, %v10629_v35  ;;  %v4421_v10 = vmul.f32 %v4404_v39, %v10630_v13  ;;  %v4417_v11 = vmul.f32 %v4403_v24, %v10630_v13 }
 0x331   :  { %6750 = vmatmul.mubr.msk.f32.gmra.mxu0 %vm2424_vm9, %v2287_v27  ;;  %4284 = vmatprep.subr.mxu1 %v4146_v3  ;;  %v4380_v60 = vpop.permute.xlu0 %4379  ;;  %v10632_v3 = vld [vmem:[#allocation35_spill] sm:$0xff]  ;;  %v4406_v58 = vsel %vm1929_vm8, %v8936_v20, %v4364_v26 }
 0x332   :  { %4285 = vmatpush1.msra.mxu1 %v4145_v53  ;;  %4231 = vmatprep.mubr.f32.mxu0 %v10580_v31  ;;  %v4392_v47 = vpop.permute.xlu1 %4391  ;;  %v4398_v4 = vsel %vm1929_vm8, %v8908_v43, %v4380_v60  ;;  %v2290_v53 = vld [vmem:[%s10327_s3 + $0xf0] sm:$0xff]  ;;  %v4394_v50 = vsel %vm1929_vm8, %v4380_v60, %v8936_v20  ;;  %v4416_v30 = vmul.f32 %v4406_v58, %v10631_v21 }
 0x333   :  { %6754 = vmatmul.mubr.msk.f32.gmra.mxu1 %vm2424_vm9, %v2287_v27  ;;  %4286 = vmatprep.subr.mxu1 %v4142_v16  ;;  %v4408_v56 = vsel %vm1929_vm8, %v4392_v47, %v8836_v42  ;;  %v4396_v28 = vsel %vm1929_vm8, %v8871_v38, %v4392_v47  ;;  %v4402_v42 = vsel %vm1929_vm8, %v4364_v26, %v8908_v43  ;;  %v2291_v47 = vld [vmem:[%s10327_s3 + $0xf8] sm:$0xff] }
 0x334   :  { %4287 = vmatpush1.msra.mxu1 %v4141_v9  ;;  %4320 = vmatprep.mubr.f32.mxu1 %v10580_v31  ;;  %v4424_v38 = vmul.f32 %v4408_v56, %v10631_v21  ;;  %v4414_v27 = vmul.f32 %v4398_v4, %v10629_v35  ;;  %v4407_v43 = vsel %vm1929_vm8, %v8820_v14, %v8896_v8 }
 0x335   :  { %6755 = vmatmul.mubr.msk.f32.vlgmr.msra.gmra.mxu0 %vm2424_vm9, %v2288_v25  ;;  %4461 = vmatprep.subr.mxu0 %v4422_v46  ;;  %v4362_v63 = vpop.permute.xlu0 %4361  ;;  %v4423_v0 = vmul.f32 %v4396_v28, %v10632_v3  ;;  %v4413_v39 = vmul.f32 %v4402_v42, %v10630_v13  ;;  %v4420_v26 = vmul.f32 %v4407_v43, %v10631_v21  ;;  %v2292_v28 = vld [vmem:[%s10327_s3 + $0x100] sm:$0xff] }
 0x336   :  { %4237 = vmatprep.mubr.f32.mxu0 %v10580_v31  ;;  %4462 = vmatpush1.msra.mxu0 %v4421_v10  ;;  %v4370_v33 = vpop.permute.xlu1 %4369  ;;  %v4419_v46 = vmul.f32 %v4395_v18, %v10632_v3  ;;  %v4415_v10 = vmul.f32 %v4394_v50, %v10632_v3 }
 0x337   :  { %6759 = vmatmul.mubr.msk.f32.vlgmr.msra.gmra.mxu1 %vm2424_vm9, %v2288_v25  ;;  %4463 = vmatprep.subr.mxu0 %v4418_v32  ;;  %v4401_v20 = vsel %vm1929_vm8, %v4362_v63, %v4370_v33  ;;  %v2293_v32 = vld [vmem:[%s10327_s3 + $0x108] sm:$0xff] }
 0x338   :  { %4326 = vmatprep.mubr.f32.mxu1 %v10580_v31  ;;  %4464 = vmatpush1.msra.mxu0 %v4417_v11  ;;  %v4409_v56 = vmul.f32 %v4401_v20, %v10630_v13 }
 0x339   :  { %6756 = vmatmul.mubr.msk.f32.gmra.mxu0 %vm2424_vm9, %v2289_v15  ;;  %4465 = vmatprep.subr.mxu0 %v4414_v27  ;;  %v4378_v8 = vpop.permute.xlu0 %4377 }
 0x33a   :  { %4243 = vmatprep.mubr.f32.mxu0 %v10580_v31  ;;  %4550 = vmatprep.subr.mxu1 %v4424_v38  ;;  %v4397_v14 = vsel %vm1929_vm8, %v4370_v33, %v4378_v8 }
 0x33b   :  { %6760 = vmatmul.mubr.msk.f32.gmra.mxu1 %vm2424_vm9, %v2289_v15  ;;  %4466 = vmatpush1.msra.mxu0 %v4413_v39  ;;  %v4386_v16 = vpop.permute.xlu1 %4385  ;;  %v4410_v25 = vmul.f32 %v4397_v14, %v10629_v35 }
 0x33c   :  { %4332 = vmatprep.mubr.f32.mxu1 %v10580_v31  ;;  %4551 = vmatpush1.msra.mxu1 %v4423_v0  ;;  %v4405_v9 = vsel %vm1929_vm8, %v4386_v16, %v4362_v63  ;;  %v4393_v60 = vsel %vm1929_vm8, %v4378_v8, %v4386_v16  ;;  %v6816_v63 = vld [vmem:[%s10326_s5] sm:$0xff] }
 0x33d   :  { %6757 = vmatmul.mubr.msk.f32.gmra.mxu0 %vm2424_vm9, %v2290_v53  ;;  %4552 = vmatprep.subr.mxu1 %v4420_v26  ;;  %v4412_v24 = vmul.f32 %v4405_v9, %v10631_v21  ;;  %v4411_v4 = vmul.f32 %v4393_v60, %v10632_v3 }
 0x33e   :  { %4249 = vmatprep.mubr.f32.mxu0 %v10580_v31  ;;  %4553 = vmatpush1.msra.mxu1 %v4419_v46 }
 0x33f   :  { %6761 = vmatmul.mubr.msk.f32.gmra.mxu1 %vm2424_vm9, %v2290_v53  ;;  %4554 = vmatprep.subr.mxu1 %v4416_v30 }
 0x340   :  { %4338 = vmatprep.mubr.f32.mxu1 %v10580_v31  ;;  %4555 = vmatpush1.msra.mxu1 %v4415_v10 }
 0x341   :  { %6758 = vmatmul.mubr.msk.f32.gmra.mxu0 %vm2424_vm9, %v2291_v47  ;;  %4467 = vmatprep.subr.mxu0 %v4410_v25 }
 0x342   :  { %4468 = vmatpush1.msra.mxu0 %v4409_v56  ;;  %4501 = vmatprep.mubr.f32.mxu0 %v10580_v31 }
 0x343   :  { %6762 = vmatmul.mubr.msk.f32.gmra.mxu1 %vm2424_vm9, %v2291_v47  ;;  %4556 = vmatprep.subr.mxu1 %v4412_v24 }
 0x344   :  { %4557 = vmatpush1.msra.mxu1 %v4411_v4  ;;  %4590 = vmatprep.mubr.f32.mxu1 %v10580_v31 }
 0x345   :  { %6763 = vmatmul.mubr.msk.f32.vlgmr.msra.gmra.mxu0 %vm2424_vm9, %v2292_v28  ;;  %4708 = vperm.xlu1 %6810, %v8657_v62   ;;  %v2294_v62 = vld [vmem:[%s10327_s3 + $0x110] sm:$0xff] }
 0x346   :  { %4507 = vmatprep.mubr.f32.mxu0 %v10580_v31  ;;  %4632 = vperm.xlu0 %6808, %v6816_v63  }
 0x347   :  { %6767 = vmatmul.mubr.msk.f32.vlgmr.msra.gmra.mxu1 %vm2424_vm9, %v2292_v28 }
 0x348   :  { %4596 = vmatprep.mubr.f32.mxu1 %v10580_v31 }
 0x349   :  { %6764 = vmatmul.mubr.msk.f32.gmra.mxu0 %vm2424_vm9, %v2293_v32  ;;  %4700 = vperm.xlu1 %6810, %v8668_v41   ;;  %v2295_v41 = vld [vmem:[%s10327_s3 + $0x118] sm:$0xff] }
 0x34a   :  { %4513 = vmatprep.mubr.f32.mxu0 %v10580_v31  ;;  %6811 = vset.pattern.permute.xlu0 %v6830_v23 }
 0x34b   :  { %6768 = vmatmul.mubr.msk.f32.gmra.mxu1 %vm2424_vm9, %v2293_v32  ;;  %4704 = vperm.xlu0 %6811, %v8629_v48  }
 0x34c   :  { %4602 = vmatprep.mubr.f32.mxu1 %v10580_v31 }
 0x34d   :  { %6765 = vmatmul.mubr.msk.f32.gmra.mxu0 %vm2424_vm9, %v2294_v62  ;;  %4696 = vperm.xlu1 %6810, %v6816_v63  }
 0x34e   :  { %4519 = vmatprep.mubr.f32.mxu0 %v10580_v31 }
 0x34f   :  { %6769 = vmatmul.mubr.msk.f32.gmra.mxu1 %vm2424_vm9, %v2294_v62 }
 0x350   :  { %4608 = vmatprep.mubr.f32.mxu1 %v10580_v31 }
 0x351   :  { %6766 = vmatmul.mubr.msk.f32.gmra.mxu0 %vm2424_vm9, %v2295_v41 }
 0x352   :  { %4931 = vmatprep.mubr.f32.mxu0 %v10580_v31 }
 0x353   :  { %6770 = vmatmul.mubr.msk.f32.gmra.mxu1 %vm2424_vm9, %v2295_v41 }
 0x354   :  { %5002 = vmatprep.mubr.f32.mxu1 %v10580_v31 }
 0x37e   :  { %v2503_v48 = vpop.f32.mrf.mxu0 }
 0x37f   :  { %v2592_v23 = vpop.f32.mrf.mxu1 }
 0x380   :  { %v2505_v11 = vpop.f32.mrf.mxu0 }
 0x381   :  { %v2594_v42 = vpop.f32.mrf.mxu1 }
 0x382   :  { %v2509_v15 = vpop.f32.mrf.mxu0 }
 0x383   :  { %v2598_v33 = vpop.f32.mrf.mxu1 }
 0x384   :  { %v2511_v38 = vpop.f32.mrf.mxu0 }
 0x385   :  { %v2600_v27 = vpop.f32.mrf.mxu1 }
 0x386   :  { %v2515_v43 = vpop.f32.mrf.mxu0 }
 0x387   :  { %v2604_v0 = vpop.f32.mrf.mxu1 }
 0x388   :  { %v2517_v18 = vpop.f32.mrf.mxu0 }
 0x389   :  { %v2606_v58 = vpop.f32.mrf.mxu1 }
 0x38b   :  { %v2521_v39 = vpop.f32.mrf.mxu0 }
 0x38d   :  { %v2610_v8 = vpop.f32.mrf.mxu1  ;;  %v2523_v53 = vpop.f32.mrf.mxu0 }
 0x38f   :  { %v2612_v14 = vpop.f32.mrf.mxu1 }
 0x391   :  { %v2693_v50 = vpop.f32.mrf.mxu0 }
 0x392   :  { %v2694_v26 = vadd.f32 %v2693_v50, %v2503_v48 }
 0x393   :  { %v2782_v16 = vpop.f32.mrf.mxu1  ;;  %v2695_v46 = vpop.f32.mrf.mxu0 }
 0x394   :  { %v2783_v9 = vadd.f32 %v2782_v16, %v2592_v23  ;;  %v2696_v30 = vadd.f32 %v2695_v46, %v2505_v11 }
 0x395   :  { %v2784_v20 = vpop.f32.mrf.mxu1  ;;  %v2699_v60 = vpop.f32.mrf.mxu0 }
 0x396   :  { %v2785_v25 = vadd.f32 %v2784_v20, %v2594_v42  ;;  %v2700_v10 = vadd.f32 %v2699_v60, %v2509_v15 }
 0x397   :  { %v2788_v47 = vpop.f32.mrf.mxu1  ;;  %v2701_v24 = vpop.f32.mrf.mxu0 }
 0x398   :  { %v2789_v56 = vadd.f32 %v2788_v47, %v2598_v33  ;;  %v2702_v4 = vadd.f32 %v2701_v24, %v2511_v38 }
 0x399   :  { %v2790_v28 = vpop.f32.mrf.mxu1  ;;  %v2705_v32 = vpop.f32.mrf.mxu0 }
 0x39a   :  { %v2791_v63 = vadd.f32 %v2790_v28, %v2600_v27  ;;  %v2706_v62 = vadd.f32 %v2705_v32, %v2515_v43 }
 0x39b   :  { %v2794_v41 = vpop.f32.mrf.mxu1  ;;  %v2707_v3 = vpop.f32.mrf.mxu0 }
 0x39c   :  { %v2795_v21 = vadd.f32 %v2794_v41, %v2604_v0  ;;  %v2708_v48 = vadd.f32 %v2707_v3, %v2517_v18 }
 0x39d   :  { %v2796_v50 = vpop.f32.mrf.mxu1  ;;  %v2711_v35 = vpop.f32.mrf.mxu0 }
 0x39e   :  { %v2797_v23 = vadd.f32 %v2796_v50, %v2606_v58  ;;  %v2712_v11 = vadd.f32 %v2711_v35, %v2521_v39 }
 0x39f   :  { %v2800_v16 = vpop.f32.mrf.mxu1  ;;  %v2713_v46 = vpop.f32.mrf.mxu0 }
 0x3a0   :  { %v2801_v42 = vadd.f32 %v2800_v16, %v2610_v8  ;;  %v2714_v15 = vadd.f32 %v2713_v46, %v2523_v53 }
 0x3a1   :  { %v2802_v20 = vpop.f32.mrf.mxu1  ;;  %v2947_v60 = vpop.f32.mrf.mxu0 }
 0x3a2   :  { %v2803_v33 = vadd.f32 %v2802_v20, %v2612_v14  ;;  %v3059_v38 = vadd.f32 %v2947_v60, %v2694_v26 }
 0x3a3   :  { %v3036_v47 = vpop.f32.mrf.mxu1  ;;  %v2949_v24 = vpop.f32.mrf.mxu0 }
 0x3a4   :  { %v3061_v27 = vadd.f32 %v3036_v47, %v2783_v9  ;;  %v3060_v43 = vadd.f32 %v2949_v24, %v2696_v30 }
 0x3a5   :  { %v3038_v28 = vpop.f32.mrf.mxu1  ;;  %v2953_v32 = vpop.f32.mrf.mxu0 }
 0x3a6   :  { %v3062_v0 = vadd.f32 %v3038_v28, %v2785_v25  ;;  %v3063_v3 = vadd.f32 %v2953_v32, %v2700_v10 }
 0x3a7   :  { %v3042_v18 = vpop.f32.mrf.mxu1  ;;  %v2955_v41 = vpop.f32.mrf.mxu0 }
 0x3a8   :  { %v3065_v58 = vadd.f32 %v3042_v18, %v2789_v56  ;;  %v3064_v35 = vadd.f32 %v2955_v41, %v2702_v4 }
 0x3a9   :  { %v3044_v39 = vpop.f32.mrf.mxu1  ;;  %v2959_v50 = vpop.f32.mrf.mxu0 }
 0x3aa   :  { %v3066_v8 = vadd.f32 %v3044_v39, %v2791_v63  ;;  %v3067_v53 = vadd.f32 %v2959_v50, %v2706_v62 }
 0x3ab   :  { %v3048_v16 = vpop.f32.mrf.mxu1  ;;  %v2961_v46 = vpop.f32.mrf.mxu0 }
 0x3ac   :  { %v3069_v14 = vadd.f32 %v3048_v16, %v2795_v21  ;;  %v3068_v26 = vadd.f32 %v2961_v46, %v2708_v48 }
 0x3ad   :  { %v3050_v20 = vpop.f32.mrf.mxu1  ;;  %v2965_v60 = vpop.f32.mrf.mxu0 }
 0x3ae   :  { %v3070_v9 = vadd.f32 %v3050_v20, %v2797_v23  ;;  %v3071_v30 = vadd.f32 %v2965_v60, %v2712_v11 }
 0x3af   :  { %v3054_v47 = vpop.f32.mrf.mxu1  ;;  %v2967_v24 = vpop.f32.mrf.mxu0 }
 0x3b0   :  { %v3073_v25 = vadd.f32 %v3054_v47, %v2801_v42  ;;  %v3072_v10 = vadd.f32 %v2967_v24, %v2714_v15 }
 0x3b1   :  { %v3056_v28 = vpop.f32.mrf.mxu1  ;;  %v3217_v32 = vpop.f32.mrf.mxu0 }
 0x3b2   :  { %v3074_v56 = vadd.f32 %v3056_v28, %v2803_v33  ;;  %v9114_v4 = vadd.f32 %v3217_v32, %v3059_v38 }
 0x3b3   :  { %v3306_v18 = vpop.f32.mrf.mxu1  ;;  %v3219_v63 = vpop.f32.mrf.mxu0 }
 0x3b4   :  { %v9116_v62 = vadd.f32 %v3306_v18, %v3061_v27  ;;  %v9118_v41 = vadd.f32 %v3219_v63, %v3060_v43 }
 0x3b5   :  { %v3308_v21 = vpop.f32.mrf.mxu1 }
 0x3b6   :  { %v9120_v48 = vadd.f32 %v3308_v21, %v3062_v0 }
 0x3b7   :  { %v3223_v23 = vpop.f32.mrf.mxu0 }
 0x3b8   :  { %v3333_v11 = vadd.f32 %v3223_v23, %v3063_v3 }
 0x3b9   :  { %v3225_v39 = vpop.f32.mrf.mxu0 }
 0x3ba   :  { %v3312_v50 = vpop.f32.mrf.mxu1  ;;  %v3334_v42 = vadd.f32 %v3225_v39, %v3064_v35 }
 0x3bb   :  { %v3335_v15 = vadd.f32 %v3312_v50, %v3065_v58 }
 0x3bc   :  { %v3314_v16 = vpop.f32.mrf.mxu1 }
 0x3bd   :  { %v3336_v46 = vadd.f32 %v3314_v16, %v3066_v8  ;;  %v3229_v33 = vpop.f32.mrf.mxu0 }
 0x3be   :  { %v3337_v38 = vadd.f32 %v3229_v33, %v3067_v53 }
 0x3bf   :  { %v3318_v20 = vpop.f32.mrf.mxu1  ;;  %v3231_v60 = vpop.f32.mrf.mxu0 }
 0x3c0   :  { %v3339_v47 = vadd.f32 %v3318_v20, %v3069_v14  ;;  %v3338_v27 = vadd.f32 %v3231_v60, %v3068_v26 }
 0x3c1   :  { %v3320_v24 = vpop.f32.mrf.mxu1  ;;  %v3235_v43 = vpop.f32.mrf.mxu0 }
 0x3c2   :  { %v3340_v28 = vadd.f32 %v3320_v24, %v3070_v9  ;;  %v3341_v32 = vadd.f32 %v3235_v43, %v3071_v30 }
 0x3c3   :  { %v3324_v0 = vpop.f32.mrf.mxu1  ;;  %v3237_v18 = vpop.f32.mrf.mxu0 }
 0x3c4   :  { %v3343_v63 = vadd.f32 %v3324_v0, %v3073_v25  ;;  %v3342_v3 = vadd.f32 %v3237_v18, %v3072_v10 }
 0x3c5   :  { %v3326_v21 = vpop.f32.mrf.mxu1  ;;  %v9122_v23 = vpop.f32.mrf.mxu0 }
 0x3c6   :  { %v3344_v58 = vadd.f32 %v3326_v21, %v3074_v56 }
 0x3c7   :  { %v9124_v35 = vpop.f32.mrf.mxu1  ;;  %v9126_v8 = vpop.f32.mrf.mxu0 }
 0x3c9   :  { %v9128_v53 = vpop.f32.mrf.mxu1  ;;  %v3429_v14 = vpop.f32.mrf.mxu0 }
 0x3ca   :  { %v3539_v26 = vadd.f32 %v3429_v14, %v3333_v11 }
 0x3cb   :  { %v3518_v39 = vpop.f32.mrf.mxu1  ;;  %v3431_v50 = vpop.f32.mrf.mxu0 }
 0x3cc   :  { %v3541_v9 = vadd.f32 %v3518_v39, %v3335_v15  ;;  %v3540_v30 = vadd.f32 %v3431_v50, %v3334_v42 }
 0x3cd   :  { %v3520_v16 = vpop.f32.mrf.mxu1  ;;  %v3435_v33 = vpop.f32.mrf.mxu0 }
 0x3ce   :  { %v3542_v25 = vadd.f32 %v3520_v16, %v3336_v46  ;;  %v3543_v10 = vadd.f32 %v3435_v33, %v3337_v38 }
 0x3cf   :  { %v3524_v20 = vpop.f32.mrf.mxu1  ;;  %v3437_v60 = vpop.f32.mrf.mxu0 }
 0x3d0   :  { %v3545_v24 = vadd.f32 %v3524_v20, %v3339_v47  ;;  %v3544_v56 = vadd.f32 %v3437_v60, %v3338_v27 }
 0x3d1   :  { %v3526_v43 = vpop.f32.mrf.mxu1  ;;  %v3441_v0 = vpop.f32.mrf.mxu0 }
 0x3d2   :  { %v3546_v18 = vadd.f32 %v3526_v43, %v3340_v28  ;;  %v3547_v21 = vadd.f32 %v3441_v0, %v3341_v32 }
 0x3d3   :  { %v3530_v13 = vpop.f32.mrf.mxu1  ;;  %v3443_v5 = vpop.f32.mrf.mxu0 }
 0x3d4   :  { %v3549_v37 = vadd.f32 %v3530_v13, %v3343_v63  ;;  %v3548_v11 = vadd.f32 %v3443_v5, %v3342_v3 }
 0x3d5   :  { %v3532_v14 = vpop.f32.mrf.mxu1  ;;  %v9130_v29 = vpop.f32.mrf.mxu0 }
 0x3d6   :  { %v3550_v42 = vadd.f32 %v3532_v14, %v3344_v58 }
 0x3d7   :  { %v9132_v15 = vpop.f32.mrf.mxu1  ;;  %v9134_v46 = vpop.f32.mrf.mxu0 }
 0x3d9   :  { %v9136_v38 = vpop.f32.mrf.mxu1  ;;  %v3699_v47 = vpop.f32.mrf.mxu0 }
 0x3da   :  { %v3809_v27 = vadd.f32 %v3699_v47, %v3539_v26 }
 0x3db   :  { %v3788_v39 = vpop.f32.mrf.mxu1  ;;  %v3701_v50 = vpop.f32.mrf.mxu0 }
 0x3dc   :  { %v3811_v28 = vadd.f32 %v3788_v39, %v3541_v9  ;;  %v3810_v32 = vadd.f32 %v3701_v50, %v3540_v30 }
 0x3dd   :  { %v3790_v16 = vpop.f32.mrf.mxu1  ;;  %v3705_v33 = vpop.f32.mrf.mxu0 }
 0x3de   :  { %v3812_v13 = vadd.f32 %v3790_v16, %v3542_v25  ;;  %v3813_v5 = vadd.f32 %v3705_v33, %v3543_v10 }
 0x3df   :  { %v3794_v63 = vpop.f32.mrf.mxu1  ;;  %v3707_v3 = vpop.f32.mrf.mxu0 }
 0x3e0   :  { %v3815_v20 = vadd.f32 %v3794_v63, %v3545_v24  ;;  %v3814_v58 = vadd.f32 %v3707_v3, %v3544_v56 }
 0x3e1   :  { %v3796_v60 = vpop.f32.mrf.mxu1  ;;  %v3711_v43 = vpop.f32.mrf.mxu0 }
 0x3e2   :  { %v3816_v0 = vadd.f32 %v3796_v60, %v3546_v18  ;;  %v3817_v14 = vadd.f32 %v3711_v43, %v3547_v21 }
 0x3e3   :  { %v3800_v36 = vpop.f32.mrf.mxu1  ;;  %v3713_v34 = vpop.f32.mrf.mxu0 }
 0x3e4   :  { %v3819_v40 = vadd.f32 %v3800_v36, %v3549_v37  ;;  %v3818_v26 = vadd.f32 %v3713_v34, %v3548_v11 }
 0x3e5   :  { %v3802_v47 = vpop.f32.mrf.mxu1  ;;  %v3963_v49 = vpop.f32.mrf.mxu0 }
 0x3e6   :  { %v3820_v9 = vadd.f32 %v3802_v47, %v3550_v42 }
 0x3e7   :  { %v4052_v30 = vpop.f32.mrf.mxu1  ;;  %v9138_v39 = vpop.f32.mrf.mxu0 }
 0x3e9   :  { %v9140_v25 = vpop.f32.mrf.mxu1  ;;  %v3969_v10 = vpop.f32.mrf.mxu0 }
 0x3ea   :  { %v4079_v50 = vadd.f32 %v3969_v10, %v3809_v27  ;;  %v9142_v10 = vpop.permute.xlu1 %4640 }
 0x3eb   :  { %v4058_v24 = vpop.f32.mrf.mxu1  ;;  %v3971_v56 = vpop.f32.mrf.mxu0 }
 0x3ec   :  { %v4081_v16 = vadd.f32 %v4058_v24, %v3811_v28  ;;  %v4080_v33 = vadd.f32 %v3971_v56, %v3810_v32 }
 0x3ed   :  { %v4060_v18 = vpop.f32.mrf.mxu1  ;;  %v3975_v21 = vpop.f32.mrf.mxu0 }
 0x3ee   :  { %v4082_v63 = vadd.f32 %v4060_v18, %v3812_v13  ;;  %v4083_v3 = vadd.f32 %v3975_v21, %v3813_v5 }
 0x3ef   :  { %v4064_v36 = vpop.f32.mrf.mxu1  ;;  %v3977_v34 = vpop.f32.mrf.mxu0 }
 0x3f0   :  { %v4085_v37 = vadd.f32 %v4064_v36, %v3815_v20  ;;  %v4084_v11 = vadd.f32 %v3977_v34, %v3814_v58  ;;  %v9146_v20 = vpop.permute.xlu1 %4636 }
 0x3f1   :  { %v4066_v42 = vpop.f32.mrf.mxu1  ;;  %v3981_v60 = vpop.f32.mrf.mxu0 }
 0x3f2   :  { %v4086_v43 = vadd.f32 %v4066_v42, %v3816_v0  ;;  %v4087_v47 = vadd.f32 %v3981_v60, %v3817_v14 }
 0x3f3   :  { %v4070_v12 = vpop.f32.mrf.mxu1  ;;  %v3983_v57 = vpop.f32.mrf.mxu0 }
 0x3f4   :  { %v4089_v59 = vadd.f32 %v4070_v12, %v3819_v40  ;;  %v4088_v27 = vadd.f32 %v3983_v57, %v3818_v26  ;;  %v3535_v40 = vadd.f32 %v9122_v23, %v9114_v4  ;;  %v9169_v4 = vpop.permute.xlu0 %4644 }
 0x3f5   :  { %v4072_v28 = vpop.f32.mrf.mxu1  ;;  %v4233_v32 = vpop.f32.mrf.mxu0 }
 0x3f6   :  { %v4090_v24 = vadd.f32 %v4072_v28, %v3820_v9 }
 0x3f7   :  { %v4322_v56 = vpop.f32.mrf.mxu1  ;;  %v4235_v13 = vpop.f32.mrf.mxu0 }
 0x3f9   :  { %v4324_v5 = vpop.f32.mrf.mxu1  ;;  %v4239_v18 = vpop.f32.mrf.mxu0 }
 0x3fa   :  { %v9144_v21 = vadd.f32 %v4239_v18, %v4079_v50  ;;  %v3537_v50 = vadd.f32 %v9124_v35, %v9116_v62  ;;  %v9167_v18 = vpop.permute.xlu1 %4708 }
 0x3fb   :  { %v4328_v58 = vpop.f32.mrf.mxu1  ;;  %v4241_v0 = vpop.f32.mrf.mxu0 }
 0x3fc   :  { %v9148_v14 = vadd.f32 %v4328_v58, %v4081_v16  ;;  %v9150_v36 = vadd.f32 %v4241_v0, %v4080_v33  ;;  %v3536_v16 = vadd.f32 %v9126_v8, %v9118_v41  ;;  %v3805_v33 = vadd.f32 %v9130_v29, %v3535_v40 }
 0x3fd   :  { %v4330_v57 = vpop.f32.mrf.mxu1  ;;  %v4245_v12 = vpop.f32.mrf.mxu0  ;;  %v3807_v23 = vadd.f32 %v9132_v15, %v3537_v50  ;;  %v3538_v29 = vadd.f32 %v9128_v53, %v9120_v48 }
 0x3fe   :  { %v9154_v26 = vadd.f32 %v4330_v57, %v4082_v63  ;;  %v9156_v9 = vadd.f32 %v4245_v12, %v4083_v3  ;;  %v3806_v62 = vadd.f32 %v9134_v46, %v3536_v16  ;;  %v4075_v35 = vadd.f32 %v3963_v49, %v3805_v33  ;;  %v4633_v53 = vpop.permute.xlu0 %4632 }
 0x3ff   :  { %v4334_v34 = vpop.f32.mrf.mxu1  ;;  %v4247_v42 = vpop.f32.mrf.mxu0  ;;  %v4077_v8 = vadd.f32 %v4052_v30, %v3807_v23  ;;  %v3808_v46 = vadd.f32 %v9136_v38, %v3538_v29 }
 0x400   :  { %v9163_v60 = vadd.f32 %v4334_v34, %v4085_v37  ;;  %v9165_v28 = vadd.f32 %v4247_v42, %v4084_v11  ;;  %v4076_v0 = vadd.f32 %v9138_v39, %v3806_v62  ;;  %v4345_v57 = vadd.f32 %v4233_v32, %v4075_v35  ;;  %v9187_v34 = vpop.permute.xlu1 %4700 }
 0x401   :  { %v4336_v63 = vpop.f32.mrf.mxu1  ;;  %v4251_v3 = vpop.f32.mrf.mxu0  ;;  %v4347_v40 = vadd.f32 %v4322_v56, %v4077_v8  ;;  %v4078_v30 = vadd.f32 %v9140_v25, %v3808_v46 }
 0x402   :  { %v9173_v58 = vadd.f32 %v4336_v63, %v4086_v43  ;;  %v9175_v41 = vadd.f32 %v4251_v3, %v4087_v47  ;;  %v4346_v47 = vadd.f32 %v4235_v13, %v4076_v0 }
 0x403   :  { %v4340_v37 = vpop.f32.mrf.mxu1  ;;  %v4253_v11 = vpop.f32.mrf.mxu0  ;;  %v4348_v16 = vadd.f32 %v4324_v5, %v4078_v30 }
 0x404   :  { %v9180_v12 = vadd.f32 %v4340_v37, %v4089_v59  ;;  %v9182_v15 = vadd.f32 %v4253_v11, %v4088_v27  ;;  %v4697_v62 = vpop.permute.xlu1 %4696 }
 0x405   :  { %v4342_v49 = vpop.f32.mrf.mxu1  ;;  %v4503_v43 = vpop.f32.mrf.mxu0 }
 0x406   :  { %v9185_v50 = vadd.f32 %v4342_v49, %v4090_v24  ;;  %v4615_v48 = vadd.f32 %v4503_v43, %v4345_v57 }
 0x407   :  { %v4505_v39 = vpop.f32.mrf.mxu0  ;;  %v4592_v32 = vpop.f32.mrf.mxu1 }
 0x408   :  { %v4616_v59 = vadd.f32 %v4505_v39, %v4346_v47  ;;  %v4617_v42 = vadd.f32 %v4592_v32, %v4347_v40  ;;  %v4647_v27 = vadd.f32 %v4633_v53, %v4615_v48 }
 0x409   :  { %v4594_v33 = vpop.f32.mrf.mxu1  ;;  %v4509_v46 = vpop.f32.mrf.mxu0 }
 0x40a   :  { %v4648_v38 = vadd.f32 %v4633_v53, %v4616_v59  ;;  %v4649_v23 = vadd.f32 %v4633_v53, %v4617_v42  ;;  %v4663_v63 = vmul.f32 0.01, %v4647_v27  ;;  %v4618_v56 = vadd.f32 %v4594_v33, %v4348_v16 }
 0x40b   :  { %v4511_v49 = vpop.f32.mrf.mxu0  ;;  %v4598_v43 = vpop.f32.mrf.mxu1  ;;  %v4619_v40 = vadd.f32 %v4509_v46, %v9144_v21 }
 0x40c   :  { %v4664_v13 = vmul.f32 0.01, %v4648_v38  ;;  %v4665_v24 = vmul.f32 0.01, %v4649_v23  ;;  %v4679_v3 = vmax.f32 %v4647_v27, %v4663_v63  ;;  %v4650_v35 = vadd.f32 %v4633_v53, %v4618_v56 }
 0x40d   :  { %v4620_v47 = vadd.f32 %v4511_v49, %v9150_v36  ;;  %v4600_v48 = vpop.f32.mrf.mxu1  ;;  %v4651_v53 = vadd.f32 %v9146_v20, %v4619_v40  ;;  %v4621_v30 = vadd.f32 %v4598_v43, %v9148_v14 }
 0x40e   :  { %v4680_v29 = vmax.f32 %v4648_v38, %v4664_v13  ;;  %v4681_v8 = vmax.f32 %v4649_v23, %v4665_v24  ;;  %v9190_v37 = vadd.f32 %v4697_v62, %v4679_v3  ;;  %v4666_v25 = vmul.f32 0.01, %v4650_v35 }
 0x40f   :  { %v4652_v39 = vadd.f32 %v9146_v20, %v4620_v47  ;;  %v4622_v21 = vadd.f32 %v4600_v48, %v9154_v26  ;;  %v4667_v32 = vmul.f32 0.01, %v4651_v53  ;;  %v4653_v36 = vadd.f32 %v9146_v20, %v4621_v30  ;;  %v4604_v24 = vpop.f32.mrf.mxu1 }
 0x410   :  { %10633 = vst [vmem:[#allocation5_spill] sm:$0xff] %v9190_v37  ;;  %v9192_v11 = vadd.f32 %v4697_v62, %v4680_v29  ;;  %4800 = vrot.lane.b32.xlu0 %v9190_v37, %s6819_s25  ;;  %v4682_v5 = vmax.f32 %v4650_v35, %v4666_v25  ;;  %v9196_v0 = vadd.f32 %v4697_v62, %v4681_v8 }
 0x411   :  { %v4668_v59 = vmul.f32 0.01, %v4652_v39  ;;  %v4654_v42 = vadd.f32 %v9146_v20, %v4622_v21  ;;  %v4683_v14 = vmax.f32 %v4651_v53, %v4667_v32  ;;  %v4669_v27 = vmul.f32 0.01, %v4653_v36  ;;  %v4606_v35 = vpop.f32.mrf.mxu1 }
 0x412   :  { %10634 = vst [vmem:[#allocation6_spill] sm:$0xff] %v9192_v11  ;;  %10635 = vst [vmem:[#allocation4_spill] sm:$0xff] %v9196_v0  ;;  %4808 = vrot.lane.b32.xlu1 %v9192_v11, %s6819_s25  ;;  %v9200_v57 = vadd.f32 %v4697_v62, %v4682_v5  ;;  %v4625_v8 = vadd.f32 %v4604_v24, %v9163_v60 }
 0x413   :  { %v4684_v26 = vmax.f32 %v4652_v39, %v4668_v59  ;;  %v4670_v16 = vmul.f32 0.01, %v4654_v42  ;;  %v9261_v33 = vadd.f32 %v9187_v34, %v4683_v14  ;;  %v4685_v38 = vmax.f32 %v4653_v36, %v4669_v27 }
 0x414   :  { %10636 = vst [vmem:[#allocation7_spill] sm:$0xff] %v9200_v57  ;;  %4816 = vrot.lane.b32.xlu0 %v9196_v0, %s6819_s25 }
 0x415   :  { %10637 = vst [vmem:[#allocation8_spill] sm:$0xff] %v9261_v33  ;;  %v9266_v20 = vadd.f32 %v9187_v34, %v4684_v26  ;;  %v4686_v23 = vmax.f32 %v4654_v42, %v4670_v16  ;;  %v9271_v63 = vadd.f32 %v9187_v34, %v4685_v38 }
 0x416   :  { %4824 = vrot.lane.b32.xlu1 %v9200_v57, %s6819_s25 }
 0x417   :  { %10638 = vst [vmem:[#allocation9_spill] sm:$0xff] %v9266_v20  ;;  %10639 = vst [vmem:[#allocation11_spill] sm:$0xff] %v9271_v63  ;;  %v9276_v56 = vadd.f32 %v9187_v34, %v4686_v23  ;;  %v4515_v34 = vpop.f32.mrf.mxu0 }
 0x418   :  { %4736 = vrot.lane.b32.xlu0 %v9190_v37, %s6820_s30  ;;  %v4623_v3 = vadd.f32 %v4515_v34, %v9156_v9  ;;  %v4626_v9 = vadd.f32 %v4606_v35, %v9173_v58  ;;  %v4705_v58 = vpop.permute.xlu0 %4704 }
 0x419   :  { %10640 = vst [vmem:[#allocation10_spill] sm:$0xff] %v9276_v56  ;;  %v4517_v13 = vpop.f32.mrf.mxu0 }
 0x41a   :  { %4744 = vrot.lane.b32.xlu1 %v9192_v11, %s6820_s30  ;;  %v4624_v62 = vadd.f32 %v4517_v13, %v9165_v28  ;;  %v4655_v29 = vadd.f32 %v9142_v10, %v4623_v3  ;;  %v4657_v28 = vadd.f32 %v9142_v10, %v4625_v8  ;;  %v4658_v49 = vadd.f32 %v9142_v10, %v4626_v9 }
 0x41c   :  { %4752 = vrot.lane.b32.xlu0 %v9196_v0, %s6820_s30  ;;  %v4656_v25 = vadd.f32 %v9142_v10, %v4624_v62  ;;  %v4671_v5 = vmul.f32 0.01, %v4655_v29  ;;  %v4673_v43 = vmul.f32 0.01, %v4657_v28  ;;  %v4674_v47 = vmul.f32 0.01, %v4658_v49 }
 0x41e   :  { %4760 = vrot.lane.b32.xlu1 %v9200_v57, %s6820_s30  ;;  %v4672_v46 = vmul.f32 0.01, %v4656_v25  ;;  %v4687_v60 = vmax.f32 %v4655_v29, %v4671_v5  ;;  %v4689_v48 = vmax.f32 %v4657_v28, %v4673_v43  ;;  %v4690_v10 = vmax.f32 %v4658_v49, %v4674_v47  ;;  %v4521_v5 = vpop.f32.mrf.mxu0 }
 0x41f   :  { %v4627_v43 = vadd.f32 %v4521_v5, %v9175_v41 }
 0x420   :  { %5154 = vrot.lane.b32.xlu0 %v9190_v37, %s6821_s0  ;;  %v4688_v40 = vmax.f32 %v4656_v25, %v4672_v46  ;;  %v9336_v53 = vadd.f32 %v4705_v58, %v4687_v60  ;;  %v9344_v39 = vadd.f32 %v4705_v58, %v4689_v48  ;;  %v9350_v32 = vadd.f32 %v4705_v58, %v4690_v10  ;;  %v4523_v49 = vpop.f32.mrf.mxu0  ;;  %v4610_v60 = vpop.f32.mrf.mxu1 }
 0x421   :  { %v4659_v10 = vadd.f32 %v9169_v4, %v4627_v43 }
 0x422   :  { %5162 = vrot.lane.b32.xlu1 %v9192_v11, %s6821_s0  ;;  %10641 = vst [vmem:[#allocation12_spill] sm:$0xff] %v9336_v53  ;;  %v9340_v30 = vadd.f32 %v4705_v58, %v4688_v40  ;;  %10643 = vst [vmem:[#allocation13_spill] sm:$0xff] %v9344_v39  ;;  %v4628_v40 = vadd.f32 %v4523_v49, %v9182_v15  ;;  %v4612_v48 = vpop.f32.mrf.mxu1 }
 0x423   :  { %10644 = vst [vmem:[#allocation52_spill] sm:$0xff] %v9350_v32  ;;  %v4675_v49 = vmul.f32 0.01, %v4659_v10 }
 0x424   :  { %5170 = vrot.lane.b32.xlu0 %v9196_v0, %s6821_s0  ;;  %10642 = vst [vmem:[#allocation14_spill] sm:$0xff] %v9340_v30  ;;  %v4660_v5 = vadd.f32 %v9169_v4, %v4628_v40 }
 0x426   :  { %5178 = vrot.lane.b32.xlu1 %v9200_v57, %s6821_s0 }
 0x428   :  { %5367 = vrot.lane.b32.xlu0 %v9190_v37, %s6822_s7 }
 0x42a   :  { %5375 = vrot.lane.b32.xlu1 %v9192_v11, %s6822_s7 }
 0x42c   :  { %5383 = vrot.lane.b32.xlu0 %v9196_v0, %s6822_s7 }
 0x42e   :  { %5391 = vrot.lane.b32.xlu1 %v9200_v57, %s6822_s7 }
 0x430   :  { %5729 = vrot.lane.b32.xlu0 %v9190_v37, %s6823_s8 }
 0x432   :  { %5737 = vrot.lane.b32.xlu1 %v9192_v11, %s6823_s8 }
 0x434   :  { %5745 = vrot.lane.b32.xlu0 %v9196_v0, %s6823_s8 }
 0x436   :  { %5753 = vrot.lane.b32.xlu1 %v9200_v57, %s6823_s8 }
 0x438   :  { %5942 = vrot.lane.b32.xlu0 %v9190_v37, %s6824_s9 }
 0x43a   :  { %5950 = vrot.lane.b32.xlu1 %v9192_v11, %s6824_s9 }
 0x43c   :  { %5958 = vrot.lane.b32.xlu0 %v9196_v0, %s6824_s9 }
 0x43e   :  { %5966 = vrot.lane.b32.xlu1 %v9200_v57, %s6824_s9 }
 0x440   :  { %6155 = vrot.lane.b32.xlu0 %v9190_v37, %s6825_s10 }
 0x442   :  { %6163 = vrot.lane.b32.xlu1 %v9192_v11, %s6825_s10 }
 0x444   :  { %6171 = vrot.lane.b32.xlu0 %v9196_v0, %s6825_s10 }
 0x446   :  { %6179 = vrot.lane.b32.xlu1 %v9200_v57, %s6825_s10 }
 0x448   :  { %4802 = vrot.lane.b32.xlu0 %v9261_v33, %s6819_s25 }
 0x44a   :  { %4810 = vrot.lane.b32.xlu1 %v9266_v20, %s6819_s25 }
 0x44c   :  { %4818 = vrot.lane.b32.xlu0 %v9271_v63, %s6819_s25 }
 0x44e   :  { %4826 = vrot.lane.b32.xlu1 %v9276_v56, %s6819_s25 }
 0x450   :  { %4738 = vrot.lane.b32.xlu0 %v9261_v33, %s6820_s30 }
 0x452   :  { %4746 = vrot.lane.b32.xlu1 %v9266_v20, %s6820_s30 }
 0x454   :  { %4754 = vrot.lane.b32.xlu0 %v9271_v63, %s6820_s30 }
 0x456   :  { %4762 = vrot.lane.b32.xlu1 %v9276_v56, %s6820_s30 }
 0x458   :  { %5156 = vrot.lane.b32.xlu0 %v9261_v33, %s6821_s0 }
 0x45a   :  { %5164 = vrot.lane.b32.xlu1 %v9266_v20, %s6821_s0 }
 0x45c   :  { %5172 = vrot.lane.b32.xlu0 %v9271_v63, %s6821_s0 }
 0x45e   :  { %5180 = vrot.lane.b32.xlu1 %v9276_v56, %s6821_s0 }
 0x460   :  { %5369 = vrot.lane.b32.xlu0 %v9261_v33, %s6822_s7 }
 0x462   :  { %5377 = vrot.lane.b32.xlu1 %v9266_v20, %s6822_s7 }
 0x464   :  { %5385 = vrot.lane.b32.xlu0 %v9271_v63, %s6822_s7 }
 0x466   :  { %5393 = vrot.lane.b32.xlu1 %v9276_v56, %s6822_s7 }
 0x468   :  { %5731 = vrot.lane.b32.xlu0 %v9261_v33, %s6823_s8 }
 0x46a   :  { %5739 = vrot.lane.b32.xlu1 %v9266_v20, %s6823_s8 }
 0x46c   :  { %5747 = vrot.lane.b32.xlu0 %v9271_v63, %s6823_s8 }
 0x46e   :  { %5755 = vrot.lane.b32.xlu1 %v9276_v56, %s6823_s8 }
 0x470   :  { %5944 = vrot.lane.b32.xlu0 %v9261_v33, %s6824_s9 }
 0x472   :  { %5952 = vrot.lane.b32.xlu1 %v9266_v20, %s6824_s9 }
 0x474   :  { %5960 = vrot.lane.b32.xlu0 %v9271_v63, %s6824_s9 }
 0x476   :  { %5968 = vrot.lane.b32.xlu1 %v9276_v56, %s6824_s9 }
 0x478   :  { %6157 = vrot.lane.b32.xlu0 %v9261_v33, %s6825_s10 }
 0x47a   :  { %6165 = vrot.lane.b32.xlu1 %v9266_v20, %s6825_s10 }
 0x47c   :  { %6173 = vrot.lane.b32.xlu0 %v9271_v63, %s6825_s10 }
 0x47e   :  { %6181 = vrot.lane.b32.xlu1 %v9276_v56, %s6825_s10 }
 0x480   :  { %4804 = vrot.lane.b32.xlu0 %v9336_v53, %s6819_s25 }
 0x482   :  { %4812 = vrot.lane.b32.xlu1 %v9340_v30, %s6819_s25  ;;  %v9348_v21 = vpop.permute.xlu0 %4800 }
 0x484   :  { %v9352_v36 = vpop.permute.xlu1 %4808  ;;  %4820 = vrot.lane.b32.xlu0 %v9344_v39, %s6819_s25 }
 0x486   :  { %4828 = vrot.lane.b32.xlu1 %v9350_v32, %s6819_s25  ;;  %v9358_v59 = vpop.permute.xlu0 %4816 }
 0x488   :  { %v9360_v42 = vpop.permute.xlu1 %4824  ;;  %4740 = vrot.lane.b32.xlu0 %v9336_v53, %s6820_s30 }
 0x48a   :  { %4748 = vrot.lane.b32.xlu1 %v9340_v30, %s6820_s30  ;;  %v9366_v14 = vpop.permute.xlu0 %4736 }
 0x48c   :  { %v9368_v27 = vpop.permute.xlu1 %4744  ;;  %4756 = vrot.lane.b32.xlu0 %v9344_v39, %s6820_s30 }
 0x48e   :  { %4764 = vrot.lane.b32.xlu1 %v9350_v32, %s6820_s30  ;;  %v9374_v26 = vpop.permute.xlu0 %4752 }
 0x490   :  { %v9376_v16 = vpop.permute.xlu1 %4760  ;;  %5158 = vrot.lane.b32.xlu0 %v9336_v53, %s6821_s0 }
 0x492   :  { %5166 = vrot.lane.b32.xlu1 %v9340_v30, %s6821_s0  ;;  %v9382_v38 = vpop.permute.xlu0 %5154 }
 0x494   :  { %v9384_v23 = vpop.permute.xlu1 %5162  ;;  %5174 = vrot.lane.b32.xlu0 %v9344_v39, %s6821_s0 }
 0x496   :  { %5182 = vrot.lane.b32.xlu1 %v9350_v32, %s6821_s0  ;;  %v9390_v34 = vpop.permute.xlu0 %5170 }
 0x498   :  { %v9392_v13 = vpop.permute.xlu1 %5178  ;;  %5371 = vrot.lane.b32.xlu0 %v9336_v53, %s6822_s7 }
 0x49a   :  { %5379 = vrot.lane.b32.xlu1 %v9340_v30, %s6822_s7  ;;  %v9398_v24 = vpop.permute.xlu0 %5367 }
 0x49b   :  { %10645 = vst [vmem:[#allocation55_spill] sm:$0xff] %v9398_v24 }
 0x49c   :  { %v9400_v3 = vpop.permute.xlu1 %5375  ;;  %5387 = vrot.lane.b32.xlu0 %v9344_v39, %s6822_s7 }
 0x49e   :  { %5395 = vrot.lane.b32.xlu1 %v9350_v32, %s6822_s7  ;;  %v9406_v62 = vpop.permute.xlu0 %5383 }
 0x49f   :  { %10646 = vst [vmem:[#allocation54_spill] sm:$0xff] %v9406_v62 }
 0x4a0   :  { %v9408_v35 = vpop.permute.xlu1 %5391  ;;  %5733 = vrot.lane.b32.xlu0 %v9336_v53, %s6823_s8 }
 0x4a1   :  { %10647 = vst [vmem:[#allocation48_spill] sm:$0xff] %v9408_v35 }
 0x4a2   :  { %5741 = vrot.lane.b32.xlu1 %v9340_v30, %s6823_s8  ;;  %v9414_v29 = vpop.permute.xlu0 %5729 }
 0x4a3   :  { %10648 = vst [vmem:[#allocation43_spill] sm:$0xff] %v9414_v29 }
 0x4a4   :  { %v9416_v8 = vpop.permute.xlu1 %5737  ;;  %5749 = vrot.lane.b32.xlu0 %v9344_v39, %s6823_s8 }
 0x4a5   :  { %10649 = vst [vmem:[#allocation51_spill] sm:$0xff] %v9416_v8 }
 0x4a6   :  { %5757 = vrot.lane.b32.xlu1 %v9350_v32, %s6823_s8  ;;  %v9422_v25 = vpop.permute.xlu0 %5745 }
 0x4a7   :  { %10650 = vst [vmem:[#allocation46_spill] sm:$0xff] %v9422_v25 }
 0x4a8   :  { %v9424_v9 = vpop.permute.xlu1 %5753  ;;  %5946 = vrot.lane.b32.xlu0 %v9336_v53, %s6824_s9 }
 0x4a9   :  { %10651 = vst [vmem:[#allocation42_spill] sm:$0xff] %v9424_v9 }
 0x4aa   :  { %5954 = vrot.lane.b32.xlu1 %v9340_v30, %s6824_s9  ;;  %v9430_v28 = vpop.permute.xlu0 %5942 }
 0x4ab   :  { %10652 = vst [vmem:[#allocation39_spill] sm:$0xff] %v9430_v28  ;;  %v4629_v28 = vadd.f32 %v4610_v60, %v9180_v12  ;;  %v4676_v60 = vmul.f32 0.01, %v4660_v5 }
 0x4ac   :  { %v9432_v46 = vpop.permute.xlu1 %5950  ;;  %5962 = vrot.lane.b32.xlu0 %v9344_v39, %s6824_s9 }
 0x4ad   :  { %10653 = vst [vmem:[#allocation44_spill] sm:$0xff] %v9432_v46  ;;  %v4630_v46 = vadd.f32 %v4612_v48, %v9185_v50  ;;  %v4691_v50 = vmax.f32 %v4659_v10, %v4675_v49 }
 0x4ae   :  { %5970 = vrot.lane.b32.xlu1 %v9350_v32, %s6824_s9  ;;  %v9439_v58 = vpop.permute.xlu0 %5958 }
 0x4af   :  { %10654 = vst [vmem:[#allocation41_spill] sm:$0xff] %v9439_v58  ;;  %v4662_v43 = vadd.f32 %v9169_v4, %v4630_v46 }
 0x4b0   :  { %v9442_v47 = vpop.permute.xlu1 %5966  ;;  %6159 = vrot.lane.b32.xlu0 %v9336_v53, %s6825_s10 }
 0x4b1   :  { %10655 = vst [vmem:[#allocation40_spill] sm:$0xff] %v9442_v47  ;;  %v4661_v47 = vadd.f32 %v9169_v4, %v4629_v28  ;;  %v4692_v28 = vmax.f32 %v4660_v5, %v4676_v60  ;;  %v9477_v4 = vadd.f32 %v9167_v18, %v4691_v50 }
 0x4b2   :  { %6167 = vrot.lane.b32.xlu1 %v9340_v30, %s6825_s10  ;;  %v9450_v41 = vpop.permute.xlu0 %6155 }
 0x4b3   :  { %10656 = vst [vmem:[#allocation36_spill] sm:$0xff] %v9450_v41  ;;  %v4677_v40 = vmul.f32 0.01, %v4661_v47  ;;  %10660 = vst [vmem:[#allocation58_spill] sm:$0xff] %v9477_v4  ;;  %v9484_v49 = vadd.f32 %v9167_v18, %v4692_v28 }
 0x4b4   :  { %v9454_v15 = vpop.permute.xlu1 %6163  ;;  %6175 = vrot.lane.b32.xlu0 %v9344_v39, %s6825_s10 }
 0x4b5   :  { %10657 = vst [vmem:[#allocation37_spill] sm:$0xff] %v9454_v15  ;;  %v4678_v15 = vmul.f32 0.01, %v4662_v43  ;;  %v4693_v46 = vmax.f32 %v4661_v47, %v4677_v40  ;;  %10661 = vst [vmem:[#allocation57_spill] sm:$0xff] %v9484_v49 }
 0x4b6   :  { %6183 = vrot.lane.b32.xlu1 %v9350_v32, %s6825_s10  ;;  %v9461_v12 = vpop.permute.xlu0 %6171 }
 0x4b7   :  { %10658 = vst [vmem:[#allocation50_spill] sm:$0xff] %v9461_v12  ;;  %v9491_v60 = vadd.f32 %v9167_v18, %v4693_v46 }
 0x4b8   :  { %v9464_v41 = vpop.permute.xlu1 %6179  ;;  %6372 = vrot.lane.b32.xlu0 %v9336_v53, %s6826_s11 }
 0x4b9   :  { %10659 = vst [vmem:[#allocation38_spill] sm:$0xff] %v9464_v41  ;;  %v4694_v41 = vmax.f32 %v4662_v43, %v4678_v15  ;;  %10662 = vst [vmem:[#allocation56_spill] sm:$0xff] %v9491_v60 }
 0x4ba   :  { %6380 = vrot.lane.b32.xlu1 %v9340_v30, %s6826_s11  ;;  %v9470_v48 = vpop.permute.xlu0 %4802 }
 0x4bb   :  { %v9496_v50 = vadd.f32 %v9167_v18, %v4694_v41 }
 0x4bc   :  { %v9472_v58 = vpop.permute.xlu1 %4810  ;;  %6388 = vrot.lane.b32.xlu0 %v9344_v39, %s6826_s11 }
 0x4bd   :  { %10663 = vst [vmem:[#allocation49_spill] sm:$0xff] %v9496_v50 }
 0x4be   :  { %6396 = vrot.lane.b32.xlu1 %v9350_v32, %s6826_s11  ;;  %v9481_v10 = vpop.permute.xlu0 %4818 }
 0x4c0   :  { %v9486_v5 = vpop.permute.xlu1 %4826  ;;  %4806 = vrot.lane.b32.xlu0 %v9477_v4, %s6819_s25 }
 0x4c2   :  { %4814 = vrot.lane.b32.xlu1 %v9484_v49, %s6819_s25  ;;  %v4739_v47 = vpop.permute.xlu0 %4738 }
 0x4c4   :  { %v4747_v40 = vpop.permute.xlu1 %4746  ;;  %4822 = vrot.lane.b32.xlu0 %v9491_v60, %s6819_s25 }
 0x4c5   :  { %v9502_v15 = vsel %vm81_vm1, %v4739_v47, %v4747_v40 }
 0x4c6   :  { %4830 = vrot.lane.b32.xlu1 %v9496_v50, %s6819_s25  ;;  %v4755_v43 = vpop.permute.xlu0 %4754 }
 0x4c7   :  { %v9508_v28 = vsel %vm81_vm1, %v4747_v40, %v4755_v43 }
 0x4c8   :  { %v4763_v46 = vpop.permute.xlu1 %4762  ;;  %4742 = vrot.lane.b32.xlu0 %v9477_v4, %s6820_s30 }
 0x4c9   :  { %v9514_v18 = vsel %vm81_vm1, %v4755_v43, %v4763_v46  ;;  %v9518_v41 = vsel %vm81_vm1, %v4763_v46, %v4739_v47 }
 0x4ca   :  { %4750 = vrot.lane.b32.xlu1 %v9484_v49, %s6820_s30  ;;  %v5157_v12 = vpop.permute.xlu0 %5156 }
 0x4cc   :  { %v5165_v9 = vpop.permute.xlu1 %5164  ;;  %4758 = vrot.lane.b32.xlu0 %v9491_v60, %s6820_s30 }
 0x4cd   :  { %v9526_v40 = vsel %vm528_vm3, %v5157_v12, %v5165_v9 }
 0x4ce   :  { %4766 = vrot.lane.b32.xlu1 %v9496_v50, %s6820_s30  ;;  %v5173_v43 = vpop.permute.xlu0 %5172 }
 0x4cf   :  { %v9532_v47 = vsel %vm528_vm3, %v5165_v9, %v5173_v43 }
 0x4d0   :  { %v5181_v46 = vpop.permute.xlu1 %5180  ;;  %5160 = vrot.lane.b32.xlu0 %v9477_v4, %s6821_s0 }
 0x4d1   :  { %v9538_v29 = vsel %vm528_vm3, %v5173_v43, %v5181_v46  ;;  %v9542_v8 = vsel %vm528_vm3, %v5181_v46, %v5157_v12 }
 0x4d2   :  { %5168 = vrot.lane.b32.xlu1 %v9484_v49, %s6821_s0  ;;  %v5370_v25 = vpop.permute.xlu0 %5369 }
 0x4d4   :  { %v5378_v51 = vpop.permute.xlu1 %5377  ;;  %5176 = vrot.lane.b32.xlu0 %v9491_v60, %s6821_s0 }
 0x4d5   :  { %v9550_v9 = vsel %vm767_vm4, %v5370_v25, %v5378_v51 }
 0x4d6   :  { %10664 = vst [vmem:[#allocation53_spill] sm:$0xff] %v9550_v9  ;;  %5184 = vrot.lane.b32.xlu1 %v9496_v50, %s6821_s0  ;;  %v5386_v43 = vpop.permute.xlu0 %5385 }
 0x4d7   :  { %v9556_v12 = vsel %vm767_vm4, %v5378_v51, %v5386_v43 }
 0x4d8   :  { %10665 = vst [vmem:[#allocation45_spill] sm:$0xff] %v9556_v12  ;;  %v5394_v46 = vpop.permute.xlu1 %5393  ;;  %5373 = vrot.lane.b32.xlu0 %v9477_v4, %s6822_s7 }
 0x4d9   :  { %v9562_v55 = vsel %vm767_vm4, %v5386_v43, %v5394_v46  ;;  %v9566_v39 = vsel %vm767_vm4, %v5394_v46, %v5370_v25 }
 0x4da   :  { %10666 = vst [vmem:[#allocation59_spill] sm:$0xff] %v9562_v55  ;;  %10667 = vst [vmem:[#allocation3_spill] sm:$0xff] %v9566_v39  ;;  %5381 = vrot.lane.b32.xlu1 %v9484_v49, %s6822_s7  ;;  %v5732_v32 = vpop.permute.xlu0 %5731 }
 0x4dc   :  { %v5740_v53 = vpop.permute.xlu1 %5739  ;;  %5389 = vrot.lane.b32.xlu0 %v9491_v60, %s6822_s7 }
 0x4dd   :  { %v9574_v51 = vsel %vm1212_vm5, %v5732_v32, %v5740_v53 }
 0x4de   :  { %10668 = vst [vmem:[#allocation47_spill] sm:$0xff] %v9574_v51  ;;  %5397 = vrot.lane.b32.xlu1 %v9496_v50, %s6822_s7  ;;  %v5748_v43 = vpop.permute.xlu0 %5747 }
 0x4df   :  { %v9580_v25 = vsel %vm1212_vm5, %v5740_v53, %v5748_v43 }
 0x4e0   :  { %10669 = vst [vmem:[#allocation60_spill] sm:$0xff] %v9580_v25  ;;  %v5756_v46 = vpop.permute.xlu1 %5755  ;;  %6370 = vrot.lane.b32.xlu0 %v9261_v33, %s6826_s11 }
 0x4e1   :  { %v9586_v30 = vsel %vm1212_vm5, %v5748_v43, %v5756_v46  ;;  %v9590_v12 = vsel %vm1212_vm5, %v5756_v46, %v5732_v32 }
 0x4e2   :  { %10670 = vst [vmem:[#allocation61_spill] sm:$0xff] %v9586_v30  ;;  %10671 = vst [vmem:[#allocation62_spill] sm:$0xff] %v9590_v12  ;;  %6378 = vrot.lane.b32.xlu1 %v9266_v20, %s6826_s11  ;;  %v5945_v51 = vpop.permute.xlu0 %5944 }
 0x4e4   :  { %v5953_v55 = vpop.permute.xlu1 %5952  ;;  %5735 = vrot.lane.b32.xlu0 %v9477_v4, %s6823_s8 }
 0x4e5   :  { %v9598_v53 = vsel %vm1451_vm6, %v5945_v51, %v5953_v55 }
 0x4e6   :  { %10672 = vst [vmem:[#allocation63_spill] sm:$0xff] %v9598_v53  ;;  %6394 = vrot.lane.b32.xlu1 %v9276_v56, %s6826_s11  ;;  %v5961_v43 = vpop.permute.xlu0 %5960 }
 0x4e7   :  { %v9604_v32 = vsel %vm1451_vm6, %v5953_v55, %v5961_v43 }
 0x4e8   :  { %10673 = vst [vmem:[#allocation64_spill] sm:$0xff] %v9604_v32  ;;  %v5969_v46 = vpop.permute.xlu1 %5968  ;;  %5751 = vrot.lane.b32.xlu0 %v9491_v60, %s6823_s8 }
 0x4e9   :  { %v9610_v30 = vsel %vm1451_vm6, %v5961_v43, %v5969_v46  ;;  %v9614_v12 = vsel %vm1451_vm6, %v5969_v46, %v5945_v51 }
 0x4ea   :  { %10674 = vst [vmem:[#allocation65_spill] sm:$0xff] %v9610_v30  ;;  %10675 = vst [vmem:[#allocation66_spill] sm:$0xff] %v9614_v12  ;;  %5743 = vrot.lane.b32.xlu1 %v9484_v49, %s6823_s8  ;;  %v6158_v53 = vpop.permute.xlu0 %6157 }
 0x4ec   :  { %v6166_v25 = vpop.permute.xlu1 %6165  ;;  %5948 = vrot.lane.b32.xlu0 %v9477_v4, %s6824_s9 }
 0x4ed   :  { %v9622_v55 = vsel %vm1690_vm7, %v6158_v53, %v6166_v25 }
 0x4ee   :  { %10676 = vst [vmem:[#allocation67_spill] sm:$0xff] %v9622_v55  ;;  %5759 = vrot.lane.b32.xlu1 %v9496_v50, %s6823_s8  ;;  %v6174_v43 = vpop.permute.xlu0 %6173 }
 0x4ef   :  { %v9628_v51 = vsel %vm1690_vm7, %v6166_v25, %v6174_v43 }
 0x4f0   :  { %10677 = vst [vmem:[#allocation68_spill] sm:$0xff] %v9628_v51  ;;  %v6182_v46 = vpop.permute.xlu1 %6181  ;;  %5964 = vrot.lane.b32.xlu0 %v9491_v60, %s6824_s9 }
 0x4f1   :  { %v9634_v30 = vsel %vm1690_vm7, %v6174_v43, %v6182_v46  ;;  %v9638_v12 = vsel %vm1690_vm7, %v6182_v46, %v6158_v53 }
 0x4f2   :  { %10678 = vst [vmem:[#allocation69_spill] sm:$0xff] %v9634_v30  ;;  %10679 = vst [vmem:[#allocation70_spill] sm:$0xff] %v9638_v12  ;;  %5956 = vrot.lane.b32.xlu1 %v9484_v49, %s6824_s9  ;;  %v4805_v55 = vpop.permute.xlu0 %4804 }
 0x4f4   :  { %v4813_v32 = vpop.permute.xlu1 %4812  ;;  %6161 = vrot.lane.b32.xlu0 %v9477_v4, %s6825_s10 }
 0x4f5   :  { %v9646_v25 = vsel %vm114_vm0, %v4805_v55, %v4813_v32 }
 0x4f6   :  { %5972 = vrot.lane.b32.xlu1 %v9496_v50, %s6824_s9  ;;  %v4821_v43 = vpop.permute.xlu0 %4820 }
 0x4f7   :  { %v9652_v53 = vsel %vm114_vm0, %v4813_v32, %v4821_v43 }
 0x4f8   :  { %v4829_v46 = vpop.permute.xlu1 %4828  ;;  %6177 = vrot.lane.b32.xlu0 %v9491_v60, %s6825_s10 }
 0x4f9   :  { %v9658_v30 = vsel %vm114_vm0, %v4821_v43, %v4829_v46  ;;  %v9662_v12 = vsel %vm114_vm0, %v4829_v46, %v4805_v55 }
 0x4fa   :  { %6169 = vrot.lane.b32.xlu1 %v9484_v49, %s6825_s10  ;;  %v4741_v51 = vpop.permute.xlu0 %4740 }
 0x4fc   :  { %v4749_v56 = vpop.permute.xlu1 %4748  ;;  %6374 = vrot.lane.b32.xlu0 %v9477_v4, %s6826_s11 }
 0x4fd   :  { %v9670_v32 = vsel %vm81_vm1, %v4741_v51, %v4749_v56 }
 0x4fe   :  { %6185 = vrot.lane.b32.xlu1 %v9496_v50, %s6825_s10  ;;  %v4757_v43 = vpop.permute.xlu0 %4756 }
 0x4ff   :  { %v9676_v55 = vsel %vm81_vm1, %v4749_v56, %v4757_v43 }
 0x500   :  { %v4765_v46 = vpop.permute.xlu1 %4764  ;;  %6390 = vrot.lane.b32.xlu0 %v9491_v60, %s6826_s11 }
 0x501   :  { %v9682_v33 = vsel %vm81_vm1, %v4757_v43, %v4765_v46  ;;  %v9686_v20 = vsel %vm81_vm1, %v4765_v46, %v4741_v51 }
 0x502   :  { %6382 = vrot.lane.b32.xlu1 %v9484_v49, %s6826_s11  ;;  %v5159_v4 = vpop.permute.xlu0 %5158 }
 0x504   :  { %v5167_v39 = vpop.permute.xlu1 %5166  ;;  %6386 = vrot.lane.b32.xlu0 %v9271_v63, %s6826_s11 }
 0x505   :  { %v9694_v56 = vsel %vm528_vm3, %v5159_v4, %v5167_v39 }
 0x506   :  { %6398 = vrot.lane.b32.xlu1 %v9496_v50, %s6826_s11  ;;  %v5175_v43 = vpop.permute.xlu0 %5174 }
 0x507   :  { %v9700_v51 = vsel %vm528_vm3, %v5167_v39, %v5175_v43 }
 0x508   :  { %v5183_v46 = vpop.permute.xlu1 %5182  ;;  %6368 = vrot.lane.b32.xlu0 %v9190_v37, %s6826_s11 }
 0x509   :  { %v9706_v60 = vsel %vm528_vm3, %v5175_v43, %v5183_v46  ;;  %v9710_v63 = vsel %vm528_vm3, %v5183_v46, %v5159_v4 }
 0x50a   :  { %6376 = vrot.lane.b32.xlu1 %v9192_v11, %s6826_s11  ;;  %v5372_v50 = vpop.permute.xlu0 %5371 }
 0x50c   :  { %v5380_v49 = vpop.permute.xlu1 %5379  ;;  %6384 = vrot.lane.b32.xlu0 %v9196_v0, %s6826_s11 }
 0x50d   :  { %v9718_v39 = vsel %vm767_vm4, %v5372_v50, %v5380_v49 }
 0x50e   :  { %6392 = vrot.lane.b32.xlu1 %v9200_v57, %s6826_s11  ;;  %v5388_v43 = vpop.permute.xlu0 %5387  ;;  %v6831_v57 = vmov 4  }
 0x50f   :  { %v9724_v4 = vsel %vm767_vm4, %v5380_v49, %v5388_v43  ;;  %6812 = vset.pattern.permute.xlu0 %v6831_v57  ;;  %v6817_v49 = vld [vmem:[%s10326_s5] sm:$0xff] }
 0x510   :  { %10680 = vst [vmem:[#allocation71_spill] sm:$0xff] %v9724_v4  ;;  %v5396_v46 = vpop.permute.xlu1 %5395  ;;  %6582 = vperm.xlu0 %6812, %v6817_v49  }
 0x511   :  { %v9728_v37 = vsel %vm767_vm4, %v5388_v43, %v5396_v46  ;;  %v9732_v0 = vsel %vm767_vm4, %v5396_v46, %v5372_v50 }
 0x512   :  { %10681 = vst [vmem:[#allocation72_spill] sm:$0xff] %v9728_v37  ;;  %10682 = vst [vmem:[#allocation73_spill] sm:$0xff] %v9732_v0  ;;  %v5734_v11 = vpop.permute.xlu0 %5733 }
 0x514   :  { %v5742_v62 = vpop.permute.xlu1 %5741 }
 0x515   :  { %v9736_v9 = vsel %vm1212_vm5, %v5734_v11, %v5742_v62 }
 0x516   :  { %10683 = vst [vmem:[#allocation74_spill] sm:$0xff] %v9736_v9  ;;  %v5750_v35 = vpop.permute.xlu0 %5749 }
 0x517   :  { %v9743_v43 = vsel %vm1212_vm5, %v5742_v62, %v5750_v35 }
 0x518   :  { %10684 = vst [vmem:[#allocation75_spill] sm:$0xff] %v9743_v43  ;;  %v5758_v50 = vpop.permute.xlu1 %5757 }
 0x519   :  { %v9747_v46 = vsel %vm1212_vm5, %v5750_v35, %v5758_v50  ;;  %v9751_v9 = vsel %vm1212_vm5, %v5758_v50, %v5734_v11 }
 0x51a   :  { %10685 = vst [vmem:[#allocation76_spill] sm:$0xff] %v9747_v46  ;;  %10686 = vst [vmem:[#allocation77_spill] sm:$0xff] %v9751_v9  ;;  %v5947_v57 = vpop.permute.xlu0 %5946 }
 0x51c   :  { %v5955_v4 = vpop.permute.xlu1 %5954 }
 0x51d   :  { %v9755_v37 = vsel %vm1451_vm6, %v5947_v57, %v5955_v4 }
 0x51e   :  { %10687 = vst [vmem:[#allocation78_spill] sm:$0xff] %v9755_v37  ;;  %v5963_v49 = vpop.permute.xlu0 %5962 }
 0x51f   :  { %v9759_v62 = vsel %vm1451_vm6, %v5955_v4, %v5963_v49 }
 0x520   :  { %10688 = vst [vmem:[#allocation79_spill] sm:$0xff] %v9759_v62  ;;  %v5971_v43 = vpop.permute.xlu1 %5970 }
 0x521   :  { %v9763_v35 = vsel %vm1451_vm6, %v5963_v49, %v5971_v43  ;;  %v9767_v11 = vsel %vm1451_vm6, %v5971_v43, %v5947_v57 }
 0x522   :  { %10689 = vst [vmem:[#allocation80_spill] sm:$0xff] %v9763_v35  ;;  %10690 = vst [vmem:[#allocation81_spill] sm:$0xff] %v9767_v11  ;;  %v6160_v50 = vpop.permute.xlu0 %6159 }
 0x524   :  { %v6168_v46 = vpop.permute.xlu1 %6167 }
 0x525   :  { %v9771_v9 = vsel %vm1690_vm7, %v6160_v50, %v6168_v46 }
 0x526   :  { %10691 = vst [vmem:[#allocation82_spill] sm:$0xff] %v9771_v9  ;;  %v6176_v37 = vpop.permute.xlu0 %6175 }
 0x527   :  { %v9775_v4 = vsel %vm1690_vm7, %v6168_v46, %v6176_v37 }
 0x528   :  { %10692 = vst [vmem:[#allocation83_spill] sm:$0xff] %v9775_v4  ;;  %v6184_v62 = vpop.permute.xlu1 %6183 }
 0x529   :  { %v9779_v49 = vsel %vm1690_vm7, %v6176_v37, %v6184_v62  ;;  %v9783_v43 = vsel %vm1690_vm7, %v6184_v62, %v6160_v50 }
 0x52a   :  { %10693 = vst [vmem:[#allocation84_spill] sm:$0xff] %v9779_v49  ;;  %10694 = vst [vmem:[#allocation85_spill] sm:$0xff] %v9783_v43  ;;  %v6373_v57 = vpop.permute.xlu0 %6372 }
 0x52c   :  { %v6381_v35 = vpop.permute.xlu1 %6380 }
 0x52d   :  { %v9787_v11 = vsel %vm1929_vm8, %v6373_v57, %v6381_v35 }
 0x52e   :  { %10695 = vst [vmem:[#allocation86_spill] sm:$0xff] %v9787_v11  ;;  %v6389_v9 = vpop.permute.xlu0 %6388 }
 0x52f   :  { %v9791_v46 = vsel %vm1929_vm8, %v6381_v35, %v6389_v9  ;;  %v4840_v35 = vsel %vm114_vm0, %v9348_v21, %v9352_v36 }
 0x530   :  { %10696 = vst [vmem:[#allocation87_spill] sm:$0xff] %v9791_v46  ;;  %v6397_v4 = vpop.permute.xlu1 %6396 }
 0x531   :  { %v9795_v37 = vsel %vm1929_vm8, %v6389_v9, %v6397_v4  ;;  %v9799_v62 = vsel %vm1929_vm8, %v6397_v4, %v6373_v57  ;;  %v4836_v4 = vsel %vm114_vm0, %v9352_v36, %v9358_v59  ;;  %v4841_v36 = vsel %vm114_vm0, %v9470_v48, %v9472_v58 }
 0x532   :  { %10697 = vst [vmem:[#allocation88_spill] sm:$0xff] %v9795_v37  ;;  %10698 = vst [vmem:[#allocation89_spill] sm:$0xff] %v9799_v62  ;;  %v4807_v50 = vpop.permute.xlu0 %4806 }
 0x534   :  { %v4815_v49 = vpop.permute.xlu1 %4814 }
 0x535   :  { %v4843_v43 = vsel %vm114_vm0, %v4807_v50, %v4815_v49 }
 0x536   :  { %v4861_v11 = vmul.f32 %v4843_v43, %v10574_v7  ;;  %v4823_v0 = vpop.permute.xlu0 %4822  ;;  %v4832_v43 = vsel %vm114_vm0, %v9358_v59, %v9360_v42 }
 0x537   :  { %v4839_v9 = vsel %vm114_vm0, %v4815_v49, %v4823_v0 }
 0x538   :  { %v4831_v37 = vpop.permute.xlu1 %4830  ;;  %4891 = vmatprep.subr.mxu0 %v4861_v11  ;;  %v4844_v11 = vsel %vm114_vm0, %v9360_v42, %v9348_v21  ;;  %v4845_v21 = vsel %vm114_vm0, %v9486_v5, %v9470_v48  ;;  %v4857_v42 = vmul.f32 %v9646_v25, %v10574_v7  ;;  %v4858_v48 = vmul.f32 %v9652_v53, %v10578_v52 }
 0x539   :  { %v4835_v57 = vsel %vm114_vm0, %v4823_v0, %v4831_v37  ;;  %v4847_v62 = vsel %vm114_vm0, %v4831_v37, %v4807_v50  ;;  %v4833_v0 = vsel %vm114_vm0, %v9481_v10, %v9486_v5  ;;  %v4862_v37 = vmul.f32 %v4839_v9, %v10578_v52 }
 0x53a   :  { %v4860_v49 = vmul.f32 %v4847_v62, %v10575_v54  ;;  %v4863_v59 = vmul.f32 %v4835_v57, %v10577_v44  ;;  %v4743_v46 = vpop.permute.xlu0 %4742  ;;  %v4837_v62 = vsel %vm114_vm0, %v9472_v58, %v9481_v10  ;;  %v4856_v50 = vmul.f32 %v9662_v12, %v10575_v54 }
 0x53b   :  { %v4859_v57 = vmul.f32 %v9658_v30, %v10577_v44  ;;  %v4853_v25 = vmul.f32 %v4841_v36, %v10574_v7  ;;  %v4852_v58 = vmul.f32 %v4845_v21, %v10575_v54  ;;  %v4855_v10 = vmul.f32 %v4833_v0, %v10577_v44 }
 0x53c   :  { %v4751_v24 = vpop.permute.xlu1 %4750  ;;  %4892 = vmatpush1.msra.mxu0 %v4860_v49  ;;  %4962 = vmatprep.subr.mxu1 %v4863_v59  ;;  %v4849_v12 = vmul.f32 %v4840_v35, %v10574_v7  ;;  %v4850_v9 = vmul.f32 %v4836_v4, %v10578_v52  ;;  %v4848_v53 = vmul.f32 %v4844_v11, %v10575_v54  ;;  %v4728_v4 = vld [vmem:[%s10328_s4 + $0x1] sm:$0x1] }
 0x53d   :  { %v4779_v5 = vsel %vm81_vm1, %v4743_v46, %v4751_v24  ;;  %4893 = vmatprep.subr.mxu0 %v4857_v42  ;;  %4963 = vmatpush1.msra.mxu1 %v4862_v37  ;;  %v4854_v49 = vmul.f32 %v4837_v62, %v10578_v52  ;;  %v4776_v36 = vsel %vm81_vm1, %v9366_v14, %v9368_v27 }
 0x53e   :  { %4894 = vmatpush1.msra.mxu0 %v4856_v50  ;;  %4964 = vmatprep.subr.mxu1 %v4859_v57  ;;  %v4759_v30 = vpop.permute.xlu0 %4758  ;;  %v4797_v59 = vmul.f32 %v4779_v5, %v10579_v19  ;;  %v4851_v7 = vmul.f32 %v4832_v43, %v10577_v44  ;;  %v4785_v42 = vmul.f32 %v4776_v36, %v10579_v19 }
 0x53f   :  { %4895 = vmatprep.subr.mxu0 %v4853_v25  ;;  %4965 = vmatpush1.msra.mxu1 %v4858_v48  ;;  %v4775_v35 = vsel %vm81_vm1, %v4751_v24, %v4759_v30  ;;  %v4793_v24 = vmul.f32 %v9670_v32, %v10579_v19  ;;  %v4780_v37 = vsel %vm81_vm1, %v9376_v16, %v9366_v14 }
 0x540   :  { %v4767_v0 = vpop.permute.xlu1 %4766  ;;  %4896 = vmatpush1.msra.mxu0 %v4852_v58  ;;  %4966 = vmatprep.subr.mxu1 %v4855_v10  ;;  %v4792_v62 = vmul.f32 %v9686_v20, %v10581_v17  ;;  %v4795_v50 = vmul.f32 %v9682_v33, %v10582_v1  ;;  %v4768_v32 = vsel %vm81_vm1, %v9374_v26, %v9376_v16  ;;  %v4727_v58 = vld [vmem:[%s10328_s4] sm:$0x1] }
 0x541   :  { %v4771_v54 = vsel %vm81_vm1, %v4759_v30, %v4767_v0  ;;  %v4783_v52 = vsel %vm81_vm1, %v4767_v0, %v4743_v46  ;;  %4897 = vmatprep.subr.mxu0 %v4849_v12  ;;  %4967 = vmatpush1.msra.mxu1 %v4854_v49  ;;  %v4798_v46 = vmul.f32 %v4775_v35, %v10583_v22 }
 0x542   :  { %v4796_v11 = vmul.f32 %v4783_v52, %v10581_v17  ;;  %v4799_v21 = vmul.f32 %v4771_v54, %v10582_v1  ;;  %4898 = vmatpush1.msra.mxu0 %v4848_v53  ;;  %4968 = vmatprep.subr.mxu1 %v4851_v7  ;;  %v5161_v44 = vpop.permute.xlu0 %5160  ;;  %v4789_v57 = vmul.f32 %v9502_v15, %v10579_v19 }
 0x543   :  { %4969 = vmatpush1.msra.mxu1 %v4850_v9  ;;  %5036 = vmatprep.subr.mxu0 %v4797_v59  ;;  %v4794_v14 = vmul.f32 %v9676_v55, %v10583_v22  ;;  %v4772_v33 = vsel %vm81_vm1, %v9368_v27, %v9374_v26  ;;  %v4788_v48 = vmul.f32 %v9518_v41, %v10581_v17  ;;  %v10699_v9 = vld [vmem:[#allocation15_spill] sm:$0xff] }
 0x544   :  { %v5169_v43 = vpop.permute.xlu1 %5168  ;;  %6771 = vmatmul.mubr.msk.f32.vlgmr.msra.gmra.mxu0 %vm2424_vm9, %v4728_v4  ;;  %5107 = vmatprep.subr.mxu1 %v4799_v21  ;;  %v4791_v16 = vmul.f32 %v9514_v18, %v10582_v1  ;;  %v4784_v19 = vmul.f32 %v4780_v37, %v10581_v17  ;;  %v4790_v15 = vmul.f32 %v9508_v28, %v10583_v22  ;;  %v10703_v37 = vld [vmem:[#allocation19_spill] sm:$0xff] }
 0x545   :  { %5037 = vmatpush1.msra.mxu0 %v4796_v11  ;;  %6772 = vmatmul.mubr.msk.f32.vlgmr.msra.gmra.mxu1 %vm2424_vm9, %v4728_v4  ;;  %v5197_v55 = vsel %vm528_vm3, %v5161_v44, %v5169_v43  ;;  %v4787_v18 = vmul.f32 %v4768_v32, %v10582_v1  ;;  %v4786_v17 = vmul.f32 %v4772_v33, %v10583_v22  ;;  %v10700_v11 = vld [vmem:[#allocation18_spill] sm:$0xff]  ;;  %v10704_v32 = vld [vmem:[#allocation55_spill] sm:$0xff]  ;;  %v10706_v33 = vld [vmem:[#allocation72_spill] sm:$0xff] }
 0x546   :  { %5038 = vmatprep.subr.mxu0 %v4793_v24  ;;  %5108 = vmatpush1.msra.mxu1 %v4798_v46  ;;  %v5177_v20 = vpop.permute.xlu0 %5176  ;;  %v5194_v28 = vsel %vm528_vm3, %v9382_v38, %v9384_v23  ;;  %v5215_v10 = vmul.f32 %v5197_v55, %v10584_v45  ;;  %v5211_v12 = vmul.f32 %v9694_v56, %v10584_v45  ;;  %v10702_v46 = vld [vmem:[#allocation16_spill] sm:$0xff]  ;;  %v10709_v55 = vld [vmem:[#allocation71_spill] sm:$0xff] }
 0x547   :  { %5039 = vmatpush1.msra.mxu0 %v4792_v62  ;;  %5109 = vmatprep.subr.mxu1 %v4795_v50  ;;  %v5193_v1 = vsel %vm528_vm3, %v5169_v43, %v5177_v20  ;;  %v5203_v36 = vmul.f32 %v5194_v28, %v10584_v45  ;;  %v5190_v59 = vsel %vm528_vm3, %v9384_v23, %v9390_v34 }
 0x548   :  { %5040 = vmatprep.subr.mxu0 %v4789_v57  ;;  %5110 = vmatpush1.msra.mxu1 %v4794_v14  ;;  %v5185_v5 = vpop.permute.xlu1 %5184  ;;  %v5216_v53 = vmul.f32 %v5193_v1, %v10699_v9  ;;  %v5210_v0 = vmul.f32 %v9710_v63, %v10585_v61  ;;  %v5213_v7 = vmul.f32 %v9706_v60, %v10586_v6  ;;  %v10705_v14 = vld [vmem:[#allocation73_spill] sm:$0xff] }
 0x549   :  { %v5189_v27 = vsel %vm528_vm3, %v5177_v20, %v5185_v5  ;;  %v5201_v26 = vsel %vm528_vm3, %v5185_v5, %v5161_v44  ;;  %5041 = vmatpush1.msra.mxu0 %v4788_v48  ;;  %5111 = vmatprep.subr.mxu1 %v4791_v16  ;;  %v5198_v56 = vsel %vm528_vm3, %v9392_v13, %v9382_v38  ;;  %v10701_v44 = vld [vmem:[#allocation17_spill] sm:$0xff] }
 0x54a   :  { %v5214_v41 = vmul.f32 %v5201_v26, %v10585_v61  ;;  %5042 = vmatprep.subr.mxu0 %v4785_v42  ;;  %5112 = vmatpush1.msra.mxu1 %v4790_v15  ;;  %v5374_v25 = vpop.permute.xlu0 %5373  ;;  %v5217_v22 = vmul.f32 %v5189_v27, %v10586_v6  ;;  %v5207_v35 = vmul.f32 %v9526_v40, %v10584_v45  ;;  %v10710_v26 = vld [vmem:[#allocation54_spill] sm:$0xff] }
 0x54b   :  { %5043 = vmatpush1.msra.mxu0 %v4784_v19  ;;  %5113 = vmatprep.subr.mxu1 %v4787_v18  ;;  %v5212_v23 = vmul.f32 %v9700_v51, %v10699_v9  ;;  %v5186_v60 = vsel %vm528_vm3, %v9390_v34, %v9392_v13  ;;  %v5206_v54 = vmul.f32 %v9542_v8, %v10585_v61  ;;  %v4729_v8 = vld [vmem:[%s10328_s4 + $0x2] sm:$0x1]  ;;  %v10708_v19 = vld [vmem:[#allocation53_spill] sm:$0xff] }
 0x54c   :  { %5076 = vmatprep.mubr.f32.mxu0 %v10580_v31  ;;  %5114 = vmatpush1.msra.mxu1 %v4786_v17  ;;  %v5382_v30 = vpop.permute.xlu1 %5381  ;;  %v5209_v38 = vmul.f32 %v9538_v29, %v10586_v6  ;;  %v5208_v45 = vmul.f32 %v9532_v47, %v10699_v9  ;;  %v5202_v13 = vmul.f32 %v5198_v56, %v10585_v61  ;;  %v10711_v17 = vld [vmem:[#allocation3_spill] sm:$0xff]  ;;  %v10716_v56 = vld [vmem:[#allocation49_spill] sm:$0xff] }
 0x54d   :  { %5245 = vmatprep.subr.mxu0 %v5215_v10  ;;  %6773 = vmatmul.mubr.msk.f32.vlgmr.msra.gmra.mxu0 %vm2424_vm9, %v4727_v58  ;;  %v5410_v29 = vsel %vm767_vm4, %v5374_v25, %v5382_v30  ;;  %v5204_v47 = vmul.f32 %v5190_v59, %v10699_v9  ;;  %v5205_v52 = vmul.f32 %v5186_v60, %v10586_v6  ;;  %v10713_v10 = vld [vmem:[#allocation45_spill] sm:$0xff]  ;;  %v4730_v9 = vld [vmem:[%s10328_s4 + $0x3] sm:$0x1]  ;;  %v10719_v60 = vld [vmem:[#allocation12_spill] sm:$0xff] }
 0x54e   :  { %5147 = vmatprep.mubr.f32.mxu1 %v10580_v31  ;;  %5246 = vmatpush1.msra.mxu0 %v5214_v41  ;;  %v5390_v49 = vpop.permute.xlu0 %5389  ;;  %v5428_v43 = vmul.f32 %v5410_v29, %v10702_v46  ;;  %v5424_v6 = vmul.f32 %v9718_v39, %v10702_v46  ;;  %v5407_v57 = vsel %vm767_vm4, %v10704_v32, %v9400_v3  ;;  %v10707_v39 = vld [vmem:[#allocation48_spill] sm:$0xff]  ;;  %v10712_v41 = vld [vmem:[#allocation59_spill] sm:$0xff]  ;;  %v10714_v59 = vld [vmem:[#allocation57_spill] sm:$0xff] }
 0x54f   :  { %5316 = vmatprep.subr.mxu1 %v5217_v22  ;;  %6774 = vmatmul.mubr.msk.f32.vlgmr.msra.gmra.mxu1 %vm2424_vm9, %v4727_v58  ;;  %v5406_v61 = vsel %vm767_vm4, %v5382_v30, %v5390_v49  ;;  %v5423_v20 = vmul.f32 %v10705_v14, %v10700_v11  ;;  %v5426_v48 = vmul.f32 %v10706_v33, %v10701_v44  ;;  %v10732_v14 = vld [vmem:[#allocation46_spill] sm:$0xff] }
 0x550   :  { %5247 = vmatprep.subr.mxu0 %v5211_v12  ;;  %5317 = vmatpush1.msra.mxu1 %v5216_v53  ;;  %v5398_v63 = vpop.permute.xlu1 %5397  ;;  %v5429_v62 = vmul.f32 %v5406_v61, %v10703_v37  ;;  %v5411_v16 = vsel %vm767_vm4, %v10707_v39, %v10704_v32  ;;  %v5420_v15 = vmul.f32 %v10708_v19, %v10702_v46  ;;  %v10736_v19 = vld [vmem:[#allocation75_spill] sm:$0xff] }
 0x551   :  { %5248 = vmatpush1.msra.mxu0 %v5210_v0  ;;  %5318 = vmatprep.subr.mxu1 %v5213_v7  ;;  %v5402_v40 = vsel %vm767_vm4, %v5390_v49, %v5398_v63  ;;  %v5414_v51 = vsel %vm767_vm4, %v5398_v63, %v5374_v25  ;;  %v5425_v5 = vmul.f32 %v10709_v55, %v10703_v37  ;;  %v10715_v7 = vld [vmem:[#allocation58_spill] sm:$0xff] }
 0x552   :  { %5249 = vmatprep.subr.mxu0 %v5207_v35  ;;  %5319 = vmatpush1.msra.mxu1 %v5212_v23  ;;  %v9970_v34 = vpop.permute.xlu0 %6370  ;;  %v5427_v21 = vmul.f32 %v5414_v51, %v10700_v11  ;;  %v5430_v24 = vmul.f32 %v5402_v40, %v10701_v44  ;;  %v5399_v18 = vsel %vm767_vm4, %v10710_v26, %v10707_v39  ;;  %v10717_v35 = vld [vmem:[#allocation14_spill] sm:$0xff]  ;;  %v10718_v23 = vld [vmem:[#allocation56_spill] sm:$0xff] }
 0x553   :  { %5250 = vmatpush1.msra.mxu0 %v5206_v54  ;;  %5320 = vmatprep.subr.mxu1 %v5209_v38  ;;  %v5419_v28 = vmul.f32 %v10711_v17, %v10700_v11  ;;  %v5422_v25 = vmul.f32 %v10712_v41, %v10701_v44  ;;  %v5403_v58 = vsel %vm767_vm4, %v9400_v3, %v10710_v26  ;;  %v10720_v54 = vld [vmem:[#allocation52_spill] sm:$0xff]  ;;  %v10721_v38 = vld [vmem:[#allocation9_spill] sm:$0xff]  ;;  %v10738_v26 = vld [vmem:[#allocation74_spill] sm:$0xff] }
 0x554   :  { %5251 = vmatprep.subr.mxu0 %v5203_v36  ;;  %5321 = vmatpush1.msra.mxu1 %v5208_v45  ;;  %v9980_v4 = vpop.permute.xlu1 %6378  ;;  %v5421_v1 = vmul.f32 %v10713_v10, %v10703_v37  ;;  %v5416_v22 = vmul.f32 %v5407_v57, %v10702_v46  ;;  %v5415_v12 = vmul.f32 %v5411_v16, %v10700_v11  ;;  %v10722_v45 = vld [vmem:[#allocation13_spill] sm:$0xff]  ;;  %v10725_v11 = vld [vmem:[#allocation6_spill] sm:$0xff]  ;;  %v10731_v57 = vld [vmem:[#allocation7_spill] sm:$0xff] }
 0x555   :  { %5252 = vmatpush1.msra.mxu0 %v5202_v13  ;;  %5285 = vmatprep.mubr.f32.mxu0 %v10580_v31  ;;  %v5418_v3 = vmul.f32 %v5399_v18, %v10701_v44  ;;  %v5417_v49 = vmul.f32 %v5403_v58, %v10703_v37  ;;  %v10735_v16 = vld [vmem:[#allocation4_spill] sm:$0xff]  ;;  %v10739_v17 = vld [vmem:[#allocation77_spill] sm:$0xff] }
 0x556   :  { %5322 = vmatprep.subr.mxu1 %v5205_v52  ;;  %6775 = vmatmul.mubr.msk.f32.vlgmr.msra.gmra.mxu0 %vm2424_vm9, %v4729_v8  ;;  %v9989_v42 = vpop.permute.xlu0 %5735  ;;  %v4731_v52 = vld [vmem:[%s10328_s4 + $0x4] sm:$0x1]  ;;  %v10740_v41 = vld [vmem:[#allocation60_spill] sm:$0xff] }
 0x557   :  { %5323 = vmatpush1.msra.mxu1 %v5204_v47  ;;  %5356 = vmatprep.mubr.f32.mxu1 %v10580_v31  ;;  %v10724_v47 = vld [vmem:[#allocation10_spill] sm:$0xff]  ;;  %v10741_v58 = vld [vmem:[#allocation76_spill] sm:$0xff] }
 0x558   :  { %5458 = vmatprep.subr.mxu0 %v5428_v43  ;;  %6776 = vmatmul.mubr.msk.f32.vlgmr.msra.gmra.mxu1 %vm2424_vm9, %v4729_v8  ;;  %v9996_v50 = vpop.permute.xlu1 %6394  ;;  %v10723_v8 = vld [vmem:[#allocation8_spill] sm:$0xff]  ;;  %v10728_v43 = vld [vmem:[#allocation5_spill] sm:$0xff] }
 0x559   :  { %5459 = vmatpush1.msra.mxu0 %v5427_v21  ;;  %5529 = vmatprep.subr.mxu1 %v5430_v24  ;;  %v10726_v21 = vld [vmem:[#allocation11_spill] sm:$0xff]  ;;  %v10727_v24 = vld [vmem:[#allocation21_spill] sm:$0xff] }
 0x55a   :  { %5460 = vmatprep.subr.mxu0 %v5424_v6  ;;  %5530 = vmatpush1.msra.mxu1 %v5429_v62  ;;  %v5752_v27 = vpop.permute.xlu0 %5751  ;;  %v10729_v6 = vld [vmem:[#allocation20_spill] sm:$0xff]  ;;  %v10730_v62 = vld [vmem:[#allocation23_spill] sm:$0xff] }
 0x55b   :  { %5461 = vmatpush1.msra.mxu0 %v5423_v20  ;;  %5531 = vmatprep.subr.mxu1 %v5426_v48  ;;  %v10733_v20 = vld [vmem:[#allocation51_spill] sm:$0xff]  ;;  %v10734_v48 = vld [vmem:[#allocation22_spill] sm:$0xff]  ;;  %v5787_v10 = vmul.f32 %v10741_v58, %v10730_v62 }
 0x55c   :  { %5462 = vmatprep.subr.mxu0 %v5420_v15  ;;  %5532 = vmatpush1.msra.mxu1 %v5425_v5  ;;  %v5744_v30 = vpop.permute.xlu1 %5743  ;;  %v5765_v33 = vsel %vm1212_vm5, %v10733_v20, %v10732_v14  ;;  %v5786_v15 = vmul.f32 %v10736_v19, %v10729_v6  ;;  %v10737_v5 = vld [vmem:[#allocation43_spill] sm:$0xff]  ;;  %v5785_v18 = vmul.f32 %v10738_v26, %v10734_v48 }
 0x55d   :  { %5463 = vmatpush1.msra.mxu0 %v5419_v28  ;;  %5533 = vmatprep.subr.mxu1 %v5422_v25  ;;  %v5768_v13 = vsel %vm1212_vm5, %v5744_v30, %v5752_v27  ;;  %v5772_v61 = vsel %vm1212_vm5, %v9989_v42, %v5744_v30  ;;  %v5788_v28 = vmul.f32 %v10739_v17, %v10727_v24  ;;  %v10742_v30 = vld [vmem:[#allocation42_spill] sm:$0xff]  ;;  %v10759_v26 = vld [vmem:[#allocation63_spill] sm:$0xff] }
 0x55e   :  { %5464 = vmatprep.subr.mxu0 %v5416_v22  ;;  %5534 = vmatpush1.msra.mxu1 %v5421_v1  ;;  %v10034_v53 = vpop.permute.xlu0 %5948  ;;  %v5790_v37 = vmul.f32 %v5768_v13, %v10729_v6  ;;  %v5789_v39 = vmul.f32 %v5772_v61, %v10734_v48  ;;  %v5782_v25 = vmul.f32 %v10740_v41, %v10729_v6  ;;  %v10748_v61 = vld [vmem:[#allocation27_spill] sm:$0xff]  ;;  %v10760_v17 = vld [vmem:[#allocation66_spill] sm:$0xff] }
 0x55f   :  { %5465 = vmatpush1.msra.mxu0 %v5415_v12  ;;  %5498 = vmatprep.mubr.f32.mxu0 %v10580_v31  ;;  %v5778_v1 = vmul.f32 %v5765_v33, %v10729_v6  ;;  %v5773_v12 = vsel %vm1212_vm5, %v10742_v30, %v10737_v5 }
 0x560   :  { %5535 = vmatprep.subr.mxu1 %v5418_v3  ;;  %6777 = vmatmul.mubr.msk.f32.vlgmr.msra.gmra.mxu0 %vm2424_vm9, %v4730_v9  ;;  %v5760_v36 = vpop.permute.xlu1 %5759  ;;  %v5780_v13 = vmul.f32 %v5773_v12, %v10727_v24 }
 0x561   :  { %5536 = vmatpush1.msra.mxu1 %v5417_v49  ;;  %5569 = vmatprep.mubr.f32.mxu1 %v10580_v31  ;;  %v5776_v40 = vsel %vm1212_vm5, %v5760_v36, %v9989_v42  ;;  %v5764_v29 = vsel %vm1212_vm5, %v5752_v27, %v5760_v36  ;;  %v5769_v27 = vsel %vm1212_vm5, %v10737_v5, %v10733_v20  ;;  %v10744_v49 = vld [vmem:[#allocation62_spill] sm:$0xff]  ;;  %v10755_v20 = vld [vmem:[#allocation81_spill] sm:$0xff]  ;;  %v10758_v5 = vld [vmem:[#allocation40_spill] sm:$0xff] }
 0x562   :  { %5607 = vmatprep.subr.mxu0 %v10714_v59  ;;  %6778 = vmatmul.mubr.msk.f32.vlgmr.msra.gmra.mxu1 %vm2424_vm9, %v4730_v9  ;;  %v5965_v0 = vpop.permute.xlu0 %5964  ;;  %v5792_v46 = vmul.f32 %v5776_v40, %v10727_v24  ;;  %v5791_v32 = vmul.f32 %v5764_v29, %v10730_v62  ;;  %v10743_v9 = vld [vmem:[#allocation47_spill] sm:$0xff]  ;;  %v5784_v36 = vmul.f32 %v10744_v49, %v10727_v24  ;;  %v10751_v24 = vld [vmem:[#allocation26_spill] sm:$0xff] }
 0x563   :  { %5608 = vmatpush1.msra.mxu0 %v10715_v7  ;;  %5678 = vmatprep.subr.mxu1 %v10716_v56  ;;  %v5781_v3 = vmul.f32 %v10743_v9, %v10734_v48  ;;  %v5761_v59 = vsel %vm1212_vm5, %v10732_v14, %v10742_v30  ;;  %v10745_v7 = vld [vmem:[#allocation61_spill] sm:$0xff] }
 0x564   :  { %5609 = vmatprep.subr.mxu0 %v10717_v35  ;;  %5679 = vmatpush1.msra.mxu1 %v10718_v23  ;;  %v5957_v63 = vpop.permute.xlu1 %5956  ;;  %v5783_v56 = vmul.f32 %v10745_v7, %v10730_v62  ;;  %v5779_v29 = vmul.f32 %v5761_v59, %v10730_v62  ;;  %v10753_v62 = vld [vmem:[#allocation39_spill] sm:$0xff] }
 0x565   :  { %5610 = vmatpush1.msra.mxu0 %v10719_v60  ;;  %5680 = vmatprep.subr.mxu1 %v10720_v54  ;;  %v5777_v60 = vmul.f32 %v5769_v27, %v10734_v48  ;;  %v5981_v54 = vsel %vm1451_vm6, %v5957_v63, %v5965_v0  ;;  %v5985_v40 = vsel %vm1451_vm6, %v10034_v53, %v5957_v63  ;;  %v10750_v63 = vld [vmem:[#allocation44_spill] sm:$0xff] }
 0x566   :  { %5611 = vmatprep.subr.mxu0 %v10721_v38  ;;  %5681 = vmatpush1.msra.mxu1 %v10722_v45  ;;  %v10053_v51 = vpop.permute.xlu0 %6161  ;;  %v4732_v45 = vld [vmem:[%s10328_s4 + $0x5] sm:$0x1]  ;;  %v10756_v48 = vld [vmem:[#allocation64_spill] sm:$0xff]  ;;  %v5986_v27 = vsel %vm1451_vm6, %v10758_v5, %v10753_v62 }
 0x567   :  { %5612 = vmatpush1.msra.mxu0 %v10723_v8  ;;  %5682 = vmatprep.subr.mxu1 %v10724_v47  ;;  %v10746_v8 = vld [vmem:[#allocation25_spill] sm:$0xff] }
 0x568   :  { %5613 = vmatprep.subr.mxu0 %v10725_v11  ;;  %5683 = vmatpush1.msra.mxu1 %v10726_v21  ;;  %v5973_v44 = vpop.permute.xlu1 %5972  ;;  %v6001_v33 = vmul.f32 %v10755_v20, %v10746_v8  ;;  %v10776_v20 = vld [vmem:[#allocation70_spill] sm:$0xff] }
 0x569   :  { %5614 = vmatpush1.msra.mxu0 %v10728_v43  ;;  %5647 = vmatprep.mubr.f32.mxu0 %v10580_v31  ;;  %v5989_v35 = vsel %vm1451_vm6, %v5973_v44, %v10034_v53  ;;  %v5977_v38 = vsel %vm1451_vm6, %v5965_v0, %v5973_v44  ;;  %v10747_v0 = vld [vmem:[#allocation24_spill] sm:$0xff]  ;;  %v10749_v53 = vld [vmem:[#allocation41_spill] sm:$0xff]  ;;  %v10752_v43 = vld [vmem:[#allocation79_spill] sm:$0xff] }
 0x56a   :  { %5684 = vmatprep.subr.mxu1 %v10731_v57  ;;  %6779 = vmatmul.mubr.msk.f32.vlgmr.msra.gmra.mxu0 %vm2424_vm9, %v4731_v52  ;;  %v10076_v42 = vpop.permute.xlu0 %6177  ;;  %v6005_v47 = vmul.f32 %v5989_v35, %v10746_v8  ;;  %v6004_v11 = vmul.f32 %v5977_v38, %v10748_v61  ;;  %v5978_v44 = vsel %vm1451_vm6, %v10750_v63, %v10749_v53  ;;  %v10754_v57 = vld [vmem:[#allocation78_spill] sm:$0xff]  ;;  %v10763_v35 = vld [vmem:[#allocation28_spill] sm:$0xff]  ;;  %v10766_v38 = vld [vmem:[#allocation37_spill] sm:$0xff] }
 0x56b   :  { %5685 = vmatpush1.msra.mxu1 %v10735_v16  ;;  %5718 = vmatprep.mubr.f32.mxu1 %v10580_v31  ;;  %v5999_v6 = vmul.f32 %v10752_v43, %v10747_v0  ;;  %v5998_v14 = vmul.f32 %v10754_v57, %v10751_v24  ;;  %v10757_v16 = vld [vmem:[#allocation80_spill] sm:$0xff]  ;;  %v5974_v41 = vsel %vm1451_vm6, %v10749_v53, %v10758_v5  ;;  %v10775_v57 = vld [vmem:[#allocation67_spill] sm:$0xff] }
 0x56c   :  { %5820 = vmatprep.subr.mxu0 %v5790_v37  ;;  %6780 = vmatmul.mubr.msk.f32.vlgmr.msra.gmra.mxu1 %vm2424_vm9, %v4731_v52  ;;  %v10088_v55 = vpop.permute.xlu1 %6169  ;;  %v6003_v52 = vmul.f32 %v5981_v54, %v10747_v0  ;;  %v6000_v19 = vmul.f32 %v10757_v16, %v10748_v61  ;;  %v5992_v7 = vmul.f32 %v5974_v41, %v10748_v61  ;;  %v10774_v43 = vld [vmem:[#allocation84_spill] sm:$0xff] }
 0x56d   :  { %5821 = vmatpush1.msra.mxu0 %v5789_v39  ;;  %5891 = vmatprep.subr.mxu1 %v5792_v46  ;;  %v6002_v46 = vmul.f32 %v5985_v40, %v10751_v24  ;;  %v5995_v39 = vmul.f32 %v10756_v48, %v10747_v0  ;;  %v6194_v12 = vsel %vm1690_vm7, %v10088_v55, %v10076_v42  ;;  %v10777_v48 = vld [vmem:[#allocation69_spill] sm:$0xff] }
 0x56e   :  { %5822 = vmatprep.subr.mxu0 %v5786_v15  ;;  %5892 = vmatpush1.msra.mxu1 %v5791_v32  ;;  %v10103_v22 = vpop.permute.xlu0 %6374  ;;  %v5982_v32 = vsel %vm1451_vm6, %v10753_v62, %v10750_v63  ;;  %v5991_v15 = vmul.f32 %v5978_v44, %v10747_v0  ;;  %v6198_v49 = vsel %vm1690_vm7, %v10053_v51, %v10088_v55  ;;  %v10772_v63 = vld [vmem:[#allocation38_spill] sm:$0xff] }
 0x56f   :  { %5823 = vmatpush1.msra.mxu0 %v5785_v18  ;;  %5893 = vmatprep.subr.mxu1 %v5788_v28  ;;  %v5994_v18 = vmul.f32 %v10759_v26, %v10751_v24  ;;  %v5997_v28 = vmul.f32 %v10760_v17, %v10746_v8  ;;  %v5990_v30 = vmul.f32 %v5982_v32, %v10751_v24  ;;  %v10773_v24 = vld [vmem:[#allocation68_spill] sm:$0xff]  ;;  %v4734_v26 = vld [vmem:[%s10328_s4 + $0x7] sm:$0x1] }
 0x570   :  { %5824 = vmatprep.subr.mxu0 %v5782_v25  ;;  %5894 = vmatpush1.msra.mxu1 %v5787_v10  ;;  %v6186_v23 = vpop.permute.xlu1 %6185  ;;  %v10761_v25 = vld [vmem:[#allocation65_spill] sm:$0xff] }
 0x571   :  { %5825 = vmatpush1.msra.mxu0 %v5781_v3  ;;  %5895 = vmatprep.subr.mxu1 %v5784_v36  ;;  %v5996_v58 = vmul.f32 %v10761_v25, %v10748_v61  ;;  %v6202_v10 = vsel %vm1690_vm7, %v6186_v23, %v10053_v51  ;;  %v6190_v9 = vsel %vm1690_vm7, %v10076_v42, %v6186_v23  ;;  %v4733_v3 = vld [vmem:[%s10328_s4 + $0x6] sm:$0x1] }
 0x572   :  { %5826 = vmatprep.subr.mxu0 %v5778_v1  ;;  %5896 = vmatpush1.msra.mxu1 %v5783_v56  ;;  %v10140_v21 = vpop.permute.xlu0 %6390  ;;  %v5993_v36 = vmul.f32 %v5986_v27, %v10746_v8  ;;  %v10762_v56 = vld [vmem:[#allocation29_spill] sm:$0xff]  ;;  %v6216_v23 = vmul.f32 %v6194_v12, %v10763_v35  ;;  %v10765_v51 = vld [vmem:[#allocation30_spill] sm:$0xff] }
 0x573   :  { %5827 = vmatpush1.msra.mxu0 %v5777_v60  ;;  %5860 = vmatprep.mubr.f32.mxu0 %v10580_v31  ;;  %v6218_v42 = vmul.f32 %v6202_v10, %v10762_v56  ;;  %v10764_v60 = vld [vmem:[#allocation31_spill] sm:$0xff]  ;;  %v6215_v55 = vmul.f32 %v6198_v49, %v10765_v51  ;;  %v10778_v25 = vld [vmem:[#allocation34_spill] sm:$0xff]  ;;  %v10780_v10 = vld [vmem:[#allocation32_spill] sm:$0xff] }
 0x574   :  { %5897 = vmatprep.subr.mxu1 %v5780_v13  ;;  %6781 = vmatmul.mubr.msk.f32.vlgmr.msra.gmra.mxu0 %vm2424_vm9, %v4732_v45  ;;  %v10151_v37 = vpop.permute.xlu1 %6382  ;;  %v6217_v54 = vmul.f32 %v6190_v9, %v10764_v60  ;;  %v10768_v13 = vld [vmem:[#allocation83_spill] sm:$0xff]  ;;  %v10782_v9 = vld [vmem:[#allocation33_spill] sm:$0xff] }
 0x575   :  { %5898 = vmatpush1.msra.mxu1 %v5779_v29  ;;  %5931 = vmatprep.mubr.f32.mxu1 %v10580_v31  ;;  %v6212_v29 = vmul.f32 %v10768_v13, %v10763_v35  ;;  %v6407_v5 = vsel %vm1929_vm8, %v10151_v37, %v10140_v21  ;;  %v6411_v17 = vsel %vm1929_vm8, %v10103_v22, %v10151_v37  ;;  %v10783_v37 = vld [vmem:[#allocation35_spill] sm:$0xff] }
 0x576   :  { %6033 = vmatprep.subr.mxu0 %v6003_v52  ;;  %6782 = vmatmul.mubr.msk.f32.vlgmr.msra.gmra.mxu1 %vm2424_vm9, %v4732_v45  ;;  %v10183_v1 = vpop.permute.xlu0 %6386  ;;  %v10767_v45 = vld [vmem:[#allocation36_spill] sm:$0xff]  ;;  %v10770_v52 = vld [vmem:[#allocation82_spill] sm:$0xff]  ;;  %v6429_v49 = vmul.f32 %v6407_v5, %v10780_v10 }
 0x577   :  { %6034 = vmatpush1.msra.mxu0 %v6002_v46  ;;  %6104 = vmatprep.subr.mxu1 %v6005_v47  ;;  %v6195_v40 = vsel %vm1690_vm7, %v10767_v45, %v10766_v38  ;;  %v10769_v47 = vld [vmem:[#allocation50_spill] sm:$0xff]  ;;  %v6211_v61 = vmul.f32 %v10770_v52, %v10765_v51  ;;  %v6208_v46 = vmul.f32 %v10773_v24, %v10763_v35 }
 0x578   :  { %6035 = vmatprep.subr.mxu0 %v5999_v6  ;;  %6105 = vmatpush1.msra.mxu1 %v6004_v11  ;;  %v6399_v59 = vpop.permute.xlu1 %6398  ;;  %v6191_v0 = vsel %vm1690_vm7, %v10766_v38, %v10769_v47  ;;  %v10771_v11 = vld [vmem:[#allocation85_spill] sm:$0xff]  ;;  %v6187_v44 = vsel %vm1690_vm7, %v10769_v47, %v10772_v63  ;;  %v6213_v6 = vmul.f32 %v10774_v43, %v10764_v60 }
 0x579   :  { %6036 = vmatpush1.msra.mxu0 %v5998_v14  ;;  %6106 = vmatprep.subr.mxu1 %v6001_v33  ;;  %v6214_v53 = vmul.f32 %v10771_v11, %v10762_v56  ;;  %v6199_v32 = vsel %vm1690_vm7, %v10772_v63, %v10767_v45  ;;  %v6207_v14 = vmul.f32 %v10775_v57, %v10765_v51 }
 0x57a   :  { %6037 = vmatprep.subr.mxu0 %v5995_v39  ;;  %6107 = vmatpush1.msra.mxu1 %v6000_v19  ;;  %v6369_v8 = vpop.permute.xlu0 %6368  ;;  %v6210_v33 = vmul.f32 %v10776_v20, %v10762_v56  ;;  %v6209_v39 = vmul.f32 %v10777_v48, %v10764_v60  ;;  %v6415_v16 = vsel %vm1929_vm8, %v6399_v59, %v10103_v22 }
 0x57b   :  { %6038 = vmatpush1.msra.mxu0 %v5994_v18  ;;  %6108 = vmatprep.subr.mxu1 %v5997_v28  ;;  %v6204_v19 = vmul.f32 %v6191_v0, %v10763_v35  ;;  %v6403_v27 = vsel %vm1929_vm8, %v10140_v21, %v6399_v59  ;;  %v6205_v18 = vmul.f32 %v6187_v44, %v10764_v60  ;;  %v10779_v21 = vld [vmem:[#allocation86_spill] sm:$0xff] }
 0x57c   :  { %6039 = vmatprep.subr.mxu0 %v5991_v15  ;;  %6109 = vmatpush1.msra.mxu1 %v5996_v58  ;;  %v6377_v62 = vpop.permute.xlu1 %6376  ;;  %v6203_v15 = vmul.f32 %v6195_v40, %v10765_v51  ;;  %v6206_v28 = vmul.f32 %v6199_v32, %v10762_v56  ;;  %v6424_v58 = vmul.f32 %v10779_v21, %v10778_v25 }
 0x57d   :  { %6040 = vmatpush1.msra.mxu0 %v5990_v30  ;;  %6073 = vmatprep.mubr.f32.mxu0 %v10580_v31  ;;  %v10781_v30 = vld [vmem:[#allocation87_spill] sm:$0xff]  ;;  %v6405_v22 = vsel %vm1929_vm8, %v9980_v4, %v10183_v1  ;;  %v6413_v51 = vsel %vm1929_vm8, %v9996_v50, %v9970_v34  ;;  %v6408_v45 = vsel %vm1929_vm8, %v6369_v8, %v6377_v62 }
 0x57e   :  { %6110 = vmatprep.subr.mxu1 %v5993_v36  ;;  %6783 = vmatmul.mubr.msk.f32.vlgmr.msra.gmra.mxu0 %vm2424_vm9, %v4733_v3  ;;  %v6385_v41 = vpop.permute.xlu0 %6384  ;;  %v6425_v12 = vmul.f32 %v10781_v30, %v10780_v10  ;;  %v6430_v36 = vmul.f32 %v6403_v27, %v10783_v37  ;;  %v6421_v38 = vmul.f32 %v6405_v22, %v10780_v10 }
 0x57f   :  { %6111 = vmatpush1.msra.mxu1 %v5992_v7  ;;  %6144 = vmatprep.mubr.f32.mxu1 %v10580_v31  ;;  %v10784_v7 = vld [vmem:[#allocation88_spill] sm:$0xff]  ;;  %v6404_v35 = vsel %vm1929_vm8, %v6377_v62, %v6385_v41 }
 0x580   :  { %6246 = vmatprep.subr.mxu0 %v6216_v23  ;;  %6784 = vmatmul.mubr.msk.f32.vlgmr.msra.gmra.mxu1 %vm2424_vm9, %v4733_v3  ;;  %v6431_v3 = vmul.f32 %v6415_v16, %v10782_v9  ;;  %v6393_v59 = vpop.permute.xlu1 %6392  ;;  %v6426_v56 = vmul.f32 %v10784_v7, %v10783_v37  ;;  %v10785_v23 = vld [vmem:[#allocation89_spill] sm:$0xff] }
 0x581   :  { %6247 = vmatpush1.msra.mxu0 %v6215_v55  ;;  %6317 = vmatprep.subr.mxu1 %v6218_v42  ;;  %v6428_v42 = vmul.f32 %v6411_v17, %v10778_v25  ;;  %v6427_v60 = vmul.f32 %v10785_v23, %v10782_v9  ;;  %v6401_v55 = vsel %vm1929_vm8, %v10183_v1, %v9996_v50 }
 0x582   :  { %6248 = vmatprep.subr.mxu0 %v6212_v29  ;;  %6318 = vmatpush1.msra.mxu1 %v6217_v54  ;;  %v6409_v54 = vsel %vm1929_vm8, %v9970_v34, %v9980_v4  ;;  %v6412_v4 = vsel %vm1929_vm8, %v6393_v59, %v6369_v8  ;;  %v6417_v34 = vmul.f32 %v6404_v35, %v10780_v10 }
 0x583   :  { %6249 = vmatpush1.msra.mxu0 %v6211_v61  ;;  %6319 = vmatprep.subr.mxu1 %v6214_v53  ;;  %v6400_v40 = vsel %vm1929_vm8, %v6385_v41, %v6393_v59  ;;  %v6420_v13 = vmul.f32 %v6409_v54, %v10778_v25  ;;  %v6423_v50 = vmul.f32 %v6413_v51, %v10782_v9 }
 0x584   :  { %6250 = vmatprep.subr.mxu0 %v6208_v46  ;;  %6320 = vmatpush1.msra.mxu1 %v6213_v6  ;;  %v6422_v1 = vmul.f32 %v6401_v55, %v10783_v37  ;;  %v6419_v29 = vmul.f32 %v6412_v4, %v10782_v9  ;;  %v6416_v8 = vmul.f32 %v6408_v45, %v10778_v25  ;;  %v6832_v55 = vmov 1966171168  }
 0x585   :  { %6251 = vmatpush1.msra.mxu0 %v6207_v14  ;;  %6321 = vmatprep.subr.mxu1 %v6210_v33  ;;  %v6418_v47 = vmul.f32 %v6400_v40, %v10783_v37 }
 0x586   :  { %6252 = vmatprep.subr.mxu0 %v6204_v19  ;;  %6322 = vmatpush1.msra.mxu1 %v6209_v39 }
 0x587   :  { %6253 = vmatpush1.msra.mxu0 %v6203_v15  ;;  %6286 = vmatprep.mubr.f32.mxu0 %v10580_v31 }
 0x588   :  { %6323 = vmatprep.subr.mxu1 %v6206_v28  ;;  %6785 = vmatmul.mubr.msk.f32.vlgmr.msra.gmra.mxu0 %vm2424_vm9, %v4734_v26 }
 0x589   :  { %6324 = vmatpush1.msra.mxu1 %v6205_v18  ;;  %6357 = vmatprep.mubr.f32.mxu1 %v10580_v31 }
 0x58a   :  { %6459 = vmatprep.subr.mxu0 %v6429_v49  ;;  %6786 = vmatmul.mubr.msk.f32.vlgmr.msra.gmra.mxu1 %vm2424_vm9, %v4734_v26 }
 0x58b   :  { %6460 = vmatpush1.msra.mxu0 %v6428_v42  ;;  %6530 = vmatprep.subr.mxu1 %v6431_v3 }
 0x58c   :  { %6461 = vmatprep.subr.mxu0 %v6425_v12  ;;  %6531 = vmatpush1.msra.mxu1 %v6430_v36 }
 0x58d   :  { %6462 = vmatpush1.msra.mxu0 %v6424_v58  ;;  %6532 = vmatprep.subr.mxu1 %v6427_v60 }
 0x58e   :  { %6463 = vmatprep.subr.mxu0 %v6421_v38  ;;  %6533 = vmatpush1.msra.mxu1 %v6426_v56  ;;  %v6596_v38 = vunpack.c.l.s4 %v6832_v55 }
 0x58f   :  { %6464 = vmatpush1.msra.mxu0 %v6420_v13  ;;  %6534 = vmatprep.subr.mxu1 %v6423_v50 }
 0x590   :  { %6535 = vmatpush1.msra.mxu1 %v6422_v1  ;;  %6465 = vmatprep.subr.mxu0 %v6417_v34 }
 0x591   :  { %6466 = vmatpush1.msra.mxu0 %v6416_v8  ;;  %6499 = vmatprep.mubr.f32.mxu0 %v10580_v31 }
 0x592   :  { %6787 = vmatmul.mubr.msk.f32.vlgmr.msra.gmra.mxu0 %vm2424_vm9, %v4735_v2  ;;  %6536 = vmatprep.subr.mxu1 %v6419_v29 }
 0x593   :  { %6537 = vmatpush1.msra.mxu1 %v6418_v47  ;;  %6570 = vmatprep.mubr.f32.mxu1 %v10580_v31 }
 0x594   :  { %6788 = vmatmul.mubr.msk.f32.vlgmr.msra.gmra.mxu1 %vm2424_vm9, %v4735_v2  ;;  %v6583_v2 = vpop.permute.xlu0 %6582 }
 0x604   :  { %v4933_v0 = vpop.f32.mrf.mxu0 }
 0x605   :  { %v5004_v52 = vpop.f32.mrf.mxu1 }
 0x606   :  { %v4935_v61 = vpop.f32.mrf.mxu0 }
 0x607   :  { %v5006_v11 = vpop.f32.mrf.mxu1 }
 0x60d   :  { %v5078_v53 = vpop.f32.mrf.mxu0 }
 0x60e   :  { %v5079_v5 = vadd.f32 %v5078_v53, %v4933_v0 }
 0x60f   :  { %v5149_v63 = vpop.f32.mrf.mxu1  ;;  %v5080_v44 = vpop.f32.mrf.mxu0 }
 0x610   :  { %v5150_v18 = vadd.f32 %v5149_v63, %v5004_v52  ;;  %v5081_v17 = vadd.f32 %v5080_v44, %v4935_v61  ;;  %v6597_v63 = vunpack.c.0.s8 %v6596_v38 }
 0x611   :  { %v5151_v24 = vpop.f32.mrf.mxu1 }
 0x612   :  { %v5152_v25 = vadd.f32 %v5151_v24, %v5006_v11 }
 0x616   :  { %v5287_v46 = vpop.f32.mrf.mxu0 }
 0x617   :  { %v5363_v28 = vadd.f32 %v5287_v46, %v5079_v5 }
 0x618   :  { %v5358_v43 = vpop.f32.mrf.mxu1  ;;  %v5289_v6 = vpop.f32.mrf.mxu0 }
 0x619   :  { %v5365_v21 = vadd.f32 %v5358_v43, %v5150_v18  ;;  %v5364_v58 = vadd.f32 %v5289_v6, %v5081_v17  ;;  %v10786_v6 = vld [vmem:[#allocation2_spill] sm:$0xff] }
 0x61a   :  { %v5360_v62 = vpop.f32.mrf.mxu1 }
 0x61b   :  { %v5366_v12 = vadd.f32 %v5360_v62, %v5152_v25  ;;  %v6600_v62 = vsub.s32 %v6597_v63, %v10786_v6 }
 0x620   :  { %v5500_v32 = vpop.f32.mrf.mxu0 }
 0x621   :  { %v5576_v10 = vadd.f32 %v5500_v32, %v5363_v28 }
 0x622   :  { %v5571_v57 = vpop.f32.mrf.mxu1  ;;  %v5502_v14 = vpop.f32.mrf.mxu0 }
 0x623   :  { %v5578_v9 = vadd.f32 %v5571_v57, %v5365_v21  ;;  %v5577_v3 = vadd.f32 %v5502_v14, %v5364_v58 }
 0x624   :  { %v5573_v20 = vpop.f32.mrf.mxu1 }
 0x625   :  { %v5579_v36 = vadd.f32 %v5573_v20, %v5366_v12 }
 0x62a   :  { %v5649_v33 = vpop.f32.mrf.mxu0 }
 0x62b   :  { %v5725_v49 = vadd.f32 %v5649_v33, %v5576_v10 }
 0x62c   :  { %v5720_v31 = vpop.f32.mrf.mxu1  ;;  %v5651_v48 = vpop.f32.mrf.mxu0 }
 0x62d   :  { %v5727_v59 = vadd.f32 %v5720_v31, %v5578_v9  ;;  %v5726_v7 = vadd.f32 %v5651_v48, %v5577_v3 }
 0x62e   :  { %v5722_v39 = vpop.f32.mrf.mxu1 }
 0x62f   :  { %v5728_v35 = vadd.f32 %v5722_v39, %v5579_v36  ;;  %v10787_v39 = vlaneseq }
 0x631   :  { %vm6620_vm10 = vcmp.lt.s32.totalorder %v10787_v39, 512 }
 0x634   :  { %v5862_v16 = vpop.f32.mrf.mxu0 }
 0x635   :  { %v5938_v56 = vadd.f32 %v5862_v16, %v5725_v49 }
 0x636   :  { %v5933_v19 = vpop.f32.mrf.mxu1  ;;  %v5864_v15 = vpop.f32.mrf.mxu0 }
 0x637   :  { %v5940_v23 = vadd.f32 %v5933_v19, %v5727_v59  ;;  %v5939_v60 = vadd.f32 %v5864_v15, %v5726_v7 }
 0x638   :  { %v5935_v27 = vpop.f32.mrf.mxu1 }
 0x639   :  { %v5941_v4 = vadd.f32 %v5935_v27, %v5728_v35 }
 0x63e   :  { %v6075_v26 = vpop.f32.mrf.mxu0 }
 0x63f   :  { %v6151_v54 = vadd.f32 %v6075_v26, %v5938_v56 }
 0x640   :  { %v6146_v41 = vpop.f32.mrf.mxu1  ;;  %v6077_v30 = vpop.f32.mrf.mxu0 }
 0x641   :  { %v6153_v45 = vadd.f32 %v6146_v41, %v5940_v23  ;;  %v6152_v34 = vadd.f32 %v6077_v30, %v5939_v60 }
 0x642   :  { %v6148_v22 = vpop.f32.mrf.mxu1 }
 0x643   :  { %v6154_v1 = vadd.f32 %v6148_v22, %v5941_v4 }
 0x648   :  { %v6288_v37 = vpop.f32.mrf.mxu0 }
 0x649   :  { %v6364_v40 = vadd.f32 %v6288_v37, %v6151_v54 }
 0x64a   :  { %v6359_v42 = vpop.f32.mrf.mxu1  ;;  %v6290_v51 = vpop.f32.mrf.mxu0 }
 0x64b   :  { %v6366_v29 = vadd.f32 %v6359_v42, %v6153_v45  ;;  %v6365_v8 = vadd.f32 %v6290_v51, %v6152_v34 }
 0x64c   :  { %v6361_v13 = vpop.f32.mrf.mxu1 }
 0x64d   :  { %v6367_v61 = vadd.f32 %v6361_v13, %v6154_v1 }
 0x652   :  { %v6501_v50 = vpop.f32.mrf.mxu0 }
 0x653   :  { %v6577_v47 = vadd.f32 %v6501_v50, %v6364_v40 }
 0x654   :  { %v6503_v0 = vpop.f32.mrf.mxu0  ;;  %v6572_v52 = vpop.f32.mrf.mxu1 }
 0x655   :  { %v6578_v11 = vadd.f32 %v6503_v0, %v6365_v8  ;;  %v6579_v53 = vadd.f32 %v6572_v52, %v6366_v29  ;;  %v6585_v24 = vadd.f32 %v6583_v2, %v6577_v47 }
 0x656   :  { %v6574_v44 = vpop.f32.mrf.mxu1 }
 0x657   :  { %v6586_v46 = vadd.f32 %v6583_v2, %v6578_v11  ;;  %v6580_v43 = vadd.f32 %v6574_v44, %v6367_v61  ;;  %v6587_v32 = vadd.f32 %v6583_v2, %v6579_v53 }
 0x659   :  { %v6593_v57 = vcombine.low %v6585_v24, %v6586_v46  ;;  %v6588_v14 = vadd.f32 %v6583_v2, %v6580_v43 }
 0x65b   :  { %v6594_v20 = vcombine.low %v6587_v32, %v6588_v14  ;;  %v6601_v33 = vrot.slane %v6593_v57, %v6600_v62 }
 0x65d   :  { %v6608_v31 = vrot.slane %v6594_v20, %v6600_v62 }
 0x65f   :  { %v6609_v48 = vcombine.low %v6601_v33, %v6608_v31 }
 0x661   :  { %v6616_v16 = vrot.slane %v6609_v48, %v6600_v62 }
 0x663   :  { %6622 = vst.msk [vmem:[%s10329_s6] sm:$0xf] %vm6620_vm10, %v6616_v16 }

</bundles_post_ra>
